<compile_context>
chip_gen: v7x
topology: tpu7x:2x2x1
jax: 0.10.0
libtpu: 0.0.40
codegen_flags: <defaults>
</compile_context>

<pallas_src>
import functools

import jax
import jax.numpy as jnp
from jax.experimental import pallas as pl
from jax.experimental.pallas import tpu as pltpu

LANE = 128
_EPS = 1e-5
# 48 MiB scoped VMEM: a clear raise over the 16/32 MiB defaults, still leaves
# headroom on v7x's 64 MiB physical VMEM.
_VMEM_LIMIT = 48 * 1024 * 1024


def _round_up(v, m):
    return ((v + m - 1) // m) * m


def _pad2(a, rows, cols):
    return jnp.pad(a, ((0, rows - a.shape[0]), (0, cols - a.shape[1])))


def _choose_tiles(n, desired_m=256, desired_k=512):
    """Power-of-two*128 tiles (256+ fills the 256-wide MXU on v6e/v7x)."""
    n128 = _round_up(max(n, 1), LANE)

    def pick(desired):
        t = LANE
        while t * 2 <= min(desired, n128):
            t *= 2
        return t

    tile_m, tile_k = pick(desired_m), pick(desired_k)
    n_pad = _round_up(n128, max(tile_m, tile_k))
    # Keep >=2 row tiles so both v7x TensorCores get work on the parallel axis.
    if n_pad // tile_m < 2 and tile_m > LANE:
        tile_m //= 2
    return tile_m, tile_k, n_pad


# --------------------------------------------------------------------------
# Kernel 1: one GN block = (previous block's BN applied via hoisted affine)
#           + GraphConv + PReLU + per-tile BatchNorm statistics.
# Grid: (node-row tiles [parallel], adjacency column tiles [arbitrary]).
# Scalar prefetch: per-row-tile occupied-column-tile list + count.
# --------------------------------------------------------------------------
def _gn_layer_kernel(cols_ref, cnt_ref,                       # scalar prefetch
                     xr_ref, xk_ref, a_ref, deg_ref, sin_ref, tin_ref,
                     ws_ref, wn_ref, b_ref, alpha_ref,
                     h_ref, stats_ref, acc_ref, *, n_valid, tile_m):
    del cols_ref  # only used inside index_maps
    # program_id / num_programs read ONLY at top level; values are closed over
    # by the pl.when bodies (required for interpret-mode lowering).
    i = pl.program_id(0)
    k = pl.program_id(1)
    nk = pl.num_programs(1)
    n_nz = cnt_ref[i]                 # occupied adjacency column tiles, row i

    @pl.when(k == 0)
    def _init():
        acc_ref[...] = jnp.zeros_like(acc_ref)

    # Hot loop: pure bf16 MXU accumulation; skipped for empty adjacency tiles
    # (their DMA is also skipped because the index_map clamps to the previous
    # block index).
    @pl.when(k < n_nz)
    def _accum():
        acc_ref[...] += jnp.dot(a_ref[...], xk_ref[...],
                                preferred_element_type=jnp.float32)

    @pl.when(k == nk - 1)
    def _finalize():
        s_in = sin_ref[...]
        t_in = tin_ref[...]
        # Previous block's BatchNorm affine, hoisted out of the k-loop via
        # linearity:  A @ (x*s + 1*t) = (A@x)*s + deg*t.
        agg = acc_ref[...] * s_in + deg_ref[...] * t_in
        xr = xr_ref[...].astype(jnp.float32) * s_in + t_in
        # Two dots against W_self / W_nbr (no concatenate copy).
        h = (jnp.dot(xr.astype(jnp.bfloat16), ws_ref[...],
                     preferred_element_type=jnp.float32)
             + jnp.dot(agg.astype(jnp.bfloat16), wn_ref[...],
                       preferred_element_type=jnp.float32)
             + b_ref[...])
        # PReLU (single shared alpha from SMEM); epilogue stays in f32.
        alpha = alpha_ref[0, 0]
        h = jnp.where(h > 0, h, alpha * h)
        # Zero padded rows so BatchNorm stats and mean pooling stay exact.
        row = i * tile_m + jax.lax.broadcasted_iota(jnp.int32, h.shape, 0)
        h = jnp.where(row < n_valid, h, 0.0)
        h_ref[...] = h.astype(h_ref.dtype)            # bf16 activation store
        # Per-tile BN partial sums, computed from the f32 value.
        stats_ref[...] = jnp.concatenate(
            [jnp.sum(h, axis=0, keepdims=True),
             jnp.sum(h * h, axis=0, keepdims=True),
             jnp.zeros((6, h.shape[1]), jnp.float32)], axis=0)


def gn_layer(x_bf16, adj_bf16, deg, scale_in, shift_in, cols, cnt,
             w_self, w_nbr, bias, alpha, *, n_valid, tile_m, tile_k):
    n_pad, c_in_pad = x_bf16.shape
    c_out_pad = w_self.shape[1]
    n_row_tiles = n_pad // tile_m
    n_k_tiles = n_pad // tile_k

    kernel = functools.partial(_gn_layer_kernel, n_valid=n_valid, tile_m=tile_m)

    grid_spec = pltpu.PrefetchScalarGridSpec(
        num_scalar_prefetch=2,
        grid=(n_row_tiles, n_k_tiles),
        in_specs=[
            pl.BlockSpec((tile_m, c_in_pad), lambda i, k, cols, cnt: (i, 0)),
            pl.BlockSpec((tile_k, c_in_pad),
                         lambda i, k, cols, cnt: (cols[i, k], 0)),
            pl.BlockSpec((tile_m, tile_k),
                         lambda i, k, cols, cnt: (i, cols[i, k])),
            pl.BlockSpec((tile_m, 1), lambda i, k, cols, cnt: (i, 0)),
            pl.BlockSpec((1, c_in_pad), lambda i, k, cols, cnt: (0, 0)),
            pl.BlockSpec((1, c_in_pad), lambda i, k, cols, cnt: (0, 0)),
            pl.BlockSpec((c_in_pad, c_out_pad), lambda i, k, cols, cnt: (0, 0)),
            pl.BlockSpec((c_in_pad, c_out_pad), lambda i, k, cols, cnt: (0, 0)),
            pl.BlockSpec((1, c_out_pad), lambda i, k, cols, cnt: (0, 0)),
            pl.BlockSpec((1, 1), lambda i, k, cols, cnt: (0, 0),
                         memory_space=pltpu.MemorySpace.SMEM),
        ],
        out_specs=[
            pl.BlockSpec((tile_m, c_out_pad), lambda i, k, cols, cnt: (i, 0)),
            pl.BlockSpec((8, c_out_pad), lambda i, k, cols, cnt: (i, 0)),
        ],
        scratch_shapes=[pltpu.VMEM((tile_m, c_in_pad), jnp.float32)],
    )
    return pl.pallas_call(
        kernel,
        grid_spec=grid_spec,
        out_shape=(
            jax.ShapeDtypeStruct((n_pad, c_out_pad), jnp.bfloat16),
            jax.ShapeDtypeStruct((n_row_tiles * 8, c_out_pad), jnp.float32),
        ),
        compiler_params=pltpu.CompilerParams(
            dimension_semantics=("parallel", "arbitrary"),
            vmem_limit_bytes=_VMEM_LIMIT),
    )(cols, cnt, x_bf16, x_bf16, adj_bf16, deg, scale_in, shift_in,
      w_self, w_nbr, bias, alpha)


# --------------------------------------------------------------------------
# Kernel 2: global mean pool (one-hot bf16 matmul streaming bf16 h) with the
#           last block's BatchNorm affine fused (mean-pool commutes with a
#           per-feature affine), followed by the MLP head.
# --------------------------------------------------------------------------
def _pool_head_kernel(p_ref, h_ref, invc_ref, s_ref, t_ref, w1_ref, b1_ref,
                      alpha_ref, w2_ref, b2_ref, o_ref, acc_ref):
    k = pl.program_id(0)
    nk = pl.num_programs(0)

    @pl.when(k == 0)
    def _init():
        acc_ref[...] = jnp.zeros_like(acc_ref)

    acc_ref[...] += jnp.dot(p_ref[...], h_ref[...],
                            preferred_element_type=jnp.float32)

    @pl.when(k == nk - 1)
    def _finalize():
        pooled = acc_ref[...] * invc_ref[...]          # exact 1/count in f32
        pooled = pooled * s_ref[...] + t_ref[...]      # last block's BatchNorm
        h1 = jnp.dot(pooled.astype(jnp.bfloat16), w1_ref[...],
                     preferred_element_type=jnp.float32) + b1_ref[...]
        a = alpha_ref[0, 0]
        h1 = jnp.where(h1 > 0, h1, a * h1)             # PReLU
        o_ref[...] = jnp.dot(h1.astype(jnp.bfloat16), w2_ref[...],
                             preferred_element_type=jnp.float32) + b2_ref[...]


def pool_head(onehot_bf16, h_bf16, inv_counts, scale, shift,
              w1, b1, alpha, w2, b2, *, tile_k):
    b_pad, n_pad = onehot_bf16.shape
    c_pad = h_bf16.shape[1]
    out_pad = w2.shape[1]
    return pl.pallas_call(
        _pool_head_kernel,
        grid=(n_pad // tile_k,),
        in_specs=[
            pl.BlockSpec((b_pad, tile_k), lambda k: (0, k)),
            pl.BlockSpec((tile_k, c_pad), lambda k: (k, 0)),
            pl.BlockSpec((b_pad, 1), lambda k: (0, 0)),
            pl.BlockSpec((1, c_pad), lambda k: (0, 0)),
            pl.BlockSpec((1, c_pad), lambda k: (0, 0)),
            pl.BlockSpec((c_pad, c_pad), lambda k: (0, 0)),
            pl.BlockSpec((1, c_pad), lambda k: (0, 0)),
            pl.BlockSpec((1, 1), lambda k: (0, 0),
                         memory_space=pltpu.MemorySpace.SMEM),
            pl.BlockSpec((c_pad, out_pad), lambda k: (0, 0)),
            pl.BlockSpec((1, out_pad), lambda k: (0, 0)),
        ],
        out_specs=pl.BlockSpec((b_pad, out_pad), lambda k: (0, 0)),
        out_shape=jax.ShapeDtypeStruct((b_pad, out_pad), jnp.float32),
        scratch_shapes=[pltpu.VMEM((b_pad, c_pad), jnp.float32)],
        compiler_params=pltpu.CompilerParams(
            dimension_semantics=("arbitrary",),
            vmem_limit_bytes=_VMEM_LIMIT),
    )(onehot_bf16, h_bf16, inv_counts, scale, shift, w1, b1, alpha, w2, b2)


# --------------------------------------------------------------------------
# Parameter init (weights zero-padded to lane multiples -> math stays exact).
# --------------------------------------------------------------------------
def init_params(key, in_channels, hidden_channels, out_channels, num_layers):
    cin_p = _round_up(in_channels, LANE)
    ch_p = _round_up(hidden_channels, LANE)
    cout_p = _round_up(out_channels, LANE)
    params = {"blocks": []}
    c_in, c_in_p = in_channels, cin_p
    for _ in range(num_layers):
        key, k1, k2 = jax.random.split(key, 3)
        w_self = jax.random.normal(k1, (c_in, hidden_channels), jnp.float32) * 0.1
        w_nbr = jax.random.normal(k2, (c_in, hidden_channels), jnp.float32) * 0.1
        params["blocks"].append({
            "w_self": _pad2(w_self, c_in_p, ch_p).astype(jnp.bfloat16),
            "w_nbr": _pad2(w_nbr, c_in_p, ch_p).astype(jnp.bfloat16),
            "bias": jnp.zeros((1, ch_p), jnp.float32),
            "alpha": jnp.full((1, 1), 0.25, jnp.float32),   # PReLU init
            "gamma": jnp.pad(jnp.ones((hidden_channels,), jnp.float32),
                             (0, ch_p - hidden_channels)),
            "beta": jnp.zeros((ch_p,), jnp.float32),
        })
        c_in, c_in_p = hidden_channels, ch_p
    key, k1, k2 = jax.random.split(key, 3)
    w1 = jax.random.normal(k1, (hidden_channels, hidden_channels), jnp.float32) * 0.1
    w2 = jax.random.normal(k2, (hidden_channels, out_channels), jnp.float32) * 0.1
    params["head"] = {
        "w1": _pad2(w1, ch_p, ch_p).astype(jnp.bfloat16),
        "b1": jnp.zeros((1, ch_p), jnp.float32),
        "alpha": jnp.full((1, 1), 0.25, jnp.float32),
        "w2": _pad2(w2, ch_p, cout_p).astype(jnp.bfloat16),
        "b2": jnp.zeros((1, cout_p), jnp.float32),
    }
    return params


# --------------------------------------------------------------------------
# Full GNN forward. Cheap glue in JAX (adjacency / degrees / sparse tile
# schedule / pooling matrix / tiny per-tile BN-stat reduce); all heavy math in
# the Pallas kernels.
# --------------------------------------------------------------------------
def gnn_forward(params, x, edge_index, batch, *, num_graphs, out_channels,
                tile_m=None, tile_k=None):
    n, c_in = x.shape
    auto_m, auto_k, _ = _choose_tiles(n)
    tile_m = tile_m or auto_m
    tile_k = tile_k or auto_k
    n_pad = _round_up(_round_up(n, LANE), max(tile_m, tile_k))
    cin_p = _round_up(c_in, LANE)

    src, dst = edge_index[0], edge_index[1]
    # Dense adjacency built directly in bf16 (integer edge counts <=256 exact;
    # avoids an extra N^2 f32->bf16 pass).  A[i,j] = #edges j -> i.
    adj = jnp.zeros((n_pad, n_pad), jnp.bfloat16).at[dst, src].add(1.0)
    # Row degrees so the input-BN affine can be hoisted out of the k-loop.
    deg = jnp.zeros((n_pad,), jnp.float32).at[dst].add(1.0).reshape(n_pad, 1)

    # Block-sparse schedule: per row tile, occupied adjacency column tiles
    # first (ascending), trailing entries clamped to the last occupied tile so
    # the pipeline skips their DMA; plus the occupied count.
    n_row_tiles = n_pad // tile_m
    n_k_tiles = n_pad // tile_k
    occ = jnp.zeros((n_row_tiles, n_k_tiles), jnp.bool_).at[
        dst // tile_m, src // tile_k].set(True)
    cnt = jnp.sum(occ, axis=1).astype(jnp.int32)
    order = jnp.argsort(jnp.where(occ, 0, 1), axis=1, stable=True).astype(jnp.int32)
    clamp = jnp.minimum(jnp.arange(n_k_tiles, dtype=jnp.int32)[None, :],
                        jnp.maximum(cnt - 1, 0)[:, None])
    cols = jnp.take_along_axis(order, clamp, axis=1).astype(jnp.int32)

    x_p = _pad2(x, n_pad, cin_p).astype(jnp.bfloat16)

    # Mean pool = exact one-hot (bf16) matmul + f32 1/count rescale in-kernel.
    b_pad = _round_up(max(num_graphs, 1), 8)
    onehot = (batch[None, :] ==
              jnp.arange(b_pad, dtype=batch.dtype)[:, None]).astype(jnp.float32)
    counts = jnp.sum(onehot, axis=1, keepdims=True)
    inv_counts = 1.0 / jnp.maximum(counts, 1.0)
    onehot = jnp.pad(onehot, ((0, 0), (0, n_pad - n))).astype(jnp.bfloat16)

    # Identity affine stands in for "previous block's BatchNorm" at block 0.
    scale = jnp.ones((1, cin_p), jnp.float32)
    shift = jnp.zeros((1, cin_p), jnp.float32)

    h = x_p
    n_f = jnp.float32(n)
    for blk in params["blocks"]:
        h, stats = gn_layer(h, adj, deg, scale, shift, cols, cnt,
                            blk["w_self"], blk["w_nbr"], blk["bias"],
                            blk["alpha"], n_valid=n,
                            tile_m=tile_m, tile_k=tile_k)
        # Cross-tile BatchNorm statistics (training-mode, biased variance).
        st = stats.reshape(-1, 8, stats.shape[-1])
        s1 = jnp.sum(st[:, 0, :], axis=0)
        s2 = jnp.sum(st[:, 1, :], axis=0)
        mean = s1 / n_f
        var = jnp.maximum(s2 / n_f - mean * mean, 0.0)
        rstd = jax.lax.rsqrt(var + _EPS)
        g = blk["gamma"] * rstd
        scale = g[None, :]
        shift = (blk["beta"] - mean * g)[None, :]

    hd = params["head"]
    out = pool_head(onehot, h, inv_counts, scale, shift, hd["w1"], hd["b1"],
                    hd["alpha"], hd["w2"], hd["b2"], tile_k=tile_k)
    return out[:num_graphs, :out_channels]


if __name__ == "__main__":
    # Small deterministic problem; tile_k=256 chosen so the multi-step
    # accumulation / block-sparse schedule paths are exercised (2x2 tile grid).
    N_NODES = 512
    N_EDGES = 2048
    IN_CH = 8
    HIDDEN = 32
    OUT_CH = 4
    NUM_LAYERS = 3
    NUM_GRAPHS = 4

    key = jax.random.PRNGKey(0)
    k_x, k_e, k_p = jax.random.split(key, 3)

    x = jax.random.normal(k_x, (N_NODES, IN_CH), jnp.float32)
    edge_index = jax.random.randint(k_e, (2, N_EDGES), 0, N_NODES, jnp.int32)
    # nodes evenly assigned to graphs (sorted batch vector, as in PyG)
    batch = jnp.repeat(jnp.arange(NUM_GRAPHS, dtype=jnp.int32),
                       N_NODES // NUM_GRAPHS)

    params = init_params(k_p, IN_CH, HIDDEN, OUT_CH, NUM_LAYERS)

    fwd = jax.jit(functools.partial(gnn_forward, num_graphs=NUM_GRAPHS,
                                    out_channels=OUT_CH,
                                    tile_m=256, tile_k=256))
    out = fwd(params, x, edge_index, batch)
    out = jax.block_until_ready(out)
    assert out.shape == (NUM_GRAPHS, OUT_CH)
    assert bool(jnp.all(jnp.isfinite(out)))
    print("KERNEL_OK")
</pallas_src>

<mosaic_0001>
module attributes {stable_mosaic.version = 11 : i64} {
  func.func private @main(%arg0: i32) attributes {dimension_semantics = [#tpu.dimension_semantics<core_parallel>], iteration_bounds = array<i64: 2>, tpu.core_type = #tpu.core_type<sc_scalar_subcore>, window_params = []} {
    return
  }
}

module attributes {stable_mosaic.version = 11 : i64} {
  func.func private @main(%arg0: i32) attributes {dimension_semantics = [#tpu.dimension_semantics<core_parallel>], iteration_bounds = array<i64: 2>, tpu.core_type = #tpu.core_type<sc_scalar_subcore>, window_params = []} {
    return
  }
}

module attributes {stable_mosaic.version = 11 : i64} {
  func.func @_gn_layer_kernel(%arg0: i32, %arg1: i32, %arg2: memref<2x2xi32, #tpu.memory_space<smem>>, %arg3: memref<2xi32, #tpu.memory_space<smem>>, %arg4: memref<256x128xbf16, #tpu.memory_space<vmem>>, %arg5: memref<256x128xbf16, #tpu.memory_space<vmem>>, %arg6: memref<256x256xbf16, #tpu.memory_space<vmem>>, %arg7: memref<256x1xf32, #tpu.memory_space<vmem>>, %arg8: memref<1x128xf32, #tpu.memory_space<vmem>>, %arg9: memref<1x128xf32, #tpu.memory_space<vmem>>, %arg10: memref<128x128xbf16, #tpu.memory_space<vmem>>, %arg11: memref<128x128xbf16, #tpu.memory_space<vmem>>, %arg12: memref<1x128xf32, #tpu.memory_space<vmem>>, %arg13: memref<1x1xf32, #tpu.memory_space<smem>>, %arg14: memref<256x128xbf16, #tpu.memory_space<vmem>>, %arg15: memref<8x128xf32, #tpu.memory_space<vmem>>, %arg16: memref<256x128xf32, #tpu.memory_space<vmem>>) attributes {dimension_semantics = [#tpu.dimension_semantics<parallel>, #tpu.dimension_semantics<arbitrary>], iteration_bounds = array<i64: 2, 2>, scalar_prefetch = 2 : i64, scratch_operands = 1 : i64, tpu.core_type = #tpu.core_type<tc>, window_params = [{transform_indices = @transform_0, window_bounds = array<i64: 256, 128>}, {transform_indices = @transform_1, window_bounds = array<i64: 256, 128>}, {transform_indices = @transform_2, window_bounds = array<i64: 256, 256>}, {transform_indices = @transform_3, window_bounds = array<i64: 256, 1>}, {pipeline_mode = #tpu.pipeline_mode<synchronous>, transform_indices = @transform_4, window_bounds = array<i64: 1, 128>}, {pipeline_mode = #tpu.pipeline_mode<synchronous>, transform_indices = @transform_5, window_bounds = array<i64: 1, 128>}, {pipeline_mode = #tpu.pipeline_mode<synchronous>, transform_indices = @transform_6, window_bounds = array<i64: 128, 128>}, {pipeline_mode = #tpu.pipeline_mode<synchronous>, transform_indices = @transform_7, window_bounds = array<i64: 128, 128>}, {pipeline_mode = #tpu.pipeline_mode<synchronous>, transform_indices = @transform_8, window_bounds = array<i64: 1, 128>}, {transform_indices = @transform_9, window_bounds = array<i64: 1, 1>}, {transform_indices = @transform_10, window_bounds = array<i64: 256, 128>}, {transform_indices = @transform_11, window_bounds = array<i64: 8, 128>}]} {
    %0 = arith.index_cast %arg0 : i32 to index
    %1 = memref.load %arg3[%0] : memref<2xi32, #tpu.memory_space<smem>>
    %c0_i32 = arith.constant 0 : i32
    %2 = arith.cmpi eq, %arg1, %c0_i32 : i32
    %3 = arith.extui %2 : i1 to i32
    %c0_i32_0 = arith.constant 0 : i32
    %4 = arith.cmpi ne, %3, %c0_i32_0 : i32
    scf.if %4 {
      %cst = arith.constant 0.000000e+00 : f32
      %11 = vector.broadcast %cst : f32 to vector<256x128xf32>
      %c0 = arith.constant 0 : index
      %c0_3 = arith.constant 0 : index
      %12 = vector.load %arg16[%c0, %c0_3] : memref<256x128xf32, #tpu.memory_space<vmem>>, vector<256x128xf32>
      tpu.vector_store %arg16[%c0, %c0_3], %11 {strides = array<i32>} : memref<256x128xf32, #tpu.memory_space<vmem>>, vector<256x128xf32>,
    } else {
    }
    %5 = arith.cmpi slt, %arg1, %1 : i32
    %6 = arith.extui %5 : i1 to i32
    %c0_i32_1 = arith.constant 0 : i32
    %7 = arith.cmpi ne, %6, %c0_i32_1 : i32
    scf.if %7 {
      %c0 = arith.constant 0 : index
      %c0_3 = arith.constant 0 : index
      %11 = vector.load %arg16[%c0, %c0_3] : memref<256x128xf32, #tpu.memory_space<vmem>>, vector<256x128xf32>
      %c0_4 = arith.constant 0 : index
      %c0_5 = arith.constant 0 : index
      %12 = vector.load %arg6[%c0_4, %c0_5] : memref<256x256xbf16, #tpu.memory_space<vmem>>, vector<256x256xbf16>
      %c0_6 = arith.constant 0 : index
      %c0_7 = arith.constant 0 : index
      %13 = vector.load %arg5[%c0_6, %c0_7] : memref<256x128xbf16, #tpu.memory_space<vmem>>, vector<256x128xbf16>
      %cst = arith.constant dense<0.000000e+00> : vector<256x128xf32>
      %14 = tpu.matmul %12, %13, %cst {dimension_numbers = #tpu.dot_dimension_numbers<[1], [0], [0], [1], [0, 0, 1, 1], [], []>} : vector<256x256xbf16>, vector<256x128xbf16>, vector<256x128xf32> -> vector<256x128xf32>
      %15 = arith.addf %11, %14 : vector<256x128xf32>
      %c0_8 = arith.constant 0 : index
      %c0_9 = arith.constant 0 : index
      %16 = vector.load %arg16[%c0_8, %c0_9] : memref<256x128xf32, #tpu.memory_space<vmem>>, vector<256x128xf32>
      tpu.vector_store %arg16[%c0_8, %c0_9], %15 {strides = array<i32>} : memref<256x128xf32, #tpu.memory_space<vmem>>, vector<256x128xf32>,
    } else {
    }
    %c1_i32 = arith.constant 1 : i32
    %8 = arith.cmpi eq, %arg1, %c1_i32 : i32
    %9 = arith.extui %8 : i1 to i32
    %c0_i32_2 = arith.constant 0 : i32
    %10 = arith.cmpi ne, %9, %c0_i32_2 : i32
    scf.if %10 {
      %c0 = arith.constant 0 : index
      %c0_3 = arith.constant 0 : index
      %11 = vector.load %arg8[%c0, %c0_3] : memref<1x128xf32, #tpu.memory_space<vmem>>, vector<1x128xf32>
      %c0_4 = arith.constant 0 : index
      %c0_5 = arith.constant 0 : index
      %12 = vector.load %arg9[%c0_4, %c0_5] : memref<1x128xf32, #tpu.memory_space<vmem>>, vector<1x128xf32>
      %c0_6 = arith.constant 0 : index
      %c0_7 = arith.constant 0 : index
      %13 = vector.load %arg16[%c0_6, %c0_7] : memref<256x128xf32, #tpu.memory_space<vmem>>, vector<256x128xf32>
      %14 = vector.broadcast %11 : vector<1x128xf32> to vector<256x128xf32>
      %15 = arith.mulf %13, %14 : vector<256x128xf32>
      %c0_8 = arith.constant 0 : index
      %c0_9 = arith.constant 0 : index
      %16 = vector.load %arg7[%c0_8, %c0_9] : memref<256x1xf32, #tpu.memory_space<vmem>>, vector<256x1xf32>
      %17 = vector.broadcast %16 : vector<256x1xf32> to vector<256x128xf32>
      %18 = vector.broadcast %12 : vector<1x128xf32> to vector<256x128xf32>
      %19 = arith.mulf %17, %18 : vector<256x128xf32>
      %20 = arith.addf %15, %19 : vector<256x128xf32>
      %c0_10 = arith.constant 0 : index
      %c0_11 = arith.constant 0 : index
      %21 = vector.load %arg4[%c0_10, %c0_11] : memref<256x128xbf16, #tpu.memory_space<vmem>>, vector<256x128xbf16>
      %22 = arith.extf %21 : vector<256x128xbf16> to vector<256x128xf32>
      %23 = vector.broadcast %11 : vector<1x128xf32> to vector<256x128xf32>
      %24 = arith.mulf %22, %23 : vector<256x128xf32>
      %25 = vector.broadcast %12 : vector<1x128xf32> to vector<256x128xf32>
      %26 = arith.addf %24, %25 : vector<256x128xf32>
      %27 = arith.truncf %26 : vector<256x128xf32> to vector<256x128xbf16>
      %c0_12 = arith.constant 0 : index
      %c0_13 = arith.constant 0 : index
      %28 = vector.load %arg10[%c0_12, %c0_13] : memref<128x128xbf16, #tpu.memory_space<vmem>>, vector<128x128xbf16>
      %cst = arith.constant dense<0.000000e+00> : vector<256x128xf32>
      %29 = tpu.matmul %27, %28, %cst {dimension_numbers = #tpu.dot_dimension_numbers<[1], [0], [0], [1], [0, 0, 1, 1], [], []>} : vector<256x128xbf16>, vector<128x128xbf16>, vector<256x128xf32> -> vector<256x128xf32>
      %30 = arith.truncf %20 : vector<256x128xf32> to vector<256x128xbf16>
      %c0_14 = arith.constant 0 : index
      %c0_15 = arith.constant 0 : index
      %31 = vector.load %arg11[%c0_14, %c0_15] : memref<128x128xbf16, #tpu.memory_space<vmem>>, vector<128x128xbf16>
      %cst_16 = arith.constant dense<0.000000e+00> : vector<256x128xf32>
      %32 = tpu.matmul %30, %31, %cst_16 {dimension_numbers = #tpu.dot_dimension_numbers<[1], [0], [0], [1], [0, 0, 1, 1], [], []>} : vector<256x128xbf16>, vector<128x128xbf16>, vector<256x128xf32> -> vector<256x128xf32>
      %33 = arith.addf %29, %32 : vector<256x128xf32>
      %c0_17 = arith.constant 0 : index
      %c0_18 = arith.constant 0 : index
      %34 = vector.load %arg12[%c0_17, %c0_18] : memref<1x128xf32, #tpu.memory_space<vmem>>, vector<1x128xf32>
      %35 = vector.broadcast %34 : vector<1x128xf32> to vector<256x128xf32>
      %36 = arith.addf %33, %35 : vector<256x128xf32>
      %c0_19 = arith.constant 0 : index
      %c0_20 = arith.constant 0 : index
      %37 = memref.load %arg13[%c0_19, %c0_20] : memref<1x1xf32, #tpu.memory_space<smem>>
      %cst_21 = arith.constant 0.000000e+00 : f32
      %38 = vector.broadcast %cst_21 : f32 to vector<256x128xf32>
      %39 = arith.cmpf ogt, %36, %38 : vector<256x128xf32>
      %40 = vector.broadcast %37 : f32 to vector<256x128xf32>
      %41 = arith.mulf %40, %36 : vector<256x128xf32>
      %42 = arith.select %39, %36, %41 : vector<256x128xi1>, vector<256x128xf32>
      %c256_i32 = arith.constant 256 : i32
      %43 = arith.muli %arg0, %c256_i32 : i32
      %44 = tpu.iota {dimensions = array<i32: 0>} : vector<256x128xi32>
      %45 = vector.broadcast %43 : i32 to vector<256x128xi32>
      %46 = arith.addi %45, %44 : vector<256x128xi32>
      %c512_i32 = arith.constant 512 : i32
      %47 = vector.broadcast %c512_i32 : i32 to vector<256x128xi32>
      %48 = arith.cmpi slt, %46, %47 : vector<256x128xi32>
      %cst_22 = arith.constant 0.000000e+00 : f32
      %49 = vector.broadcast %cst_22 : f32 to vector<256x128xf32>
      %50 = arith.select %48, %42, %49 : vector<256x128xi1>, vector<256x128xf32>
      %51 = arith.truncf %50 : vector<256x128xf32> to vector<256x128xbf16>
      %c0_23 = arith.constant 0 : index
      %c0_24 = arith.constant 0 : index
      %52 = vector.load %arg14[%c0_23, %c0_24] : memref<256x128xbf16, #tpu.memory_space<vmem>>, vector<256x128xbf16>
      tpu.vector_store %arg14[%c0_23, %c0_24], %51 {strides = array<i32>} : memref<256x128xbf16, #tpu.memory_space<vmem>>, vector<256x128xbf16>,
      %cst_25 = arith.constant dense<0.000000e+00> : vector<128xf32>
      %53 = vector.multi_reduction <add>, %50, %cst_25 [0] : vector<256x128xf32> to vector<128xf32>
      %54 = vector.shape_cast %53 : vector<128xf32> to vector<1x128xf32>
      %55 = arith.mulf %50, %50 : vector<256x128xf32>
      %cst_26 = arith.constant dense<0.000000e+00> : vector<128xf32>
      %56 = vector.multi_reduction <add>, %55, %cst_26 [0] : vector<256x128xf32> to vector<128xf32>
      %57 = vector.shape_cast %56 : vector<128xf32> to vector<1x128xf32>
      %cst_27 = arith.constant 0.000000e+00 : f32
      %58 = vector.broadcast %cst_27 : f32 to vector<6x128xf32>
      %59 = tpu.concatenate %54, %57, %58 in 0 : vector<1x128xf32>, vector<1x128xf32>, vector<6x128xf32> -> vector<8x128xf32>
      %c0_28 = arith.constant 0 : index
      %c0_29 = arith.constant 0 : index
      %60 = vector.load %arg15[%c0_28, %c0_29] : memref<8x128xf32, #tpu.memory_space<vmem>>, vector<8x128xf32>
      tpu.vector_store %arg15[%c0_28, %c0_29], %59 {strides = array<i32>} : memref<8x128xf32, #tpu.memory_space<vmem>>, vector<8x128xf32>,
    } else {
    }
    return
  }
  func.func @transform_0(%arg0: i32, %arg1: i32, %arg2: memref<2x2xi32, #tpu.memory_space<smem>>, %arg3: memref<2xi32, #tpu.memory_space<smem>>) -> (i32, i32) {
    %c0_i32 = arith.constant 0 : i32
    %c0_i32_0 = arith.constant 0 : i32
    return %arg0, %c0_i32 : i32, i32
  }
  func.func @transform_1(%arg0: i32, %arg1: i32, %arg2: memref<2x2xi32, #tpu.memory_space<smem>>, %arg3: memref<2xi32, #tpu.memory_space<smem>>) -> (i32, i32) {
    %0 = arith.index_cast %arg0 : i32 to index
    %1 = arith.index_cast %arg1 : i32 to index
    %2 = memref.load %arg2[%0, %1] : memref<2x2xi32, #tpu.memory_space<smem>>
    %c0_i32 = arith.constant 0 : i32
    %c0_i32_0 = arith.constant 0 : i32
    return %2, %c0_i32 : i32, i32
  }
  func.func @transform_2(%arg0: i32, %arg1: i32, %arg2: memref<2x2xi32, #tpu.memory_space<smem>>, %arg3: memref<2xi32, #tpu.memory_space<smem>>) -> (i32, i32) {
    %0 = arith.index_cast %arg0 : i32 to index
    %1 = arith.index_cast %arg1 : i32 to index
    %2 = memref.load %arg2[%0, %1] : memref<2x2xi32, #tpu.memory_space<smem>>
    %c0_i32 = arith.constant 0 : i32
    return %arg0, %2 : i32, i32
  }
  func.func @transform_3(%arg0: i32, %arg1: i32, %arg2: memref<2x2xi32, #tpu.memory_space<smem>>, %arg3: memref<2xi32, #tpu.memory_space<smem>>) -> (i32, i32) {
    %c0_i32 = arith.constant 0 : i32
    %c0_i32_0 = arith.constant 0 : i32
    return %arg0, %c0_i32 : i32, i32
  }
  func.func @transform_4(%arg0: i32, %arg1: i32, %arg2: memref<2x2xi32, #tpu.memory_space<smem>>, %arg3: memref<2xi32, #tpu.memory_space<smem>>) -> (i32, i32) {
    %c0_i32 = arith.constant 0 : i32
    %c0_i32_0 = arith.constant 0 : i32
    %c0_i32_1 = arith.constant 0 : i32
    return %c0_i32, %c0_i32_0 : i32, i32
  }
  func.func @transform_5(%arg0: i32, %arg1: i32, %arg2: memref<2x2xi32, #tpu.memory_space<smem>>, %arg3: memref<2xi32, #tpu.memory_space<smem>>) -> (i32, i32) {
    %c0_i32 = arith.constant 0 : i32
    %c0_i32_0 = arith.constant 0 : i32
    %c0_i32_1 = arith.constant 0 : i32
    return %c0_i32, %c0_i32_0 : i32, i32
  }
  func.func @transform_6(%arg0: i32, %arg1: i32, %arg2: memref<2x2xi32, #tpu.memory_space<smem>>, %arg3: memref<2xi32, #tpu.memory_space<smem>>) -> (i32, i32) {
    %c0_i32 = arith.constant 0 : i32
    %c0_i32_0 = arith.constant 0 : i32
    %c0_i32_1 = arith.constant 0 : i32
    return %c0_i32, %c0_i32_0 : i32, i32
  }
  func.func @transform_7(%arg0: i32, %arg1: i32, %arg2: memref<2x2xi32, #tpu.memory_space<smem>>, %arg3: memref<2xi32, #tpu.memory_space<smem>>) -> (i32, i32) {
    %c0_i32 = arith.constant 0 : i32
    %c0_i32_0 = arith.constant 0 : i32
    %c0_i32_1 = arith.constant 0 : i32
    return %c0_i32, %c0_i32_0 : i32, i32
  }
  func.func @transform_8(%arg0: i32, %arg1: i32, %arg2: memref<2x2xi32, #tpu.memory_space<smem>>, %arg3: memref<2xi32, #tpu.memory_space<smem>>) -> (i32, i32) {
    %c0_i32 = arith.constant 0 : i32
    %c0_i32_0 = arith.constant 0 : i32
    %c0_i32_1 = arith.constant 0 : i32
    return %c0_i32, %c0_i32_0 : i32, i32
  }
  func.func @transform_9(%arg0: i32, %arg1: i32, %arg2: memref<2x2xi32, #tpu.memory_space<smem>>, %arg3: memref<2xi32, #tpu.memory_space<smem>>) -> (i32, i32) {
    %c0_i32 = arith.constant 0 : i32
    %c0_i32_0 = arith.constant 0 : i32
    %c0_i32_1 = arith.constant 0 : i32
    return %c0_i32, %c0_i32_0 : i32, i32
  }
  func.func @transform_10(%arg0: i32, %arg1: i32, %arg2: memref<2x2xi32, #tpu.memory_space<smem>>, %arg3: memref<2xi32, #tpu.memory_space<smem>>) -> (i32, i32) {
    %c0_i32 = arith.constant 0 : i32
    %c0_i32_0 = arith.constant 0 : i32
    return %arg0, %c0_i32 : i32, i32
  }
  func.func @transform_11(%arg0: i32, %arg1: i32, %arg2: memref<2x2xi32, #tpu.memory_space<smem>>, %arg3: memref<2xi32, #tpu.memory_space<smem>>) -> (i32, i32) {
    %c0_i32 = arith.constant 0 : i32
    %c0_i32_0 = arith.constant 0 : i32
    return %arg0, %c0_i32 : i32, i32
  }
}

module attributes {stable_mosaic.version = 11 : i64} {
  func.func @_pool_head_kernel(%arg0: i32, %arg1: memref<8x256xbf16, #tpu.memory_space<vmem>>, %arg2: memref<256x128xbf16, #tpu.memory_space<vmem>>, %arg3: memref<8x1xf32, #tpu.memory_space<vmem>>, %arg4: memref<1x128xf32, #tpu.memory_space<vmem>>, %arg5: memref<1x128xf32, #tpu.memory_space<vmem>>, %arg6: memref<128x128xbf16, #tpu.memory_space<vmem>>, %arg7: memref<1x128xf32, #tpu.memory_space<vmem>>, %arg8: memref<1x1xf32, #tpu.memory_space<smem>>, %arg9: memref<128x128xbf16, #tpu.memory_space<vmem>>, %arg10: memref<1x128xf32, #tpu.memory_space<vmem>>, %arg11: memref<8x128xf32, #tpu.memory_space<vmem>>, %arg12: memref<8x128xf32, #tpu.memory_space<vmem>>) attributes {dimension_semantics = [#tpu.dimension_semantics<arbitrary>], iteration_bounds = array<i64: 2>, scalar_prefetch = 0 : i64, scratch_operands = 1 : i64, tpu.core_type = #tpu.core_type<tc>, window_params = [{transform_indices = @transform_0, window_bounds = array<i64: 8, 256>}, {transform_indices = @transform_1, window_bounds = array<i64: 256, 128>}, {pipeline_mode = #tpu.pipeline_mode<synchronous>, transform_indices = @transform_2, window_bounds = array<i64: 8, 1>}, {pipeline_mode = #tpu.pipeline_mode<synchronous>, transform_indices = @transform_3, window_bounds = array<i64: 1, 128>}, {pipeline_mode = #tpu.pipeline_mode<synchronous>, transform_indices = @transform_4, window_bounds = array<i64: 1, 128>}, {pipeline_mode = #tpu.pipeline_mode<synchronous>, transform_indices = @transform_5, window_bounds = array<i64: 128, 128>}, {pipeline_mode = #tpu.pipeline_mode<synchronous>, transform_indices = @transform_6, window_bounds = array<i64: 1, 128>}, {transform_indices = @transform_7, window_bounds = array<i64: 1, 1>}, {pipeline_mode = #tpu.pipeline_mode<synchronous>, transform_indices = @transform_8, window_bounds = array<i64: 128, 128>}, {pipeline_mode = #tpu.pipeline_mode<synchronous>, transform_indices = @transform_9, window_bounds = array<i64: 1, 128>}, {pipeline_mode = #tpu.pipeline_mode<synchronous>, transform_indices = @transform_10, window_bounds = array<i64: 8, 128>}]} {
    %c0_i32 = arith.constant 0 : i32
    %0 = arith.cmpi eq, %arg0, %c0_i32 : i32
    %1 = arith.extui %0 : i1 to i32
    %c0_i32_0 = arith.constant 0 : i32
    %2 = arith.cmpi ne, %1, %c0_i32_0 : i32
    scf.if %2 {
      %cst_9 = arith.constant 0.000000e+00 : f32
      %12 = vector.broadcast %cst_9 : f32 to vector<8x128xf32>
      %c0_10 = arith.constant 0 : index
      %c0_11 = arith.constant 0 : index
      %13 = vector.load %arg12[%c0_10, %c0_11] : memref<8x128xf32, #tpu.memory_space<vmem>>, vector<8x128xf32>
      tpu.vector_store %arg12[%c0_10, %c0_11], %12 {strides = array<i32>} : memref<8x128xf32, #tpu.memory_space<vmem>>, vector<8x128xf32>,
    } else {
    }
    %c0 = arith.constant 0 : index
    %c0_1 = arith.constant 0 : index
    %3 = vector.load %arg12[%c0, %c0_1] : memref<8x128xf32, #tpu.memory_space<vmem>>, vector<8x128xf32>
    %c0_2 = arith.constant 0 : index
    %c0_3 = arith.constant 0 : index
    %4 = vector.load %arg1[%c0_2, %c0_3] : memref<8x256xbf16, #tpu.memory_space<vmem>>, vector<8x256xbf16>
    %c0_4 = arith.constant 0 : index
    %c0_5 = arith.constant 0 : index
    %5 = vector.load %arg2[%c0_4, %c0_5] : memref<256x128xbf16, #tpu.memory_space<vmem>>, vector<256x128xbf16>
    %cst = arith.constant dense<0.000000e+00> : vector<8x128xf32>
    %6 = tpu.matmul %4, %5, %cst {dimension_numbers = #tpu.dot_dimension_numbers<[1], [0], [0], [1], [0, 0, 1, 1], [], []>} : vector<8x256xbf16>, vector<256x128xbf16>, vector<8x128xf32> -> vector<8x128xf32>
    %7 = arith.addf %3, %6 : vector<8x128xf32>
    %c0_6 = arith.constant 0 : index
    %c0_7 = arith.constant 0 : index
    %8 = vector.load %arg12[%c0_6, %c0_7] : memref<8x128xf32, #tpu.memory_space<vmem>>, vector<8x128xf32>
    tpu.vector_store %arg12[%c0_6, %c0_7], %7 {strides = array<i32>} : memref<8x128xf32, #tpu.memory_space<vmem>>, vector<8x128xf32>,
    %c1_i32 = arith.constant 1 : i32
    %9 = arith.cmpi eq, %arg0, %c1_i32 : i32
    %10 = arith.extui %9 : i1 to i32
    %c0_i32_8 = arith.constant 0 : i32
    %11 = arith.cmpi ne, %10, %c0_i32_8 : i32
    scf.if %11 {
      %c0_9 = arith.constant 0 : index
      %c0_10 = arith.constant 0 : index
      %12 = vector.load %arg12[%c0_9, %c0_10] : memref<8x128xf32, #tpu.memory_space<vmem>>, vector<8x128xf32>
      %c0_11 = arith.constant 0 : index
      %c0_12 = arith.constant 0 : index
      %13 = vector.load %arg3[%c0_11, %c0_12] : memref<8x1xf32, #tpu.memory_space<vmem>>, vector<8x1xf32>
      %14 = vector.broadcast %13 : vector<8x1xf32> to vector<8x128xf32>
      %15 = arith.mulf %12, %14 : vector<8x128xf32>
      %c0_13 = arith.constant 0 : index
      %c0_14 = arith.constant 0 : index
      %16 = vector.load %arg4[%c0_13, %c0_14] : memref<1x128xf32, #tpu.memory_space<vmem>>, vector<1x128xf32>
      %17 = vector.broadcast %16 : vector<1x128xf32> to vector<8x128xf32>
      %18 = arith.mulf %15, %17 : vector<8x128xf32>
      %c0_15 = arith.constant 0 : index
      %c0_16 = arith.constant 0 : index
      %19 = vector.load %arg5[%c0_15, %c0_16] : memref<1x128xf32, #tpu.memory_space<vmem>>, vector<1x128xf32>
      %20 = vector.broadcast %19 : vector<1x128xf32> to vector<8x128xf32>
      %21 = arith.addf %18, %20 : vector<8x128xf32>
      %22 = arith.truncf %21 : vector<8x128xf32> to vector<8x128xbf16>
      %c0_17 = arith.constant 0 : index
      %c0_18 = arith.constant 0 : index
      %23 = vector.load %arg6[%c0_17, %c0_18] : memref<128x128xbf16, #tpu.memory_space<vmem>>, vector<128x128xbf16>
      %cst_19 = arith.constant dense<0.000000e+00> : vector<8x128xf32>
      %24 = tpu.matmul %22, %23, %cst_19 {dimension_numbers = #tpu.dot_dimension_numbers<[1], [0], [0], [1], [0, 0, 1, 1], [], []>} : vector<8x128xbf16>, vector<128x128xbf16>, vector<8x128xf32> -> vector<8x128xf32>
      %c0_20 = arith.constant 0 : index
      %c0_21 = arith.constant 0 : index
      %25 = vector.load %arg7[%c0_20, %c0_21] : memref<1x128xf32, #tpu.memory_space<vmem>>, vector<1x128xf32>
      %26 = vector.broadcast %25 : vector<1x128xf32> to vector<8x128xf32>
      %27 = arith.addf %24, %26 : vector<8x128xf32>
      %c0_22 = arith.constant 0 : index
      %c0_23 = arith.constant 0 : index
      %28 = memref.load %arg8[%c0_22, %c0_23] : memref<1x1xf32, #tpu.memory_space<smem>>
      %cst_24 = arith.constant 0.000000e+00 : f32
      %29 = vector.broadcast %cst_24 : f32 to vector<8x128xf32>
      %30 = arith.cmpf ogt, %27, %29 : vector<8x128xf32>
      %31 = vector.broadcast %28 : f32 to vector<8x128xf32>
      %32 = arith.mulf %31, %27 : vector<8x128xf32>
      %33 = arith.select %30, %27, %32 : vector<8x128xi1>, vector<8x128xf32>
      %34 = arith.truncf %33 : vector<8x128xf32> to vector<8x128xbf16>
      %c0_25 = arith.constant 0 : index
      %c0_26 = arith.constant 0 : index
      %35 = vector.load %arg9[%c0_25, %c0_26] : memref<128x128xbf16, #tpu.memory_space<vmem>>, vector<128x128xbf16>
      %cst_27 = arith.constant dense<0.000000e+00> : vector<8x128xf32>
      %36 = tpu.matmul %34, %35, %cst_27 {dimension_numbers = #tpu.dot_dimension_numbers<[1], [0], [0], [1], [0, 0, 1, 1], [], []>} : vector<8x128xbf16>, vector<128x128xbf16>, vector<8x128xf32> -> vector<8x128xf32>
      %c0_28 = arith.constant 0 : index
      %c0_29 = arith.constant 0 : index
      %37 = vector.load %arg10[%c0_28, %c0_29] : memref<1x128xf32, #tpu.memory_space<vmem>>, vector<1x128xf32>
      %38 = vector.broadcast %37 : vector<1x128xf32> to vector<8x128xf32>
      %39 = arith.addf %36, %38 : vector<8x128xf32>
      %c0_30 = arith.constant 0 : index
      %c0_31 = arith.constant 0 : index
      %40 = vector.load %arg11[%c0_30, %c0_31] : memref<8x128xf32, #tpu.memory_space<vmem>>, vector<8x128xf32>
      tpu.vector_store %arg11[%c0_30, %c0_31], %39 {strides = array<i32>} : memref<8x128xf32, #tpu.memory_space<vmem>>, vector<8x128xf32>,
    } else {
    }
    return
  }
  func.func @transform_0(%arg0: i32) -> (i32, i32) {
    %c0_i32 = arith.constant 0 : i32
    %c0_i32_0 = arith.constant 0 : i32
    return %c0_i32, %arg0 : i32, i32
  }
  func.func @transform_1(%arg0: i32) -> (i32, i32) {
    %c0_i32 = arith.constant 0 : i32
    %c0_i32_0 = arith.constant 0 : i32
    return %arg0, %c0_i32 : i32, i32
  }
  func.func @transform_2(%arg0: i32) -> (i32, i32) {
    %c0_i32 = arith.constant 0 : i32
    %c0_i32_0 = arith.constant 0 : i32
    %c0_i32_1 = arith.constant 0 : i32
    return %c0_i32, %c0_i32_0 : i32, i32
  }
  func.func @transform_3(%arg0: i32) -> (i32, i32) {
    %c0_i32 = arith.constant 0 : i32
    %c0_i32_0 = arith.constant 0 : i32
    %c0_i32_1 = arith.constant 0 : i32
    return %c0_i32, %c0_i32_0 : i32, i32
  }
  func.func @transform_4(%arg0: i32) -> (i32, i32) {
    %c0_i32 = arith.constant 0 : i32
    %c0_i32_0 = arith.constant 0 : i32
    %c0_i32_1 = arith.constant 0 : i32
    return %c0_i32, %c0_i32_0 : i32, i32
  }
  func.func @transform_5(%arg0: i32) -> (i32, i32) {
    %c0_i32 = arith.constant 0 : i32
    %c0_i32_0 = arith.constant 0 : i32
    %c0_i32_1 = arith.constant 0 : i32
    return %c0_i32, %c0_i32_0 : i32, i32
  }
  func.func @transform_6(%arg0: i32) -> (i32, i32) {
    %c0_i32 = arith.constant 0 : i32
    %c0_i32_0 = arith.constant 0 : i32
    %c0_i32_1 = arith.constant 0 : i32
    return %c0_i32, %c0_i32_0 : i32, i32
  }
  func.func @transform_7(%arg0: i32) -> (i32, i32) {
    %c0_i32 = arith.constant 0 : i32
    %c0_i32_0 = arith.constant 0 : i32
    %c0_i32_1 = arith.constant 0 : i32
    return %c0_i32, %c0_i32_0 : i32, i32
  }
  func.func @transform_8(%arg0: i32) -> (i32, i32) {
    %c0_i32 = arith.constant 0 : i32
    %c0_i32_0 = arith.constant 0 : i32
    %c0_i32_1 = arith.constant 0 : i32
    return %c0_i32, %c0_i32_0 : i32, i32
  }
  func.func @transform_9(%arg0: i32) -> (i32, i32) {
    %c0_i32 = arith.constant 0 : i32
    %c0_i32_0 = arith.constant 0 : i32
    %c0_i32_1 = arith.constant 0 : i32
    return %c0_i32, %c0_i32_0 : i32, i32
  }
  func.func @transform_10(%arg0: i32) -> (i32, i32) {
    %c0_i32 = arith.constant 0 : i32
    %c0_i32_0 = arith.constant 0 : i32
    %c0_i32_1 = arith.constant 0 : i32
    return %c0_i32, %c0_i32_0 : i32, i32
  }
}

</mosaic_0001>

<bundles_post_ra>
// kernel: gnn_forward.4
= control target key start
LH: loop header
LB: loop body
LE: loop exit
PB: predicated region body
PF: predicated region fallthrough
CT: control target
= control target key end

     0   :  { %s4838_s0 = inlined_call_operand.vmem [shape: s32[2,2], index: 0, kind: input, shape index: {}]   ;;  %s4839_s2 = inlined_call_operand.vmem [shape: bf16[512,128], index: 2, kind: input, shape index: {}, may-alias: {2,3}]   ;;  %s4840_s3 = inlined_call_operand.vmem [shape: bf16[512,128], index: 3, kind: input, shape index: {}, may-alias: {2,3}]   ;;  %s4841_s4 = inlined_call_operand.vmem [shape: bf16[512,512], index: 4, kind: input, shape index: {}]   ;;  %s4842_s5 = inlined_call_operand.vmem [shape: f32[512,1], index: 5, kind: input, shape index: {}]   ;;  %s4843_s6 = inlined_call_operand.vmem [shape: f32[1,128], index: 6, kind: input, shape index: {}]   ;;  %s4844_s7 = inlined_call_operand.vmem [shape: f32[1,128], index: 7, kind: input, shape index: {}]   ;;  %s4845_s8 = inlined_call_operand.vmem [shape: bf16[128,128], index: 8, kind: input, shape index: {}]   ;;  %s4846_s9 = inlined_call_operand.vmem [shape: bf16[128,128], index: 9, kind: input, shape index: {}]   ;;  %s4847_s10 = inlined_call_operand.vmem [shape: f32[1,128], index: 10, kind: input, shape index: {}]   ;;  %s4848_s12 = inlined_call_operand.vmem [shape: bf16[512,128], index: 12, kind: output, shape index: {0}]   ;;  %s4849_s13 = inlined_call_operand.vmem [shape: f32[16,128], index: 13, kind: output, shape index: {1}]   ;;  %s4850_s1 = inlined_call_operand.vmem [shape: s32[2], index: 1, kind: input, shape index: {}]   ;;  %s4851_s11 = inlined_call_operand.<no memory space> [shape: f32[1,1], index: 11, kind: input, shape index: {}]  }
   0x1   :  { %4862 = sst [smem:[#allocation31_spill]] %s4841_s4  ;;  %s19_s27 = sshll.u32 %s4838_s0, 4  ;;  %s20_s27 = int_to_ptr.vmem [resolvable:$true] %s19_s27 }
   0x2   :  { %4863 = sst [smem:[#allocation32_spill]] %s4844_s7  ;;  %s23_s30 = sshll.u32 %s4850_s1, 4  ;;  %s24_s30 = int_to_ptr.vmem [resolvable:$true] %s23_s30 }
   0x3   :  { %4864 = sst [smem:[#allocation33_spill]] %s4847_s10  ;;  %s3778_s14 = scalar_lea.vmem %s20_s27, 32 }
   0x4   :  { %p3779_p0 = scmp.ne.s32.totalorder %s20_s27, %s3778_s14  ;;  %p3783_p1 = scmp.lt.s32.totalorder %s20_s27, %s20_s27 }
   0x5   :  { %p3784_p2 = scmp.lt.s32.totalorder %s3778_s14, %s3778_s14 }
   0x7   :  { %p3785_p3 = por %p3784_p2, %p3783_p1 }
   0x9   :  { %p3786_p4 = pnand %p3785_p3, %p3779_p0 }
   0xb   :  { %3789 = shalt.err (!%p3786_p4)  }
   0xc   :  { %s3860_s15 = smov [#allocation4]   ;;  %s3790_s16 = scalar_lea.vmem %s24_s30, 16 }
   0xd   :  { %22 = dma.vmem_to_smem %s20_s27, 32, %s3860_s15, [#allocation3] }
   0xe   :  { %p3791_p5 = scmp.ne.s32.totalorder %s24_s30, %s3790_s16  ;;  %p3795_p6 = scmp.lt.s32.totalorder %s24_s30, %s24_s30 }
   0xf   :  { %p3796_p7 = scmp.lt.s32.totalorder %s3790_s16, %s3790_s16 }
  0x11   :  { %p3797_p8 = por %p3796_p7, %p3795_p6 }
  0x13   :  { %p3798_p9 = pnand %p3797_p8, %p3791_p5 }
  0x15   :  { %3801 = shalt.err (!%p3798_p9)  }
  0x16   :  { %s3861_s0 = smov [#allocation5]   ;;  %27 = sst [smem:[#allocation6]] %s4851_s11 }
  0x17   :  { %26 = dma.vmem_to_smem %s24_s30, 16, %s3861_s0, [#allocation3] }
  0x18   :  { %3830 = dma.done.wait [#allocation3], 48 }
  0x19   :  { %3831 = vsyncadd [#allocation3], 4294967248 }
  0x1a   :  { %29 = sfence }
  0x1b   :  { %s3943_s18 = smov 0   ;;  %s3945_s19 = smov 0  }
  0x1c   :  { %s3947_s20 = smov 0   ;;  %s3949_s21 = smov 0  }
  0x1d   :  { %s3951_s22 = smov 0   ;;  %s3953_s23 = smov 0  }
  0x1e   :  { %s3955_s24 = smov 0  }
  0x1f LB: > { %4865 = sst [smem:[#allocation9_spill]] %s3850_s22  ;;  %s44_s11 = sadd.s32 1, %s3850_s22  ;;  %s3858_s24 = sphi %s3955_s24, %s35_s24   ;;  %s3854_s23 = sphi %s3953_s23, %s4911_s23   ;;  %s3850_s22 = sphi %s3951_s22, %s4910_s22   ;;  %s3846_s21 = sphi %s3949_s21, %s4909_s21   ;;  %s3842_s20 = sphi %s3947_s20, %s4908_s20   ;;  %s3838_s19 = sphi %s3945_s19, %s4913_s19   ;;  %s3834_s18 = sphi %s3943_s18, %s4912_s18  }
  0x20   : > { %4866 = sst [smem:[#allocation10_spill]] %s3854_s23  ;;  %s47_s25 = sadd.s32 1, %s3854_s23 }
  0x21   : > { %p45_p10 = scmp.ge.s32.totalorder %s44_s11, 2  ;;  %s119_s26 = sshra.s32 %s3850_s22, 7 }
  0x22   : > { %s121_s27 = sadd.s32 %s3854_s23, %s119_s26  ;;  %s124_s28 = sand.u32 127, %s3850_s22 }
  0x23   : > { %s4915_s11 = smov (%p45_p10, %s44_s11), 0  ;;  %s4917_s25 = smov (!%p45_p10, %s47_s25), %s3854_s23 }
  0x24   : > { %4867 = sst [smem:[#allocation11_spill]] %s4915_s11  ;;  %s2998_s29 = sshll.u32 %s121_s27, 7 }
  0x25   : > { %p49_p11 = scmp.ge.s32.totalorder %s4917_s25, 2  ;;  %s125_s30 = sadd.s32 %s2998_s29, %s124_s28 }
  0x26   : > { %s127_s14 = sshra.s32 %s4915_s11, 7  ;;  %s132_s15 = sand.u32 127, %s4915_s11 }
  0x27   : > { %s4919_s25 = smov (%p49_p11, %s4917_s25), 0  ;;  %p147_p12 = scmp.ne.s32.totalorder %s3838_s19, %s3834_s18 }
  0x28   : > { %4868 = sst [smem:[#allocation12_spill]] %s4919_s25  ;;  %s129_s0 = sadd.s32 %s127_s14, %s4919_s25 }
  0x29   : > { %s126_s16 = sld [smem:[#allocation4 + %s125_s30]]  ;;  %s2999_s1 = sshll.u32 %s129_s0, 7 }
  0x2a   : > { %p148_p13 = scmp.eq.s32.totalorder %s3858_s24, 0  ;;  %s133_s17 = sadd.s32 %s2999_s1, %s132_s15 }
  0x2b   : > { %s134_s26 = sld [smem:[#allocation4 + %s133_s17]]  ;;  %s135_s22 = ssub.s32 %s3854_s23, %s4919_s25 }
  0x2c   : > { %p149_p0 = por %p148_p13, %p147_p12  ;;  %s140_s7 = sadd.s32 1, %s3838_s19 }
  0x2d   : > { %p3001_p2 = scmp.ge.s32.totalorder %s3858_s24, 4 }
  0x31   : > { %s136_s27 = ssub.s32 %s126_s16, %s134_s26  ;;  %395 = sbr.rel (%p3001_p2) target bundleno = 83 (0x53), region = 40 }
  0x32   : > { %s137_s10 = sor.u32 %s136_s27, %s135_s22 }
  0x33   : > { %p138_p1 = scmp.eq.s32.totalorder %s137_s10, 0 }
  0x35   : > { %s3998_s28 = scalar_select %p138_p1, %s3838_s19, %s140_s7  }
  0x37   : > { %4869 = sst [smem:[#allocation13_spill]] %s3998_s28 }
  0x38   : > { %432 = sbr.rel (!%p149_p0) target bundleno = 83 (0x53), region = 52  ;;  %s444_s29 = sld [smem:[#allocation4 + %s125_s30]] (%p149_p0) }
  0x39   : > { %s434_s14 = sand.u32 (%p149_p0), 1, %s3838_s19   ;;  %s3125_s0 = sshll.u32 (%p149_p0), %s3854_s23, 7 }
  0x3a   : > { %s3002_s11 = sshll.u32 (%p149_p0), %s434_s14, 8  ;;  %s4870_s4 = sld [smem:[#allocation31_spill]] (%p149_p0) }
  0x3b   : > { %s4011_s7 = scalar_lea.vmem (%p149_p0), [#allocation7], %s3002_s11 }
  0x3e   : > { %s3005_s15 = sshll.u32 (%p149_p0), %s444_s29, 1 }
  0x3f   : > { %s448_s1 = sadd.s32 %s3125_s0, %s3005_s15 }
  0x40   : > { %s3007_s17 = sshll.u32 %s448_s1, 2 }
  0x41   : > { %s4006_s22 = scalar_lea.vmem %s4870_s4, %s3007_s17 }
  0x42   : > { %v540_v0 = vld [vmem:[%s4006_s22] sm:$0xff]  ;;  %v542_v1 = vld [vmem:[%s4006_s22 + $0x10] sm:$0xff] }
  0x43   : > { %v544_v2 = vld [vmem:[%s4006_s22 + $0x20] sm:$0xff]  ;;  %541 = vst [vmem:[%s4011_s7] sm:$0xff] %v540_v0  ;;  %543 = vst [vmem:[%s4011_s7 + $0x8] sm:$0xff] %v542_v1  ;;  %v546_v3 = vld [vmem:[%s4006_s22 + $0x30] sm:$0xff] }
  0x44   : > { %545 = vst [vmem:[%s4011_s7 + $0x10] sm:$0xff] %v544_v2  ;;  %v548_v4 = vld [vmem:[%s4006_s22 + $0x40] sm:$0xff]  ;;  %v550_v5 = vld [vmem:[%s4006_s22 + $0x50] sm:$0xff]  ;;  %547 = vst [vmem:[%s4011_s7 + $0x18] sm:$0xff] %v546_v3 }
  0x45   : > { %549 = vst [vmem:[%s4011_s7 + $0x20] sm:$0xff] %v548_v4  ;;  %551 = vst [vmem:[%s4011_s7 + $0x28] sm:$0xff] %v550_v5  ;;  %v552_v6 = vld [vmem:[%s4006_s22 + $0x60] sm:$0xff]  ;;  %v554_v7 = vld [vmem:[%s4006_s22 + $0x70] sm:$0xff] }
  0x46   : > { %v556_v8 = vld [vmem:[%s4006_s22 + $0x80] sm:$0xff]  ;;  %553 = vst [vmem:[%s4011_s7 + $0x30] sm:$0xff] %v552_v6  ;;  %555 = vst [vmem:[%s4011_s7 + $0x38] sm:$0xff] %v554_v7  ;;  %v558_v9 = vld [vmem:[%s4006_s22 + $0x90] sm:$0xff] }
  0x47   : > { %557 = vst [vmem:[%s4011_s7 + $0x40] sm:$0xff] %v556_v8  ;;  %v560_v10 = vld [vmem:[%s4006_s22 + $0xa0] sm:$0xff]  ;;  %v562_v11 = vld [vmem:[%s4006_s22 + $0xb0] sm:$0xff]  ;;  %559 = vst [vmem:[%s4011_s7 + $0x48] sm:$0xff] %v558_v9 }
  0x48   : > { %561 = vst [vmem:[%s4011_s7 + $0x50] sm:$0xff] %v560_v10  ;;  %563 = vst [vmem:[%s4011_s7 + $0x58] sm:$0xff] %v562_v11  ;;  %v564_v12 = vld [vmem:[%s4006_s22 + $0xc0] sm:$0xff]  ;;  %v566_v13 = vld [vmem:[%s4006_s22 + $0xd0] sm:$0xff] }
  0x49   : > { %v568_v14 = vld [vmem:[%s4006_s22 + $0xe0] sm:$0xff]  ;;  %565 = vst [vmem:[%s4011_s7 + $0x60] sm:$0xff] %v564_v12  ;;  %567 = vst [vmem:[%s4011_s7 + $0x68] sm:$0xff] %v566_v13  ;;  %v570_v15 = vld [vmem:[%s4006_s22 + $0xf0] sm:$0xff] }
  0x4a   : > { %569 = vst [vmem:[%s4011_s7 + $0x70] sm:$0xff] %v568_v14  ;;  %v572_v16 = vld [vmem:[%s4006_s22 + $0x100] sm:$0xff]  ;;  %v574_v17 = vld [vmem:[%s4006_s22 + $0x110] sm:$0xff]  ;;  %571 = vst [vmem:[%s4011_s7 + $0x78] sm:$0xff] %v570_v15 }
  0x4b   : > { %573 = vst [vmem:[%s4011_s7 + $0x80] sm:$0xff] %v572_v16  ;;  %575 = vst [vmem:[%s4011_s7 + $0x88] sm:$0xff] %v574_v17  ;;  %v576_v18 = vld [vmem:[%s4006_s22 + $0x120] sm:$0xff]  ;;  %v578_v19 = vld [vmem:[%s4006_s22 + $0x130] sm:$0xff] }
  0x4c   : > { %v580_v20 = vld [vmem:[%s4006_s22 + $0x140] sm:$0xff]  ;;  %577 = vst [vmem:[%s4011_s7 + $0x90] sm:$0xff] %v576_v18  ;;  %579 = vst [vmem:[%s4011_s7 + $0x98] sm:$0xff] %v578_v19  ;;  %v582_v21 = vld [vmem:[%s4006_s22 + $0x150] sm:$0xff] }
  0x4d   : > { %581 = vst [vmem:[%s4011_s7 + $0xa0] sm:$0xff] %v580_v20  ;;  %v584_v22 = vld [vmem:[%s4006_s22 + $0x160] sm:$0xff]  ;;  %v586_v23 = vld [vmem:[%s4006_s22 + $0x170] sm:$0xff]  ;;  %583 = vst [vmem:[%s4011_s7 + $0xa8] sm:$0xff] %v582_v21 }
  0x4e   : > { %585 = vst [vmem:[%s4011_s7 + $0xb0] sm:$0xff] %v584_v22  ;;  %587 = vst [vmem:[%s4011_s7 + $0xb8] sm:$0xff] %v586_v23  ;;  %v588_v24 = vld [vmem:[%s4006_s22 + $0x180] sm:$0xff]  ;;  %v590_v25 = vld [vmem:[%s4006_s22 + $0x190] sm:$0xff] }
  0x4f   : > { %v592_v26 = vld [vmem:[%s4006_s22 + $0x1a0] sm:$0xff]  ;;  %589 = vst [vmem:[%s4011_s7 + $0xc0] sm:$0xff] %v588_v24  ;;  %591 = vst [vmem:[%s4011_s7 + $0xc8] sm:$0xff] %v590_v25  ;;  %v594_v27 = vld [vmem:[%s4006_s22 + $0x1b0] sm:$0xff] }
  0x50   : > { %593 = vst [vmem:[%s4011_s7 + $0xd0] sm:$0xff] %v592_v26  ;;  %v596_v28 = vld [vmem:[%s4006_s22 + $0x1c0] sm:$0xff]  ;;  %v598_v29 = vld [vmem:[%s4006_s22 + $0x1d0] sm:$0xff]  ;;  %595 = vst [vmem:[%s4011_s7 + $0xd8] sm:$0xff] %v594_v27 }
  0x51   : > { %597 = vst [vmem:[%s4011_s7 + $0xe0] sm:$0xff] %v596_v28  ;;  %599 = vst [vmem:[%s4011_s7 + $0xe8] sm:$0xff] %v598_v29  ;;  %v600_v30 = vld [vmem:[%s4006_s22 + $0x1e0] sm:$0xff]  ;;  %v602_v31 = vld [vmem:[%s4006_s22 + $0x1f0] sm:$0xff] }
  0x52   : > { %601 = vst [vmem:[%s4011_s7 + $0xf0] sm:$0xff] %v600_v30  ;;  %603 = vst [vmem:[%s4011_s7 + $0xf8] sm:$0xff] %v602_v31 }
  0x53 PF: > { %p3008_p3 = scmp.ge.s32.totalorder %s3858_s24, 1  ;;  %p617_p4 = scmp.lt.s32.totalorder %s3858_s24, 5 }
  0x55   : > { %p618_p5 = pnand %p3008_p3, %p617_p4 }
  0x56   : > { %s624_s10 = sand.u32 (!%p618_p5), 1, %s3834_s18   ;;  %s3010_s11 = sshll.u32 (!%p618_p5), %s3846_s21, 5 }
  0x57   : > { %621 = sbr.rel (%p618_p5) target bundleno = 893 (0x37d), region = 94  ;;  %s3009_s25 = sshll.u32 (!%p618_p5), %s624_s10, 8 }
  0x58   : > { %p691_p6 = scmp.lt.s32.totalorder (!%p618_p5), %s3010_s11, 63  ;;  %s696_s30 = sshra.s32 (!%p618_p5), %s3842_s20, 7 }
  0x59   : > { %s698_s26 = sadd.s32 (!%p618_p5), %s3846_s21, %s696_s30  ;;  %s701_s27 = sand.u32 (!%p618_p5), 127, %s3842_s20 }
  0x5a   : > { %s3012_s14 = sshll.u32 (!%p618_p5), %s698_s26, 7  ;;  %p740_p7 = scmp.lt.s32.totalorder (!%p618_p5), %s3846_s21, 1 }
  0x5b   : > { %s702_s17 = sadd.s32 (!%p618_p5), %s3012_s14, %s701_s27  ;;  %s4098_s26 = sld [smem:[#allocation5 + %s3846_s21]] (!%p618_p5) }
  0x5c   : > { %s703_s16 = sld [smem:[#allocation4 + %s702_s17]] (!%p618_p5)  ;;  %s4111_s23 = scalar_lea.vmem (!%p618_p5), [#allocation7], %s3009_s25 }
  0x5d   : > { %p3020_p9 = scmp.ne.s32.totalorder (!%p618_p5), %s3842_s20, 0 }
  0x5e   : > { %s4921_s11 = smov (!%p691_p6, %s3010_s11), 63  ;;  %v3862_v32 = vmov (!%p3020_p9), 0.0  }
  0x5f   : > { %s3011_s29 = sshll.u32 %s4921_s11, 2  ;;  %s3016_s18 = sshll.u32 %s4921_s11, 3  ;;  %750 = vst [vmem:[#allocation2] sm:$0xff] (!%p3020_p9), %v3862_v32  ;;  %751 = vst [vmem:[#allocation2 + $0x8] sm:$0xff] (!%p3020_p9), %v3862_v32 }
  0x60   : > { %s4084_s1 = scalar_lea.vmem %s4839_s2, %s3011_s29  ;;  %s4089_s10 = scalar_lea.vmem %s4842_s5, %s3016_s18  ;;  %752 = vst [vmem:[#allocation2 + $0x10] sm:$0xff] (!%p3020_p9), %v3862_v32  ;;  %753 = vst [vmem:[#allocation2 + $0x18] sm:$0xff] (!%p3020_p9), %v3862_v32 }
  0x61   : > { %s4094_s30 = scalar_lea.vmem %s4848_s12, %s3011_s29  ;;  %754 = vst [vmem:[#allocation2 + $0x20] sm:$0xff] (!%p3020_p9), %v3862_v32  ;;  %755 = vst [vmem:[#allocation2 + $0x28] sm:$0xff] (!%p3020_p9), %v3862_v32 }
  0x62   : > { %s741_s28 = scalar_select %p740_p7, %s3846_s21, 1 }
  0x63   : > { %s3013_s0 = sshll.u32 %s703_s16, 5  ;;  %749 = sbr.rel (%p3020_p9) target bundleno = 112 (0x70), region = 102  ;;  %756 = vst [vmem:[#allocation2 + $0x30] sm:$0xff] (!%p3020_p9), %v3862_v32  ;;  %757 = vst [vmem:[#allocation2 + $0x38] sm:$0xff] (!%p3020_p9), %v3862_v32 }
  0x64   : > { %s3019_s15 = sshll.u32 %s741_s28, 3  ;;  %p705_p8 = scmp.lt.s32.totalorder %s3013_s0, 63  ;;  %758 = vst [vmem:[#allocation2 + $0x40] sm:$0xff] (!%p3020_p9), %v3862_v32  ;;  %759 = vst [vmem:[#allocation2 + $0x48] sm:$0xff] (!%p3020_p9), %v3862_v32 }
  0x65   : > { %s4104_s11 = scalar_lea.vmem %s4849_s13, %s3019_s15  ;;  %760 = vst [vmem:[#allocation2 + $0x50] sm:$0xff] (!%p3020_p9), %v3862_v32  ;;  %761 = vst [vmem:[#allocation2 + $0x58] sm:$0xff] (!%p3020_p9), %v3862_v32 }
  0x66   : > { %s4923_s0 = smov (!%p705_p8, %s3013_s0), 63  ;;  %762 = vst [vmem:[#allocation2 + $0x60] sm:$0xff] (!%p3020_p9), %v3862_v32  ;;  %763 = vst [vmem:[#allocation2 + $0x68] sm:$0xff] (!%p3020_p9), %v3862_v32 }
  0x67   : > { %s3014_s17 = sshll.u32 %s4923_s0, 2  ;;  %764 = vst [vmem:[#allocation2 + $0x70] sm:$0xff] (!%p3020_p9), %v3862_v32  ;;  %765 = vst [vmem:[#allocation2 + $0x78] sm:$0xff] (!%p3020_p9), %v3862_v32 }
  0x68   : > { %s4109_s4 = scalar_lea.vmem %s4840_s3, %s3014_s17  ;;  %766 = vst [vmem:[#allocation2 + $0x80] sm:$0xff] (!%p3020_p9), %v3862_v32  ;;  %767 = vst [vmem:[#allocation2 + $0x88] sm:$0xff] (!%p3020_p9), %v3862_v32 }
  0x69   : > { %768 = vst [vmem:[#allocation2 + $0x90] sm:$0xff] (!%p3020_p9), %v3862_v32  ;;  %769 = vst [vmem:[#allocation2 + $0x98] sm:$0xff] (!%p3020_p9), %v3862_v32 }
  0x6a   : > { %770 = vst [vmem:[#allocation2 + $0xa0] sm:$0xff] %v3862_v32  ;;  %771 = vst [vmem:[#allocation2 + $0xa8] sm:$0xff] %v3862_v32 }
  0x6b   : > { %772 = vst [vmem:[#allocation2 + $0xb0] sm:$0xff] %v3862_v32  ;;  %773 = vst [vmem:[#allocation2 + $0xb8] sm:$0xff] %v3862_v32 }
  0x6c   : > { %774 = vst [vmem:[#allocation2 + $0xc0] sm:$0xff] %v3862_v32  ;;  %775 = vst [vmem:[#allocation2 + $0xc8] sm:$0xff] %v3862_v32 }
  0x6d   : > { %776 = vst [vmem:[#allocation2 + $0xd0] sm:$0xff] %v3862_v32  ;;  %777 = vst [vmem:[#allocation2 + $0xd8] sm:$0xff] %v3862_v32 }
  0x6e   : > { %778 = vst [vmem:[#allocation2 + $0xe0] sm:$0xff] %v3862_v32  ;;  %779 = vst [vmem:[#allocation2 + $0xe8] sm:$0xff] %v3862_v32 }
  0x6f   : > { %780 = vst [vmem:[#allocation2 + $0xf0] sm:$0xff] %v3862_v32  ;;  %781 = vst [vmem:[#allocation2 + $0xf8] sm:$0xff] %v3862_v32 }
  0x70 PF: > { %p3021_p10 = scmp.ge.s32.totalorder %s3842_s20, %s4098_s26 }
  0x71   : > { %v3696_v33 = vld [vmem:[%s4109_s4 + $0x40] sm:$0xff] (!%p3021_p10)   ;;  %v3698_v35 = vld [vmem:[%s4109_s4 + $0x48] sm:$0xff] (!%p3021_p10)   ;;  %v3700_v37 = vld [vmem:[%s4109_s4 + $0x50] sm:$0xff] (!%p3021_p10)  }
  0x72   : > { %785 = sbr.rel (%p3021_p10) target bundleno = 422 (0x1a6), region = 106  ;;  %v3697_v34 = vld [vmem:[%s4109_s4] sm:$0xff] (!%p3021_p10)   ;;  %3332 = vmatprep.subr.bf16.mxu0 (!%p3021_p10), %v3696_v33  ;;  %3588 = vmatprep.subr.bf16.mxu1 (!%p3021_p10), %v3696_v33  ;;  %v3699_v36 = vld [vmem:[%s4109_s4 + $0x8] sm:$0xff] (!%p3021_p10)   ;;  %v3701_v38 = vld [vmem:[%s4109_s4 + $0x10] sm:$0xff] (!%p3021_p10)  }
  0x73   : > { %3333 = vmatpush3.bf16.msra.mxu0 (!%p3021_p10), %v3697_v34  ;;  %3596 = vmatpush3.bf16.msra.mxu1 (!%p3021_p10), %v3697_v34  ;;  %v3702_v39 = vld [vmem:[%s4109_s4 + $0x58] sm:$0xff] (!%p3021_p10)   ;;  %v3704_v41 = vld [vmem:[%s4109_s4 + $0x60] sm:$0xff] (!%p3021_p10)   ;;  %v3706_v43 = vld [vmem:[%s4109_s4 + $0x68] sm:$0xff] (!%p3021_p10)  }
  0x74   : > { %3334 = vmatprep.subr.bf16.mxu0 (!%p3021_p10), %v3698_v35  ;;  %3589 = vmatprep.subr.bf16.mxu1 (!%p3021_p10), %v3698_v35  ;;  %v3703_v40 = vld [vmem:[%s4109_s4 + $0x18] sm:$0xff] (!%p3021_p10)   ;;  %v3705_v42 = vld [vmem:[%s4109_s4 + $0x20] sm:$0xff] (!%p3021_p10)   ;;  %v3707_v46 = vld [vmem:[%s4109_s4 + $0x28] sm:$0xff] (!%p3021_p10)  }
  0x75   : > { %v3714_v44 = vld [vmem:[%s4111_s23 + $0x4] ss:$8 sps:$4 sm:$0xff] (!%p3021_p10)   ;;  %v3708_v47 = vld [vmem:[%s4109_s4 + $0x70] sm:$0xff] (!%p3021_p10)   ;;  %v3710_v49 = vld [vmem:[%s4109_s4 + $0x78] sm:$0xff] (!%p3021_p10)  }
  0x76   : > { %v3717_v45 = vld [vmem:[%s4111_s23 + $0x84] ss:$8 sps:$4 sm:$0xff] (!%p3021_p10)   ;;  %1170 = vmatprep.mubr.bf16.mxu0 (!%p3021_p10), %v3714_v44  ;;  %v3709_v48 = vld [vmem:[%s4109_s4 + $0x30] sm:$0xff] (!%p3021_p10)   ;;  %v3711_v50 = vld [vmem:[%s4109_s4 + $0x38] sm:$0xff] (!%p3021_p10)  }
  0x77   : > { %3335 = vmatpush3.bf16.msra.mxu0 (!%p3021_p10), %v3699_v36  ;;  %3597 = vmatpush3.bf16.msra.mxu1 (!%p3021_p10), %v3699_v36  ;;  %v3712_v51 = vld [vmem:[%s4111_s23] ss:$8 sps:$4 sm:$0xff] (!%p3021_p10)   ;;  %v3718_v53 = vld [vmem:[%s4111_s23 + $0x14] ss:$8 sps:$4 sm:$0xff] (!%p3021_p10)   ;;  %v3722_v55 = vld [vmem:[%s4111_s23 + $0x10] ss:$8 sps:$4 sm:$0xff] (!%p3021_p10)  }
  0x78   : > { %3336 = vmatprep.subr.bf16.mxu0 (!%p3021_p10), %v3700_v37  ;;  %3590 = vmatprep.subr.bf16.mxu1 (!%p3021_p10), %v3700_v37  ;;  %v3715_v52 = vld [vmem:[%s4111_s23 + $0x80] ss:$8 sps:$4 sm:$0xff] (!%p3021_p10)   ;;  %v3720_v54 = vld [vmem:[%s4111_s23 + $0x94] ss:$8 sps:$4 sm:$0xff] (!%p3021_p10)   ;;  %v3723_v56 = vld [vmem:[%s4111_s23 + $0x90] ss:$8 sps:$4 sm:$0xff] (!%p3021_p10)  }
  0x79   : > { %1234 = vmatprep.mubr.bf16.mxu1 %v3717_v45  ;;  %v3724_v57 = vld [vmem:[%s4111_s23 + $0x24] ss:$8 sps:$4 sm:$0xff]   ;;  %v3728_v59 = vld [vmem:[%s4111_s23 + $0x20] ss:$8 sps:$4 sm:$0xff]   ;;  %v3730_v61 = vld [vmem:[%s4111_s23 + $0x34] ss:$8 sps:$4 sm:$0xff]  }
  0x7a   : > { %v3726_v58 = vld [vmem:[%s4111_s23 + $0xa4] ss:$8 sps:$4 sm:$0xff]   ;;  %v3729_v60 = vld [vmem:[%s4111_s23 + $0xa0] ss:$8 sps:$4 sm:$0xff]   ;;  %v3732_v62 = vld [vmem:[%s4111_s23 + $0xb4] ss:$8 sps:$4 sm:$0xff]  }
  0x7b   : > { %3337 = vmatpush3.bf16.msra.mxu0 %v3701_v38  ;;  %3598 = vmatpush3.bf16.msra.mxu1 %v3701_v38  ;;  %v3734_v63 = vld [vmem:[%s4111_s23 + $0x30] ss:$8 sps:$4 sm:$0xff]   ;;  %v3736_v1 = vld [vmem:[%s4111_s23 + $0x44] ss:$8 sps:$4 sm:$0xff]   ;;  %v3740_v3 = vld [vmem:[%s4111_s23 + $0x40] ss:$8 sps:$4 sm:$0xff]  }
  0x7c   : > { %3338 = vmatprep.subr.bf16.mxu0 %v3702_v39  ;;  %3591 = vmatprep.subr.bf16.mxu1 %v3702_v39  ;;  %v3735_v0 = vld [vmem:[%s4111_s23 + $0xb0] ss:$8 sps:$4 sm:$0xff]   ;;  %v3738_v2 = vld [vmem:[%s4111_s23 + $0xc4] ss:$8 sps:$4 sm:$0xff]   ;;  %v3741_v4 = vld [vmem:[%s4111_s23 + $0xc0] ss:$8 sps:$4 sm:$0xff]  }
  0x7d   : > { %v3742_v5 = vld [vmem:[%s4111_s23 + $0x54] ss:$8 sps:$4 sm:$0xff]   ;;  %v3746_v7 = vld [vmem:[%s4111_s23 + $0x50] ss:$8 sps:$4 sm:$0xff]   ;;  %v3748_v9 = vld [vmem:[%s4111_s23 + $0x64] ss:$8 sps:$4 sm:$0xff]  }
  0x7e   : > { %v3744_v6 = vld [vmem:[%s4111_s23 + $0xd4] ss:$8 sps:$4 sm:$0xff]   ;;  %v3747_v8 = vld [vmem:[%s4111_s23 + $0xd0] ss:$8 sps:$4 sm:$0xff]   ;;  %v3750_v10 = vld [vmem:[%s4111_s23 + $0xe4] ss:$8 sps:$4 sm:$0xff]  }
  0x7f   : > { %3339 = vmatpush3.bf16.msra.mxu0 %v3703_v40  ;;  %3599 = vmatpush3.bf16.msra.mxu1 %v3703_v40  ;;  %v3752_v11 = vld [vmem:[%s4111_s23 + $0x60] ss:$8 sps:$4 sm:$0xff]   ;;  %v3754_v13 = vld [vmem:[%s4111_s23 + $0x74] ss:$8 sps:$4 sm:$0xff]   ;;  %v3758_v15 = vld [vmem:[%s4111_s23 + $0x70] ss:$8 sps:$4 sm:$0xff]  }
  0x80   : > { %3340 = vmatprep.subr.bf16.mxu0 %v3704_v41  ;;  %3592 = vmatprep.subr.bf16.mxu1 %v3704_v41  ;;  %v3753_v12 = vld [vmem:[%s4111_s23 + $0xe0] ss:$8 sps:$4 sm:$0xff]   ;;  %v3756_v14 = vld [vmem:[%s4111_s23 + $0xf4] ss:$8 sps:$4 sm:$0xff]   ;;  %v3759_v16 = vld [vmem:[%s4111_s23 + $0xf0] ss:$8 sps:$4 sm:$0xff]  }
  0x81   : > { %v786_v19 = vld [vmem:[#allocation2] sm:$0xff]  ;;  %v787_v27 = vld [vmem:[#allocation2 + $0x8] sm:$0xff]  ;;  %v788_v39 = vld [vmem:[#allocation2 + $0x10] sm:$0xff] }
  0x82   : > { %v802_v21 = vld [vmem:[#allocation2 + $0x80] sm:$0xff]  ;;  %v803_v29 = vld [vmem:[#allocation2 + $0x88] sm:$0xff]  ;;  %v804_v41 = vld [vmem:[#allocation2 + $0x90] sm:$0xff] }
  0x83   : > { %3341 = vmatpush3.bf16.msra.mxu0 %v3705_v42  ;;  %3600 = vmatpush3.bf16.msra.mxu1 %v3705_v42 }
  0x84   : > { %3342 = vmatprep.subr.bf16.mxu0 %v3706_v43  ;;  %3593 = vmatprep.subr.bf16.mxu1 %v3706_v43 }
  0x87   : > { %3343 = vmatpush3.bf16.msra.mxu0 %v3707_v46  ;;  %3601 = vmatpush3.bf16.msra.mxu1 %v3707_v46 }
  0x88   : > { %3344 = vmatprep.subr.bf16.mxu0 %v3708_v47  ;;  %3594 = vmatprep.subr.bf16.mxu1 %v3708_v47  ;;  %v789_v47 = vld [vmem:[#allocation2 + $0x18] sm:$0xff] }
  0x8b   : > { %3345 = vmatpush3.bf16.msra.mxu0 %v3709_v48  ;;  %3602 = vmatpush3.bf16.msra.mxu1 %v3709_v48 }
  0x8c   : > { %3346 = vmatprep.subr.bf16.mxu0 %v3710_v49  ;;  %3595 = vmatprep.subr.bf16.mxu1 %v3710_v49  ;;  %v805_v49 = vld [vmem:[#allocation2 + $0x98] sm:$0xff] }
  0x8f   : > { %3347 = vmatpush3.bf16.msra.mxu0 %v3711_v50  ;;  %3603 = vmatpush3.bf16.msra.mxu1 %v3711_v50 }
  0x92   : > { %1171 = vmatmul.mubr.bf16.vlgmr.msra.gmra.mrb[0].mxu0 %v3712_v51  ;;  %1235 = vmatmul.mubr.bf16.vlgmr.msra.gmra.mrb[0].mxu1 %v3715_v52 }
  0x93   : > { %1178 = vmatprep.mubr.bf16.mxu0 %v3718_v53  ;;  %1242 = vmatprep.mubr.bf16.mxu1 %v3720_v54 }
  0x9a   : > { %1179 = vmatmul.mubr.bf16.gmra.mrb[4].mxu0 %v3722_v55  ;;  %1243 = vmatmul.mubr.bf16.gmra.mrb[4].mxu1 %v3723_v56 }
  0x9b   : > { %1186 = vmatprep.mubr.bf16.mxu0 %v3724_v57  ;;  %1250 = vmatprep.mubr.bf16.mxu1 %v3726_v58 }
  0xa2   : > { %1187 = vmatmul.mubr.bf16.gmra.mrb[8].mxu0 %v3728_v59  ;;  %1251 = vmatmul.mubr.bf16.gmra.mrb[8].mxu1 %v3729_v60  ;;  %v790_v59 = vld [vmem:[#allocation2 + $0x20] sm:$0xff] }
  0xa3   : > { %1194 = vmatprep.mubr.bf16.mxu0 %v3730_v61  ;;  %1258 = vmatprep.mubr.bf16.mxu1 %v3732_v62  ;;  %v806_v61 = vld [vmem:[#allocation2 + $0xa0] sm:$0xff] }
  0xaa   : > { %1195 = vmatmul.mubr.bf16.gmra.mrb[12].mxu0 %v3734_v63  ;;  %1259 = vmatmul.mubr.bf16.gmra.mrb[12].mxu1 %v3735_v0 }
  0xab   : > { %1202 = vmatprep.mubr.bf16.mxu0 %v3736_v1  ;;  %1266 = vmatprep.mubr.bf16.mxu1 %v3738_v2 }
  0xb2   : > { %1203 = vmatmul.mubr.bf16.gmra.mrb[16].mxu0 %v3740_v3  ;;  %1267 = vmatmul.mubr.bf16.gmra.mrb[16].mxu1 %v3741_v4  ;;  %v791_v3 = vld [vmem:[#allocation2 + $0x28] sm:$0xff] }
  0xb3   : > { %1210 = vmatprep.mubr.bf16.mxu0 %v3742_v5  ;;  %1274 = vmatprep.mubr.bf16.mxu1 %v3744_v6  ;;  %v807_v5 = vld [vmem:[#allocation2 + $0xa8] sm:$0xff] }
  0xba   : > { %1211 = vmatmul.mubr.bf16.gmra.mrb[20].mxu0 %v3746_v7  ;;  %1275 = vmatmul.mubr.bf16.gmra.mrb[20].mxu1 %v3747_v8 }
  0xbb   : > { %1218 = vmatprep.mubr.bf16.mxu0 %v3748_v9  ;;  %1282 = vmatprep.mubr.bf16.mxu1 %v3750_v10 }
  0xc2   : > { %1219 = vmatmul.mubr.bf16.gmra.mrb[24].mxu0 %v3752_v11  ;;  %1283 = vmatmul.mubr.bf16.gmra.mrb[24].mxu1 %v3753_v12 }
  0xc3   : > { %1226 = vmatprep.mubr.bf16.mxu0 %v3754_v13  ;;  %1290 = vmatprep.mubr.bf16.mxu1 %v3756_v14 }
  0xca   : > { %1227 = vmatmul.mubr.bf16.gmra.mrb[28].mxu0 %v3758_v15  ;;  %1291 = vmatmul.mubr.bf16.gmra.mrb[28].mxu1 %v3759_v16  ;;  %v792_v15 = vld [vmem:[#allocation2 + $0x30] sm:$0xff] }
 0x165   : > { %v3348_v17 = vpop.f32.mrb[0].mxu0  ;;  %v3396_v18 = vpop.f32.mrb[0].mxu1 }
 0x166   : > { %v3349_v20 = vpop.f32.mrb[1].mxu0  ;;  %v3397_v22 = vpop.f32.mrb[1].mxu1 }
 0x167   : > { %v3350_v23 = vadd.f32 %v3349_v20, %v3348_v17  ;;  %v3398_v24 = vadd.f32 %v3397_v22, %v3396_v18  ;;  %v3351_v25 = vpop.f32.mrb[2].mxu0  ;;  %v3399_v26 = vpop.f32.mrb[2].mxu1  ;;  %v808_v17 = vld [vmem:[#allocation2 + $0xb0] sm:$0xff] }
 0x168   : > { %v3352_v28 = vpop.f32.mrb[3].mxu0  ;;  %v3400_v30 = vpop.f32.mrb[3].mxu1 }
 0x169   : > { %v1299_v31 = vadd.f32 %v3350_v23, %v786_v19  ;;  %v1315_v32 = vadd.f32 %v3398_v24, %v802_v21  ;;  %v3353_v33 = vadd.f32 %v3352_v28, %v3351_v25  ;;  %v3401_v34 = vadd.f32 %v3400_v30, %v3399_v26  ;;  %v793_v23 = vld [vmem:[#allocation2 + $0x38] sm:$0xff] }
 0x16a   : > { %v809_v25 = vld [vmem:[#allocation2 + $0xb8] sm:$0xff] }
 0x16b   : > { %1331 = vst [vmem:[#allocation2] sm:$0xff] %v1299_v31  ;;  %1347 = vst [vmem:[#allocation2 + $0x80] sm:$0xff] %v1315_v32  ;;  %v1300_v35 = vadd.f32 %v3353_v33, %v787_v27  ;;  %v1316_v36 = vadd.f32 %v3401_v34, %v803_v29 }
 0x16d   : > { %1332 = vst [vmem:[#allocation2 + $0x8] sm:$0xff] %v1300_v35  ;;  %1348 = vst [vmem:[#allocation2 + $0x88] sm:$0xff] %v1316_v36  ;;  %v3354_v37 = vpop.f32.mrb[4].mxu0  ;;  %v3402_v38 = vpop.f32.mrb[4].mxu1  ;;  %v794_v35 = vld [vmem:[#allocation2 + $0x40] sm:$0xff] }
 0x16e   : > { %v3355_v40 = vpop.f32.mrb[5].mxu0  ;;  %v3403_v42 = vpop.f32.mrb[5].mxu1 }
 0x16f   : > { %v3356_v43 = vadd.f32 %v3355_v40, %v3354_v37  ;;  %v3404_v44 = vadd.f32 %v3403_v42, %v3402_v38  ;;  %v3357_v45 = vpop.f32.mrb[6].mxu0  ;;  %v3405_v46 = vpop.f32.mrb[6].mxu1  ;;  %v810_v37 = vld [vmem:[#allocation2 + $0xc0] sm:$0xff] }
 0x170   : > { %v3358_v48 = vpop.f32.mrb[7].mxu0  ;;  %v3406_v50 = vpop.f32.mrb[7].mxu1 }
 0x171   : > { %v1301_v51 = vadd.f32 %v3356_v43, %v788_v39  ;;  %v1317_v52 = vadd.f32 %v3404_v44, %v804_v41  ;;  %v3359_v53 = vadd.f32 %v3358_v48, %v3357_v45  ;;  %v3407_v54 = vadd.f32 %v3406_v50, %v3405_v46  ;;  %v795_v43 = vld [vmem:[#allocation2 + $0x48] sm:$0xff] }
 0x172   : > { %v811_v45 = vld [vmem:[#allocation2 + $0xc8] sm:$0xff] }
 0x173   : > { %1333 = vst [vmem:[#allocation2 + $0x10] sm:$0xff] %v1301_v51  ;;  %1349 = vst [vmem:[#allocation2 + $0x90] sm:$0xff] %v1317_v52  ;;  %v1302_v55 = vadd.f32 %v3359_v53, %v789_v47  ;;  %v1318_v56 = vadd.f32 %v3407_v54, %v805_v49 }
 0x175   : > { %1334 = vst [vmem:[#allocation2 + $0x18] sm:$0xff] %v1302_v55  ;;  %1350 = vst [vmem:[#allocation2 + $0x98] sm:$0xff] %v1318_v56  ;;  %v3360_v57 = vpop.f32.mrb[8].mxu0  ;;  %v3408_v58 = vpop.f32.mrb[8].mxu1  ;;  %v796_v55 = vld [vmem:[#allocation2 + $0x50] sm:$0xff] }
 0x176   : > { %v3361_v60 = vpop.f32.mrb[9].mxu0  ;;  %v3409_v62 = vpop.f32.mrb[9].mxu1 }
 0x177   : > { %v3362_v63 = vadd.f32 %v3361_v60, %v3360_v57  ;;  %v3410_v0 = vadd.f32 %v3409_v62, %v3408_v58  ;;  %v3363_v1 = vpop.f32.mrb[10].mxu0  ;;  %v3411_v2 = vpop.f32.mrb[10].mxu1  ;;  %v812_v57 = vld [vmem:[#allocation2 + $0xd0] sm:$0xff] }
 0x178   : > { %v3364_v4 = vpop.f32.mrb[11].mxu0  ;;  %v3412_v6 = vpop.f32.mrb[11].mxu1 }
 0x179   : > { %v1303_v7 = vadd.f32 %v3362_v63, %v790_v59  ;;  %v1319_v8 = vadd.f32 %v3410_v0, %v806_v61  ;;  %v3365_v9 = vadd.f32 %v3364_v4, %v3363_v1  ;;  %v3413_v10 = vadd.f32 %v3412_v6, %v3411_v2  ;;  %v797_v63 = vld [vmem:[#allocation2 + $0x58] sm:$0xff] }
 0x17a   : > { %v813_v1 = vld [vmem:[#allocation2 + $0xd8] sm:$0xff] }
 0x17b   : > { %1335 = vst [vmem:[#allocation2 + $0x20] sm:$0xff] %v1303_v7  ;;  %1351 = vst [vmem:[#allocation2 + $0xa0] sm:$0xff] %v1319_v8  ;;  %v1304_v11 = vadd.f32 %v3365_v9, %v791_v3  ;;  %v1320_v12 = vadd.f32 %v3413_v10, %v807_v5 }
 0x17d   : > { %1336 = vst [vmem:[#allocation2 + $0x28] sm:$0xff] %v1304_v11  ;;  %1352 = vst [vmem:[#allocation2 + $0xa8] sm:$0xff] %v1320_v12  ;;  %v3366_v13 = vpop.f32.mrb[12].mxu0  ;;  %v3414_v14 = vpop.f32.mrb[12].mxu1  ;;  %v798_v11 = vld [vmem:[#allocation2 + $0x60] sm:$0xff] }
 0x17e   : > { %v3367_v16 = vpop.f32.mrb[13].mxu0  ;;  %v3415_v18 = vpop.f32.mrb[13].mxu1 }
 0x17f   : > { %v3368_v19 = vadd.f32 %v3367_v16, %v3366_v13  ;;  %v3416_v20 = vadd.f32 %v3415_v18, %v3414_v14  ;;  %v3369_v21 = vpop.f32.mrb[14].mxu0  ;;  %v3417_v22 = vpop.f32.mrb[14].mxu1  ;;  %v814_v13 = vld [vmem:[#allocation2 + $0xe0] sm:$0xff] }
 0x180   : > { %v3370_v24 = vpop.f32.mrb[15].mxu0  ;;  %v3418_v26 = vpop.f32.mrb[15].mxu1 }
 0x181   : > { %v1305_v27 = vadd.f32 %v3368_v19, %v792_v15  ;;  %v1321_v28 = vadd.f32 %v3416_v20, %v808_v17  ;;  %v3371_v29 = vadd.f32 %v3370_v24, %v3369_v21  ;;  %v3419_v30 = vadd.f32 %v3418_v26, %v3417_v22  ;;  %v799_v19 = vld [vmem:[#allocation2 + $0x68] sm:$0xff] }
 0x182   : > { %v815_v21 = vld [vmem:[#allocation2 + $0xe8] sm:$0xff] }
 0x183   : > { %1337 = vst [vmem:[#allocation2 + $0x30] sm:$0xff] %v1305_v27  ;;  %1353 = vst [vmem:[#allocation2 + $0xb0] sm:$0xff] %v1321_v28  ;;  %v1306_v31 = vadd.f32 %v3371_v29, %v793_v23  ;;  %v1322_v32 = vadd.f32 %v3419_v30, %v809_v25 }
 0x185   : > { %1338 = vst [vmem:[#allocation2 + $0x38] sm:$0xff] %v1306_v31  ;;  %1354 = vst [vmem:[#allocation2 + $0xb8] sm:$0xff] %v1322_v32  ;;  %v3372_v33 = vpop.f32.mrb[16].mxu0  ;;  %v3420_v34 = vpop.f32.mrb[16].mxu1  ;;  %v800_v31 = vld [vmem:[#allocation2 + $0x70] sm:$0xff] }
 0x186   : > { %v3373_v36 = vpop.f32.mrb[17].mxu0  ;;  %v3421_v38 = vpop.f32.mrb[17].mxu1 }
 0x187   : > { %v3374_v39 = vadd.f32 %v3373_v36, %v3372_v33  ;;  %v3422_v40 = vadd.f32 %v3421_v38, %v3420_v34  ;;  %v3375_v41 = vpop.f32.mrb[18].mxu0  ;;  %v3423_v42 = vpop.f32.mrb[18].mxu1  ;;  %v816_v33 = vld [vmem:[#allocation2 + $0xf0] sm:$0xff] }
 0x188   : > { %v3376_v44 = vpop.f32.mrb[19].mxu0  ;;  %v3424_v46 = vpop.f32.mrb[19].mxu1 }
 0x189   : > { %v1307_v47 = vadd.f32 %v3374_v39, %v794_v35  ;;  %v1323_v48 = vadd.f32 %v3422_v40, %v810_v37  ;;  %v3377_v49 = vadd.f32 %v3376_v44, %v3375_v41  ;;  %v3425_v50 = vadd.f32 %v3424_v46, %v3423_v42  ;;  %v801_v39 = vld [vmem:[#allocation2 + $0x78] sm:$0xff] }
 0x18a   : > { %v817_v41 = vld [vmem:[#allocation2 + $0xf8] sm:$0xff] }
 0x18b   : > { %1339 = vst [vmem:[#allocation2 + $0x40] sm:$0xff] %v1307_v47  ;;  %1355 = vst [vmem:[#allocation2 + $0xc0] sm:$0xff] %v1323_v48  ;;  %v1308_v51 = vadd.f32 %v3377_v49, %v795_v43  ;;  %v1324_v52 = vadd.f32 %v3425_v50, %v811_v45 }
 0x18d   : > { %1340 = vst [vmem:[#allocation2 + $0x48] sm:$0xff] %v1308_v51  ;;  %1356 = vst [vmem:[#allocation2 + $0xc8] sm:$0xff] %v1324_v52  ;;  %v3378_v53 = vpop.f32.mrb[20].mxu0  ;;  %v3426_v54 = vpop.f32.mrb[20].mxu1 }
 0x18e   : > { %v3379_v56 = vpop.f32.mrb[21].mxu0  ;;  %v3427_v58 = vpop.f32.mrb[21].mxu1 }
 0x18f   : > { %v3380_v59 = vadd.f32 %v3379_v56, %v3378_v53  ;;  %v3428_v60 = vadd.f32 %v3427_v58, %v3426_v54  ;;  %v3381_v61 = vpop.f32.mrb[22].mxu0  ;;  %v3429_v62 = vpop.f32.mrb[22].mxu1 }
 0x190   : > { %v3382_v0 = vpop.f32.mrb[23].mxu0  ;;  %v3430_v2 = vpop.f32.mrb[23].mxu1 }
 0x191   : > { %v1309_v3 = vadd.f32 %v3380_v59, %v796_v55  ;;  %v1325_v4 = vadd.f32 %v3428_v60, %v812_v57  ;;  %v3383_v5 = vadd.f32 %v3382_v0, %v3381_v61  ;;  %v3431_v6 = vadd.f32 %v3430_v2, %v3429_v62 }
 0x193   : > { %1341 = vst [vmem:[#allocation2 + $0x50] sm:$0xff] %v1309_v3  ;;  %1357 = vst [vmem:[#allocation2 + $0xd0] sm:$0xff] %v1325_v4  ;;  %v1310_v7 = vadd.f32 %v3383_v5, %v797_v63  ;;  %v1326_v8 = vadd.f32 %v3431_v6, %v813_v1 }
 0x195   : > { %1342 = vst [vmem:[#allocation2 + $0x58] sm:$0xff] %v1310_v7  ;;  %1358 = vst [vmem:[#allocation2 + $0xd8] sm:$0xff] %v1326_v8  ;;  %v3384_v9 = vpop.f32.mrb[24].mxu0  ;;  %v3432_v10 = vpop.f32.mrb[24].mxu1 }
 0x196   : > { %v3385_v12 = vpop.f32.mrb[25].mxu0  ;;  %v3433_v14 = vpop.f32.mrb[25].mxu1 }
 0x197   : > { %v3386_v15 = vadd.f32 %v3385_v12, %v3384_v9  ;;  %v3434_v16 = vadd.f32 %v3433_v14, %v3432_v10  ;;  %v3387_v17 = vpop.f32.mrb[26].mxu0  ;;  %v3435_v18 = vpop.f32.mrb[26].mxu1 }
 0x198   : > { %v3388_v20 = vpop.f32.mrb[27].mxu0  ;;  %v3436_v22 = vpop.f32.mrb[27].mxu1 }
 0x199   : > { %v1311_v23 = vadd.f32 %v3386_v15, %v798_v11  ;;  %v1327_v24 = vadd.f32 %v3434_v16, %v814_v13  ;;  %v3389_v25 = vadd.f32 %v3388_v20, %v3387_v17  ;;  %v3437_v26 = vadd.f32 %v3436_v22, %v3435_v18 }
 0x19b   : > { %1343 = vst [vmem:[#allocation2 + $0x60] sm:$0xff] %v1311_v23  ;;  %1359 = vst [vmem:[#allocation2 + $0xe0] sm:$0xff] %v1327_v24  ;;  %v1312_v27 = vadd.f32 %v3389_v25, %v799_v19  ;;  %v1328_v28 = vadd.f32 %v3437_v26, %v815_v21 }
 0x19d   : > { %1344 = vst [vmem:[#allocation2 + $0x68] sm:$0xff] %v1312_v27  ;;  %1360 = vst [vmem:[#allocation2 + $0xe8] sm:$0xff] %v1328_v28  ;;  %v3390_v29 = vpop.f32.mrb[28].mxu0  ;;  %v3438_v30 = vpop.f32.mrb[28].mxu1 }
 0x19e   : > { %v3391_v32 = vpop.f32.mrb[29].mxu0  ;;  %v3439_v34 = vpop.f32.mrb[29].mxu1 }
 0x19f   : > { %v3392_v35 = vadd.f32 %v3391_v32, %v3390_v29  ;;  %v3440_v36 = vadd.f32 %v3439_v34, %v3438_v30  ;;  %v3393_v37 = vpop.f32.mrb[30].mxu0  ;;  %v3441_v38 = vpop.f32.mrb[30].mxu1 }
 0x1a0   : > { %v3394_v40 = vpop.f32.mrb[31].mxu0  ;;  %v3442_v42 = vpop.f32.mrb[31].mxu1 }
 0x1a1   : > { %v1313_v43 = vadd.f32 %v3392_v35, %v800_v31  ;;  %v1329_v44 = vadd.f32 %v3440_v36, %v816_v33  ;;  %v3395_v45 = vadd.f32 %v3394_v40, %v3393_v37  ;;  %v3443_v46 = vadd.f32 %v3442_v42, %v3441_v38 }
 0x1a3   : > { %1345 = vst [vmem:[#allocation2 + $0x70] sm:$0xff] %v1313_v43  ;;  %1361 = vst [vmem:[#allocation2 + $0xf0] sm:$0xff] %v1329_v44  ;;  %v1314_v47 = vadd.f32 %v3395_v45, %v801_v39  ;;  %v1330_v48 = vadd.f32 %v3443_v46, %v817_v41 }
 0x1a5   : > { %1346 = vst [vmem:[#allocation2 + $0x78] sm:$0xff] %v1314_v47  ;;  %1362 = vst [vmem:[#allocation2 + $0xf8] sm:$0xff] %v1330_v48 }
 0x1a6 PF: > { %p3070_p11 = scmp.ne.s32.totalorder %s3842_s20, 1 }
 0x1a8   : > { %1366 = sbr.rel (%p3070_p11) target bundleno = 893 (0x37d), region = 110 }
 0x1af   : > { %v1441_v49 = vld [vmem:[%s4089_s10 + $0x10] sm:$0xff]  ;;  %v1439_v50 = vld [vmem:[%s4089_s10] sm:$0xff]  ;;  %v3863_v51 = vmov 0   ;;  %v1442_v52 = vld [vmem:[%s4089_s10 + $0x18] sm:$0xff]  ;;  %s4871_s18 = sld [smem:[#allocation32_spill]]  ;;  %s4883_s26 = sld [smem:[#allocation33_spill]] }
 0x1b0   : > { %3761 = vset.pattern.permute.xlu1 %v3863_v51  ;;  %3760 = vset.pattern.permute.xlu0 %v3863_v51  ;;  %v1440_v53 = vld [vmem:[%s4089_s10 + $0x8] sm:$0xff]  ;;  %v1443_v55 = vld [vmem:[%s4089_s10 + $0x20] sm:$0xff]  ;;  %v1446_v56 = vld [vmem:[%s4089_s10 + $0x38] sm:$0xff] }
 0x1b1   : > { %1483 = vperm.xlu1 %3761, %v1441_v49   ;;  %1473 = vperm.xlu0 %3760, %v1439_v50   ;;  %v1444_v54 = vld [vmem:[%s4089_s10 + $0x28] sm:$0xff]  ;;  %v1445_v57 = vld [vmem:[%s4089_s10 + $0x30] sm:$0xff]  ;;  %v3762_v58 = vld [vmem:[%s4845_s8] sm:$0xff]  }
 0x1b2   : > { %v3763_v59 = vld [vmem:[%s4846_s9] sm:$0xff]   ;;  %v1448_v60 = vld [vmem:[%s4089_s10 + $0x48] sm:$0xff]  ;;  %3540 = vmatprep.subr.bf16.mxu0 %v3762_v58  ;;  %v3766_v0 = vld [vmem:[%s4845_s8 + $0x10] sm:$0xff]  }
 0x1b3   : > { %v3764_v61 = vld [vmem:[%s4845_s8 + $0x8] sm:$0xff]   ;;  %v1447_v63 = vld [vmem:[%s4089_s10 + $0x40] sm:$0xff]  ;;  %3541 = vmatpush3.bf16.msra.mxu0 %v3762_v58  ;;  %3492 = vmatprep.subr.bf16.mxu1 %v3763_v59  ;;  %v3767_v1 = vld [vmem:[%s4846_s9 + $0x10] sm:$0xff]  }
 0x1b4   : > { %v3765_v62 = vld [vmem:[%s4846_s9 + $0x8] sm:$0xff]   ;;  %3493 = vmatpush3.bf16.msra.mxu1 %v3763_v59  ;;  %3542 = vmatprep.subr.bf16.mxu0 %v3764_v61  ;;  %v1450_v2 = vld [vmem:[%s4089_s10 + $0x58] sm:$0xff]  ;;  %v1449_v3 = vld [vmem:[%s4089_s10 + $0x50] sm:$0xff] }
 0x1b5   : > { %1488 = vperm.xlu1 %3761, %v1442_v52   ;;  %1478 = vperm.xlu0 %3760, %v1440_v53   ;;  %v3768_v4 = vld [vmem:[%s4845_s8 + $0x18] sm:$0xff]   ;;  %v1452_v6 = vld [vmem:[%s4089_s10 + $0x68] sm:$0xff]  ;;  %v1451_v7 = vld [vmem:[%s4089_s10 + $0x60] sm:$0xff] }
 0x1b6   : > { %3494 = vmatprep.subr.bf16.mxu1 %v3765_v62  ;;  %v3769_v5 = vld [vmem:[%s4846_s9 + $0x18] sm:$0xff]   ;;  %v3770_v8 = vld [vmem:[%s4845_s8 + $0x20] sm:$0xff]   ;;  %v1453_v11 = vld [vmem:[%s4089_s10 + $0x70] sm:$0xff] }
 0x1b7   : > { %3543 = vmatpush3.bf16.msra.mxu0 %v3764_v61  ;;  %v3771_v9 = vld [vmem:[%s4846_s9 + $0x20] sm:$0xff]   ;;  %v1454_v10 = vld [vmem:[%s4089_s10 + $0x78] sm:$0xff]  ;;  %v3772_v12 = vld [vmem:[%s4845_s8 + $0x28] sm:$0xff]  }
 0x1b8   : > { %3495 = vmatpush3.bf16.msra.mxu1 %v3765_v62  ;;  %3544 = vmatprep.subr.bf16.mxu0 %v3766_v0  ;;  %v4217_v13 = vld [vmem:[%s4843_s6] ss:$0 sm:$0xff]  ;;  %v3773_v15 = vld [vmem:[%s4846_s9 + $0x28] sm:$0xff]   ;;  %v3303_v25 = vld [vmem:[%s4084_s1 + $0x10] sm:$0xff]  }
 0x1b9   : > { %1498 = vperm.xlu1 %3761, %v1444_v54   ;;  %1493 = vperm.xlu0 %3760, %v1443_v55   ;;  %v3159_v14 = vld [vmem:[%s4084_s1] sm:$0xff]   ;;  %v3302_v18 = vld [vmem:[%s4084_s1 + $0x8] sm:$0xff]   ;;  %v3774_v27 = vld [vmem:[%s4845_s8 + $0x30] sm:$0xff]   ;;  %v3168_v28 = vunpack.c.l.bf16 %v3303_v25  ;;  %v3169_v32 = vunpack.c.h.bf16 %v3303_v25 }
 0x1ba   : > { %3496 = vmatprep.subr.bf16.mxu1 %v3767_v1  ;;  %v3160_v16 = vunpack.c.l.bf16 %v3159_v14  ;;  %v3161_v17 = vunpack.c.h.bf16 %v3159_v14  ;;  %v1456_v19 = vld [vmem:[%s4089_s10 + $0x88] sm:$0xff]  ;;  %v1455_v20 = vld [vmem:[%s4089_s10 + $0x80] sm:$0xff]  ;;  %v3164_v23 = vunpack.c.l.bf16 %v3302_v18  ;;  %v3165_v24 = vunpack.c.h.bf16 %v3302_v18  ;;  %v3775_v29 = vld [vmem:[%s4846_s9 + $0x30] sm:$0xff]  }
 0x1bb   : > { %3545 = vmatpush3.bf16.msra.mxu0 %v3766_v0  ;;  %v4232_v26 = vld [vmem:[%s4871_s18] ss:$0 sm:$0xff]  ;;  %v1458_v33 = vld [vmem:[%s4089_s10 + $0x98] sm:$0xff]  ;;  %v1457_v34 = vld [vmem:[%s4089_s10 + $0x90] sm:$0xff]  ;;  %v1769_v39 = vmul.f32 %v3168_v28, %v4217_v13  ;;  %v1770_v40 = vmul.f32 %v3169_v32, %v4217_v13 }
 0x1bc   : > { %3497 = vmatpush3.bf16.msra.mxu1 %v3767_v1  ;;  %3546 = vmatprep.subr.bf16.mxu0 %v3768_v4  ;;  %v1765_v21 = vmul.f32 %v3160_v16, %v4217_v13  ;;  %v1766_v22 = vmul.f32 %v3161_v17, %v4217_v13  ;;  %v1767_v36 = vmul.f32 %v3164_v23, %v4217_v13  ;;  %v3776_v38 = vld [vmem:[%s4845_s8 + $0x38] sm:$0xff]   ;;  %v3305_v43 = vld [vmem:[%s4084_s1 + $0x20] sm:$0xff]   ;;  %v1460_v44 = vld [vmem:[%s4089_s10 + $0xa8] sm:$0xff] }
 0x1bd   : > { %1508 = vperm.xlu1 %3761, %v1446_v56   ;;  %1503 = vperm.xlu0 %3760, %v1445_v57   ;;  %v1768_v37 = vmul.f32 %v3165_v24, %v4217_v13  ;;  %v3304_v41 = vld [vmem:[%s4084_s1 + $0x18] sm:$0xff]   ;;  %v1459_v45 = vld [vmem:[%s4089_s10 + $0xa0] sm:$0xff]  ;;  %v1801_v50 = vadd.f32 %v4232_v26, %v1769_v39  ;;  %v1802_v51 = vadd.f32 %v4232_v26, %v1770_v40  ;;  %v3176_v52 = vunpack.c.l.bf16 %v3305_v43  ;;  %v1461_v55 = vld [vmem:[%s4089_s10 + $0xb0] sm:$0xff] }
 0x1be   : > { %3498 = vmatprep.subr.bf16.mxu1 %v3769_v5  ;;  %v1797_v30 = vadd.f32 %v4232_v26, %v1765_v21  ;;  %v1798_v31 = vadd.f32 %v4232_v26, %v1766_v22  ;;  %v3777_v42 = vld [vmem:[%s4846_s9 + $0x38] sm:$0xff]   ;;  %v1799_v46 = vadd.f32 %v4232_v26, %v1767_v36  ;;  %v3172_v48 = vunpack.c.l.bf16 %v3304_v41  ;;  %v3306_v62 = vld [vmem:[%s4084_s1 + $0x28] sm:$0xff]   ;;  %v1463_v1 = vld [vmem:[%s4089_s10 + $0xc0] sm:$0xff] }
 0x1bf   : > { %3547 = vmatpush3.bf16.msra.mxu0 %v3768_v4  ;;  %v1800_v47 = vadd.f32 %v4232_v26, %v1768_v37  ;;  %v3173_v49 = vunpack.c.h.bf16 %v3304_v41  ;;  %v3177_v53 = vunpack.c.h.bf16 %v3305_v43  ;;  %v1462_v54 = vld [vmem:[%s4089_s10 + $0xb8] sm:$0xff]  ;;  %v1831_v59 = vpack.c.bf16 %v1802_v51, %v1801_v50  ;;  %v1464_v0 = vld [vmem:[%s4089_s10 + $0xc8] sm:$0xff]  ;;  %v1467_v22 = vld [vmem:[%s4089_s10 + $0xe0] sm:$0xff] }
 0x1c0   : > { %3499 = vmatpush3.bf16.msra.mxu1 %v3769_v5  ;;  %3548 = vmatprep.subr.bf16.mxu0 %v3770_v8  ;;  %v1829_v35 = vpack.c.bf16 %v1798_v31, %v1797_v30  ;;  %v1771_v57 = vmul.f32 %v3172_v48, %v4217_v13  ;;  %v3180_v4 = vunpack.c.l.bf16 %v3306_v62  ;;  %v3181_v5 = vunpack.c.h.bf16 %v3306_v62  ;;  %v1468_v21 = vld [vmem:[%s4089_s10 + $0xe8] sm:$0xff]  ;;  %v1470_v32 = vld [vmem:[%s4089_s10 + $0xf8] sm:$0xff]  ;;  %v3311_v41 = vld [vmem:[%s4084_s1 + $0x50] sm:$0xff]  }
 0x1c1   : > { %1518 = vperm.xlu1 %3761, %v1448_v60   ;;  %1513 = vperm.xlu0 %3760, %v1447_v63   ;;  %v1830_v56 = vpack.c.bf16 %v1800_v47, %v1799_v46  ;;  %v1772_v58 = vmul.f32 %v3173_v49, %v4217_v13  ;;  %v1773_v60 = vmul.f32 %v3176_v52, %v4217_v13  ;;  %v3307_v63 = vld [vmem:[%s4084_s1 + $0x30] sm:$0xff]   ;;  %v3310_v40 = vld [vmem:[%s4084_s1 + $0x48] sm:$0xff]   ;;  %v3200_v48 = vunpack.c.l.bf16 %v3311_v41 }
 0x1c2   : > { %3500 = vmatprep.subr.bf16.mxu1 %v3771_v9  ;;  %3556 = vmatprep.mubr.bf16.mxu0 %v1829_v35  ;;  %v1774_v61 = vmul.f32 %v3177_v53, %v4217_v13  ;;  %v1775_v14 = vmul.f32 %v3180_v4, %v4217_v13  ;;  %v3201_v49 = vunpack.c.h.bf16 %v3311_v41  ;;  %v1372_v41 = vld [vmem:[#allocation2 + $0x18] sm:$0xff] }
 0x1c3   : > { %3549 = vmatpush3.bf16.msra.mxu0 %v3770_v8  ;;  %v3184_v8 = vunpack.c.l.bf16 %v3307_v63 }
 0x1c4   : > { %3501 = vmatpush3.bf16.msra.mxu1 %v3771_v9  ;;  %3550 = vmatprep.subr.bf16.mxu0 %v3772_v12  ;;  %v3185_v9 = vunpack.c.h.bf16 %v3307_v63  ;;  %v1807_v23 = vadd.f32 %v4232_v26, %v1775_v14 }
 0x1c5   : > { %1528 = vperm.xlu1 %3761, %v1450_v2   ;;  %1523 = vperm.xlu0 %3760, %v1449_v3   ;;  %v1803_v2 = vadd.f32 %v4232_v26, %v1771_v57  ;;  %v1804_v3 = vadd.f32 %v4232_v26, %v1772_v58  ;;  %v1777_v17 = vmul.f32 %v3184_v8, %v4217_v13  ;;  %v3313_v57 = vld [vmem:[%s4084_s1 + $0x60] sm:$0xff]   ;;  %v3314_v8 = vld [vmem:[%s4084_s1 + $0x68] sm:$0xff]  }
 0x1c6   : > { %3502 = vmatprep.subr.bf16.mxu1 %v3773_v15  ;;  %v1778_v18 = vmul.f32 %v3185_v9, %v4217_v13  ;;  %v3315_v9 = vld [vmem:[%s4084_s1 + $0x70] sm:$0xff]   ;;  %v3213_v14 = vunpack.c.h.bf16 %v3314_v8 }
 0x1c7   : > { %3551 = vmatpush3.bf16.msra.mxu0 %v3772_v12  ;;  %v1832_v12 = vpack.c.bf16 %v1804_v3, %v1803_v2  ;;  %v1809_v28 = vadd.f32 %v4232_v26, %v1777_v17  ;;  %v3216_v17 = vunpack.c.l.bf16 %v3315_v9 }
 0x1c8   : > { %3503 = vmatpush3.bf16.msra.mxu1 %v3773_v15  ;;  %3552 = vmatprep.subr.bf16.mxu0 %v3774_v27  ;;  %v1776_v15 = vmul.f32 %v3181_v5, %v4217_v13 }
 0x1c9   : > { %1538 = vperm.xlu1 %3761, %v1452_v6   ;;  %1533 = vperm.xlu0 %3760, %v1451_v7   ;;  %v1805_v6 = vadd.f32 %v4232_v26, %v1773_v60  ;;  %v1806_v7 = vadd.f32 %v4232_v26, %v1774_v61 }
 0x1ca   : > { %3504 = vmatprep.subr.bf16.mxu1 %v3775_v29  ;;  %v1808_v24 = vadd.f32 %v4232_v26, %v1776_v15 }
 0x1cb   : > { %3553 = vmatpush3.bf16.msra.mxu0 %v3774_v27  ;;  %v1833_v16 = vpack.c.bf16 %v1806_v7, %v1805_v6 }
 0x1cc   : > { %3505 = vmatpush3.bf16.msra.mxu1 %v3775_v29  ;;  %3554 = vmatprep.subr.bf16.mxu0 %v3776_v38  ;;  %v1810_v29 = vadd.f32 %v4232_v26, %v1778_v18  ;;  %v3217_v18 = vunpack.c.h.bf16 %v3315_v9 }
 0x1cd   : > { %1548 = vperm.xlu1 %3761, %v1454_v10   ;;  %1543 = vperm.xlu0 %3760, %v1453_v11   ;;  %v1466_v10 = vld [vmem:[%s4089_s10 + $0xd8] sm:$0xff]  ;;  %v1465_v11 = vld [vmem:[%s4089_s10 + $0xd0] sm:$0xff] }
 0x1ce   : > { %3506 = vmatprep.subr.bf16.mxu1 %v3777_v42  ;;  %v1835_v37 = vpack.c.bf16 %v1810_v29, %v1809_v28 }
 0x1cf   : > { %3555 = vmatpush3.bf16.msra.mxu0 %v3776_v38 }
 0x1d0   : > { %3507 = vmatpush3.bf16.msra.mxu1 %v3777_v42 }
 0x1d1   : > { %1558 = vperm.xlu1 %3761, %v1456_v19   ;;  %1553 = vperm.xlu0 %3760, %v1455_v20   ;;  %v3308_v19 = vld [vmem:[%s4084_s1 + $0x38] sm:$0xff]   ;;  %v3309_v20 = vld [vmem:[%s4084_s1 + $0x40] sm:$0xff]  }
 0x1d2   : > { %3557 = vmatmul.mubr.bf16.vlgmr.msra.gmra.mrb[0].mxu0 %v1830_v56  ;;  %v3188_v25 = vunpack.c.l.bf16 %v3308_v19  ;;  %v3189_v27 = vunpack.c.h.bf16 %v3308_v19  ;;  %v3192_v30 = vunpack.c.l.bf16 %v3309_v20  ;;  %v3193_v31 = vunpack.c.h.bf16 %v3309_v20  ;;  %v3312_v56 = vld [vmem:[%s4084_s1 + $0x58] sm:$0xff]  }
 0x1d3   : > { %3560 = vmatprep.mubr.bf16.mxu0 %v1831_v59  ;;  %v3204_v60 = vunpack.c.l.bf16 %v3312_v56  ;;  %v3205_v61 = vunpack.c.h.bf16 %v3312_v56 }
 0x1d4   : > { %v1779_v35 = vmul.f32 %v3188_v25, %v4217_v13  ;;  %v1780_v36 = vmul.f32 %v3189_v27, %v4217_v13  ;;  %v1781_v38 = vmul.f32 %v3192_v30, %v4217_v13  ;;  %v1782_v39 = vmul.f32 %v3193_v31, %v4217_v13  ;;  %v3316_v25 = vld [vmem:[%s4084_s1 + $0x78] sm:$0xff]   ;;  %s2350_s1 = sld [smem:[#allocation6]] }
 0x1d5   : > { %1568 = vperm.xlu1 %3761, %v1458_v33   ;;  %1563 = vperm.xlu0 %3760, %v1457_v34   ;;  %v1469_v33 = vld [vmem:[%s4089_s10 + $0xf0] sm:$0xff]  ;;  %v1834_v34 = vpack.c.bf16 %v1808_v24, %v1807_v23  ;;  %v1787_v3 = vmul.f32 %v3204_v60, %v4217_v13  ;;  %v1788_v4 = vmul.f32 %v3205_v61, %v4217_v13  ;;  %v3220_v29 = vunpack.c.l.bf16 %v3316_v25  ;;  %s3090_s10 = sshll.u32 %s3846_s21, 8 }
 0x1d6   : > { %v1811_v42 = vadd.f32 %v4232_v26, %v1779_v35  ;;  %v1812_v43 = vadd.f32 %v4232_v26, %v1780_v36  ;;  %v1813_v46 = vadd.f32 %v4232_v26, %v1781_v38  ;;  %v1814_v47 = vadd.f32 %v4232_v26, %v1782_v39 }
 0x1d7   : > { %v1793_v23 = vmul.f32 %v3216_v17, %v4217_v13  ;;  %v1794_v24 = vmul.f32 %v3217_v18, %v4217_v13  ;;  %v3221_v30 = vunpack.c.h.bf16 %v3316_v25 }
 0x1d8   : > { %v1836_v50 = vpack.c.bf16 %v1812_v43, %v1811_v42  ;;  %v1837_v53 = vpack.c.bf16 %v1814_v47, %v1813_v46  ;;  %v1410_v47 = vmul.f32 %v4217_v13, %v1372_v41 }
 0x1d9   : > { %1578 = vperm.xlu1 %3761, %v1460_v44   ;;  %1573 = vperm.xlu0 %3760, %v1459_v45   ;;  %v3196_v44 = vunpack.c.l.bf16 %v3310_v40  ;;  %v3197_v45 = vunpack.c.h.bf16 %v3310_v40  ;;  %v1825_v31 = vadd.f32 %v4232_v26, %v1793_v23  ;;  %v1796_v35 = vmul.f32 %v3221_v30, %v4217_v13  ;;  %v1371_v40 = vld [vmem:[#allocation2 + $0x10] sm:$0xff] }
 0x1da   : > { %3561 = vmatmul.mubr.bf16.gmra.mrb[4].mxu0 %v1832_v12  ;;  %v3212_v12 = vunpack.c.l.bf16 %v3314_v8  ;;  %v1409_v46 = vmul.f32 %v4217_v13, %v1371_v40 }
 0x1db   : > { %3564 = vmatprep.mubr.bf16.mxu0 %v1833_v16  ;;  %v1783_v51 = vmul.f32 %v3196_v44, %v4217_v13  ;;  %v1784_v52 = vmul.f32 %v3197_v45, %v4217_v13  ;;  %v1828_v38 = vadd.f32 %v4232_v26, %v1796_v35  ;;  %v1369_v44 = vld [vmem:[#allocation2] sm:$0xff]  ;;  %v1370_v45 = vld [vmem:[#allocation2 + $0x8] sm:$0xff] }
 0x1dc   : > { %v1791_v20 = vmul.f32 %v3212_v12, %v4217_v13 }
 0x1dd   : > { %1588 = vperm.xlu1 %3761, %v1462_v54   ;;  %1583 = vperm.xlu0 %3760, %v1461_v55   ;;  %v1785_v54 = vmul.f32 %v3200_v48, %v4217_v13  ;;  %v1786_v55 = vmul.f32 %v3201_v49, %v4217_v13  ;;  %v1815_v58 = vadd.f32 %v4232_v26, %v1783_v51  ;;  %v1373_v51 = vld [vmem:[#allocation2 + $0x20] sm:$0xff] }
 0x1de   : > { %v1816_v59 = vadd.f32 %v4232_v26, %v1784_v52  ;;  %v1823_v27 = vadd.f32 %v4232_v26, %v1791_v20  ;;  %v1407_v52 = vmul.f32 %v4217_v13, %v1369_v44 }
 0x1df   : > { %v1817_v62 = vadd.f32 %v4232_v26, %v1785_v54  ;;  %v1818_v63 = vadd.f32 %v4232_v26, %v1786_v55 }
 0x1e0   : > { %v1838_v2 = vpack.c.bf16 %v1816_v59, %v1815_v58  ;;  %v1411_v59 = vmul.f32 %v4217_v13, %v1373_v51 }
 0x1e1   : > { %1598 = vperm.xlu1 %3761, %v1464_v0   ;;  %1593 = vperm.xlu0 %3760, %v1463_v1   ;;  %v3208_v0 = vunpack.c.l.bf16 %v3313_v57  ;;  %v3209_v1 = vunpack.c.h.bf16 %v3313_v57  ;;  %v1839_v5 = vpack.c.bf16 %v1818_v63, %v1817_v62 }
 0x1e2   : > { %3565 = vmatmul.mubr.bf16.gmra.mrb[8].mxu0 %v1834_v34  ;;  %v1795_v34 = vmul.f32 %v3220_v29, %v4217_v13 }
 0x1e3   : > { %3568 = vmatprep.mubr.bf16.mxu0 %v1835_v37  ;;  %v1789_v6 = vmul.f32 %v3208_v0, %v4217_v13  ;;  %v1790_v7 = vmul.f32 %v3209_v1, %v4217_v13 }
 0x1e4   : > { %v1827_v37 = vadd.f32 %v4232_v26, %v1795_v34 }
 0x1e5   : > { %1608 = vperm.xlu1 %3761, %v1466_v10   ;;  %1603 = vperm.xlu0 %3760, %v1465_v11   ;;  %v1819_v10 = vadd.f32 %v4232_v26, %v1787_v3  ;;  %v1820_v11 = vadd.f32 %v4232_v26, %v1788_v4  ;;  %v1821_v15 = vadd.f32 %v4232_v26, %v1789_v6  ;;  %v1375_v3 = vld [vmem:[#allocation2 + $0x30] sm:$0xff] }
 0x1e6   : > { %v1822_v16 = vadd.f32 %v4232_v26, %v1790_v7  ;;  %v1844_v39 = vpack.c.bf16 %v1828_v38, %v1827_v37  ;;  %v1382_v38 = vld [vmem:[#allocation2 + $0x68] sm:$0xff] }
 0x1e7   : > { %v1840_v19 = vpack.c.bf16 %v1820_v11, %v1819_v10  ;;  %v1413_v11 = vmul.f32 %v4217_v13, %v1375_v3 }
 0x1e9   : > { %1618 = vperm.xlu1 %3761, %v1468_v21   ;;  %1613 = vperm.xlu0 %3760, %v1467_v22   ;;  %v1792_v21 = vmul.f32 %v3213_v14, %v4217_v13  ;;  %v1841_v22 = vpack.c.bf16 %v1822_v16, %v1821_v15  ;;  %v1378_v15 = vld [vmem:[#allocation2 + $0x48] sm:$0xff]  ;;  %v1377_v16 = vld [vmem:[#allocation2 + $0x40] sm:$0xff] }
 0x1ea   : > { %3569 = vmatmul.mubr.bf16.gmra.mrb[12].mxu0 %v1836_v50  ;;  %v1374_v50 = vld [vmem:[#allocation2 + $0x28] sm:$0xff]  ;;  %v1415_v23 = vmul.f32 %v4217_v13, %v1377_v16 }
 0x1eb   : > { %3572 = vmatprep.mubr.bf16.mxu0 %v1837_v53  ;;  %v1824_v28 = vadd.f32 %v4232_v26, %v1792_v21  ;;  %v1408_v53 = vmul.f32 %v4217_v13, %v1370_v45  ;;  %v1412_v58 = vmul.f32 %v4217_v13, %v1374_v50  ;;  %v1420_v45 = vmul.f32 %v4217_v13, %v1382_v38  ;;  %v1383_v50 = vld [vmem:[#allocation2 + $0x70] sm:$0xff] }
 0x1ed   : > { %1628 = vperm.xlu1 %3761, %v1470_v32   ;;  %1623 = vperm.xlu0 %3760, %v1469_v33   ;;  %v1826_v32 = vadd.f32 %v4232_v26, %v1794_v24  ;;  %v1842_v33 = vpack.c.bf16 %v1824_v28, %v1823_v27  ;;  %v1380_v27 = vld [vmem:[#allocation2 + $0x58] sm:$0xff]  ;;  %v1379_v28 = vld [vmem:[#allocation2 + $0x50] sm:$0xff] }
 0x1ee   : > { %v1418_v34 = vmul.f32 %v4217_v13, %v1380_v27  ;;  %v1417_v35 = vmul.f32 %v4217_v13, %v1379_v28 }
 0x1ef   : > { %v1843_v36 = vpack.c.bf16 %v1826_v32, %v1825_v31 }
 0x1f2   : > { %3573 = vmatmul.mubr.bf16.gmra.mrb[16].mxu0 %v1838_v2  ;;  %v1376_v2 = vld [vmem:[#allocation2 + $0x38] sm:$0xff] }
 0x1f3   : > { %3576 = vmatprep.mubr.bf16.mxu0 %v1839_v5  ;;  %v1414_v10 = vmul.f32 %v4217_v13, %v1376_v2 }
 0x1fa   : > { %3577 = vmatmul.mubr.bf16.gmra.mrb[20].mxu0 %v1840_v19 }
 0x1fb   : > { %3580 = vmatprep.mubr.bf16.mxu0 %v1841_v22  ;;  %v1416_v22 = vmul.f32 %v4217_v13, %v1378_v15 }
 0x202   : > { %3581 = vmatmul.mubr.bf16.gmra.mrb[24].mxu0 %v1842_v33 }
 0x203   : > { %3584 = vmatprep.mubr.bf16.mxu0 %v1843_v36 }
 0x20a   : > { %3585 = vmatmul.mubr.bf16.gmra.mrb[28].mxu0 %v1844_v39  ;;  %v1381_v39 = vld [vmem:[#allocation2 + $0x60] sm:$0xff] }
 0x230   : > { %v1484_v42 = vpop.permute.xlu1 %1483  ;;  %v1474_v43 = vpop.permute.xlu0 %1473 }
 0x231   : > { %v1639_v48 = vmul.f32 %v4232_v26, %v1484_v42  ;;  %v1637_v49 = vmul.f32 %v4232_v26, %v1474_v43 }
 0x233   : > { %v1671_v60 = vadd.f32 %v1639_v48, %v1409_v46  ;;  %v1669_v62 = vadd.f32 %v1637_v49, %v1407_v52  ;;  %v1419_v46 = vmul.f32 %v4217_v13, %v1381_v39  ;;  %v1384_v49 = vld [vmem:[#allocation2 + $0x78] sm:$0xff] }
 0x234   : > { %v1489_v54 = vpop.permute.xlu1 %1488  ;;  %v1479_v55 = vpop.permute.xlu0 %1478 }
 0x235   : > { %v1640_v56 = vmul.f32 %v4232_v26, %v1489_v54  ;;  %v1638_v57 = vmul.f32 %v4232_v26, %v1479_v55 }
 0x237   : > { %v1672_v61 = vadd.f32 %v1640_v56, %v1410_v47  ;;  %v1670_v63 = vadd.f32 %v1638_v57, %v1408_v53  ;;  %v1422_v56 = vmul.f32 %v4217_v13, %v1384_v49  ;;  %v1421_v57 = vmul.f32 %v4217_v13, %v1383_v50 }
 0x238   : > { %v1499_v0 = vpop.permute.xlu1 %1498  ;;  %v1494_v1 = vpop.permute.xlu0 %1493 }
 0x239   : > { %v1642_v4 = vmul.f32 %v4232_v26, %v1499_v0  ;;  %v1641_v5 = vmul.f32 %v4232_v26, %v1494_v1  ;;  %v1861_v6 = vpack.c.bf16 %v1670_v63, %v1669_v62  ;;  %v1862_v7 = vpack.c.bf16 %v1672_v61, %v1671_v60  ;;  %v1386_v60 = vld [vmem:[#allocation2 + $0x88] sm:$0xff]  ;;  %v1385_v61 = vld [vmem:[#allocation2 + $0x80] sm:$0xff] }
 0x23a   : > { %v1424_v3 = vmul.f32 %v4217_v13, %v1386_v60 }
 0x23b   : > { %v1674_v8 = vadd.f32 %v1642_v4, %v1412_v58  ;;  %v1673_v9 = vadd.f32 %v1641_v5, %v1411_v59  ;;  %3508 = vmatprep.mubr.bf16.mxu1 %v1861_v6  ;;  %v1423_v4 = vmul.f32 %v4217_v13, %v1385_v61 }
 0x23c   : > { %v1509_v12 = vpop.permute.xlu1 %1508  ;;  %v1504_v14 = vpop.permute.xlu0 %1503  ;;  %3509 = vmatmul.mubr.bf16.vlgmr.msra.gmra.mrb[0].mxu1 %v1862_v7  ;;  %v1388_v7 = vld [vmem:[#allocation2 + $0x98] sm:$0xff] }
 0x23d   : > { %v1644_v17 = vmul.f32 %v4232_v26, %v1509_v12  ;;  %v1643_v18 = vmul.f32 %v4232_v26, %v1504_v14  ;;  %v1863_v19 = vpack.c.bf16 %v1674_v8, %v1673_v9  ;;  %v1387_v8 = vld [vmem:[#allocation2 + $0x90] sm:$0xff]  ;;  %v1426_v15 = vmul.f32 %v4217_v13, %v1388_v7 }
 0x23e   : > { %v1425_v16 = vmul.f32 %v4217_v13, %v1387_v8 }
 0x23f   : > { %v1676_v20 = vadd.f32 %v1644_v17, %v1414_v10  ;;  %v1675_v21 = vadd.f32 %v1643_v18, %v1413_v11  ;;  %3512 = vmatprep.mubr.bf16.mxu1 %v1863_v19  ;;  %v1390_v19 = vld [vmem:[#allocation2 + $0xa8] sm:$0xff] }
 0x240   : > { %v1519_v24 = vpop.permute.xlu1 %1518  ;;  %v1514_v25 = vpop.permute.xlu0 %1513  ;;  %v1428_v27 = vmul.f32 %v4217_v13, %v1390_v19 }
 0x241   : > { %v1646_v29 = vmul.f32 %v4232_v26, %v1519_v24  ;;  %v1645_v30 = vmul.f32 %v4232_v26, %v1514_v25  ;;  %v1864_v31 = vpack.c.bf16 %v1676_v20, %v1675_v21  ;;  %v1389_v20 = vld [vmem:[#allocation2 + $0xa0] sm:$0xff] }
 0x242   : > { %v1427_v28 = vmul.f32 %v4217_v13, %v1389_v20 }
 0x243   : > { %v1678_v32 = vadd.f32 %v1646_v29, %v1416_v22  ;;  %v1677_v33 = vadd.f32 %v1645_v30, %v1415_v23 }
 0x244   : > { %v1529_v36 = vpop.permute.xlu1 %1528  ;;  %v1524_v37 = vpop.permute.xlu0 %1523  ;;  %3513 = vmatmul.mubr.bf16.gmra.mrb[4].mxu1 %v1864_v31  ;;  %v1392_v31 = vld [vmem:[#allocation2 + $0xb8] sm:$0xff] }
 0x245   : > { %v1648_v40 = vmul.f32 %v4232_v26, %v1529_v36  ;;  %v1647_v41 = vmul.f32 %v4232_v26, %v1524_v37  ;;  %v1865_v42 = vpack.c.bf16 %v1678_v32, %v1677_v33  ;;  %v1391_v32 = vld [vmem:[#allocation2 + $0xb0] sm:$0xff]  ;;  %v1430_v38 = vmul.f32 %v4217_v13, %v1392_v31 }
 0x246   : > { %v1429_v39 = vmul.f32 %v4217_v13, %v1391_v32 }
 0x247   : > { %v1680_v43 = vadd.f32 %v1648_v40, %v1418_v34  ;;  %v1679_v44 = vadd.f32 %v1647_v41, %v1417_v35  ;;  %3516 = vmatprep.mubr.bf16.mxu1 %v1865_v42  ;;  %v1394_v42 = vld [vmem:[#allocation2 + $0xc8] sm:$0xff] }
 0x248   : > { %v1539_v47 = vpop.permute.xlu1 %1538  ;;  %v1534_v48 = vpop.permute.xlu0 %1533  ;;  %v1432_v49 = vmul.f32 %v4217_v13, %v1394_v42 }
 0x249   : > { %v1650_v51 = vmul.f32 %v4232_v26, %v1539_v47  ;;  %v1649_v52 = vmul.f32 %v4232_v26, %v1534_v48  ;;  %v1866_v53 = vpack.c.bf16 %v1680_v43, %v1679_v44  ;;  %v1393_v43 = vld [vmem:[#allocation2 + $0xc0] sm:$0xff] }
 0x24a   : > { %v1431_v50 = vmul.f32 %v4217_v13, %v1393_v43 }
 0x24b   : > { %v1682_v54 = vadd.f32 %v1650_v51, %v1420_v45  ;;  %v1681_v55 = vadd.f32 %v1649_v52, %v1419_v46 }
 0x24c   : > { %v1549_v58 = vpop.permute.xlu1 %1548  ;;  %v1544_v59 = vpop.permute.xlu0 %1543  ;;  %3517 = vmatmul.mubr.bf16.gmra.mrb[8].mxu1 %v1866_v53  ;;  %v1396_v53 = vld [vmem:[#allocation2 + $0xd8] sm:$0xff] }
 0x24d   : > { %v1652_v62 = vmul.f32 %v4232_v26, %v1549_v58  ;;  %v1651_v63 = vmul.f32 %v4232_v26, %v1544_v59  ;;  %v1867_v0 = vpack.c.bf16 %v1682_v54, %v1681_v55  ;;  %v1395_v54 = vld [vmem:[#allocation2 + $0xd0] sm:$0xff]  ;;  %v1434_v60 = vmul.f32 %v4217_v13, %v1396_v53 }
 0x24e   : > { %v1433_v61 = vmul.f32 %v4217_v13, %v1395_v54 }
 0x24f   : > { %v1684_v1 = vadd.f32 %v1652_v62, %v1422_v56  ;;  %v1683_v2 = vadd.f32 %v1651_v63, %v1421_v57  ;;  %3520 = vmatprep.mubr.bf16.mxu1 %v1867_v0  ;;  %v1398_v0 = vld [vmem:[#allocation2 + $0xe8] sm:$0xff] }
 0x250   : > { %v1559_v5 = vpop.permute.xlu1 %1558  ;;  %v1554_v6 = vpop.permute.xlu0 %1553  ;;  %v1436_v7 = vmul.f32 %v4217_v13, %v1398_v0 }
 0x251   : > { %v1654_v9 = vmul.f32 %v4232_v26, %v1559_v5  ;;  %v1653_v10 = vmul.f32 %v4232_v26, %v1554_v6  ;;  %v1868_v11 = vpack.c.bf16 %v1684_v1, %v1683_v2  ;;  %v1397_v1 = vld [vmem:[#allocation2 + $0xe0] sm:$0xff] }
 0x252   : > { %v1435_v8 = vmul.f32 %v4217_v13, %v1397_v1 }
 0x253   : > { %v1686_v12 = vadd.f32 %v1654_v9, %v1424_v3  ;;  %v1685_v14 = vadd.f32 %v1653_v10, %v1423_v4 }
 0x254   : > { %v1569_v17 = vpop.permute.xlu1 %1568  ;;  %v1564_v18 = vpop.permute.xlu0 %1563  ;;  %3521 = vmatmul.mubr.bf16.gmra.mrb[12].mxu1 %v1868_v11  ;;  %v1400_v11 = vld [vmem:[#allocation2 + $0xf8] sm:$0xff] }
 0x255   : > { %v1656_v21 = vmul.f32 %v4232_v26, %v1569_v17  ;;  %v1655_v22 = vmul.f32 %v4232_v26, %v1564_v18  ;;  %v1869_v23 = vpack.c.bf16 %v1686_v12, %v1685_v14  ;;  %v1399_v12 = vld [vmem:[#allocation2 + $0xf0] sm:$0xff]  ;;  %v1438_v19 = vmul.f32 %v4217_v13, %v1400_v11 }
 0x256   : > { %v1437_v20 = vmul.f32 %v4217_v13, %v1399_v12 }
 0x257   : > { %v1688_v24 = vadd.f32 %v1656_v21, %v1426_v15  ;;  %v1687_v25 = vadd.f32 %v1655_v22, %v1425_v16  ;;  %3524 = vmatprep.mubr.bf16.mxu1 %v1869_v23 }
 0x258   : > { %v1579_v29 = vpop.permute.xlu1 %1578  ;;  %v1574_v30 = vpop.permute.xlu0 %1573 }
 0x259   : > { %v1658_v33 = vmul.f32 %v4232_v26, %v1579_v29  ;;  %v1657_v34 = vmul.f32 %v4232_v26, %v1574_v30  ;;  %v1870_v35 = vpack.c.bf16 %v1688_v24, %v1687_v25 }
 0x25b   : > { %v1690_v36 = vadd.f32 %v1658_v33, %v1428_v27  ;;  %v1689_v37 = vadd.f32 %v1657_v34, %v1427_v28 }
 0x25c   : > { %v1589_v40 = vpop.permute.xlu1 %1588  ;;  %v1584_v41 = vpop.permute.xlu0 %1583  ;;  %3525 = vmatmul.mubr.bf16.gmra.mrb[16].mxu1 %v1870_v35 }
 0x25d   : > { %v1660_v44 = vmul.f32 %v4232_v26, %v1589_v40  ;;  %v1659_v45 = vmul.f32 %v4232_v26, %v1584_v41  ;;  %v1871_v46 = vpack.c.bf16 %v1690_v36, %v1689_v37 }
 0x25f   : > { %v1692_v47 = vadd.f32 %v1660_v44, %v1430_v38  ;;  %v1691_v48 = vadd.f32 %v1659_v45, %v1429_v39  ;;  %3528 = vmatprep.mubr.bf16.mxu1 %v1871_v46 }
 0x260   : > { %v1599_v51 = vpop.permute.xlu1 %1598  ;;  %v1594_v52 = vpop.permute.xlu0 %1593 }
 0x261   : > { %v1662_v55 = vmul.f32 %v4232_v26, %v1599_v51  ;;  %v1661_v56 = vmul.f32 %v4232_v26, %v1594_v52  ;;  %v1872_v57 = vpack.c.bf16 %v1692_v47, %v1691_v48 }
 0x263   : > { %v1694_v58 = vadd.f32 %v1662_v55, %v1432_v49  ;;  %v1693_v59 = vadd.f32 %v1661_v56, %v1431_v50 }
 0x264   : > { %v1609_v62 = vpop.permute.xlu1 %1608  ;;  %v1604_v63 = vpop.permute.xlu0 %1603  ;;  %3529 = vmatmul.mubr.bf16.gmra.mrb[20].mxu1 %v1872_v57 }
 0x265   : > { %v1664_v2 = vmul.f32 %v4232_v26, %v1609_v62  ;;  %v1663_v3 = vmul.f32 %v4232_v26, %v1604_v63  ;;  %v1873_v4 = vpack.c.bf16 %v1694_v58, %v1693_v59  ;;  %v4467_v63 = vstv %s3090_s10 }
 0x267   : > { %v1696_v5 = vadd.f32 %v1664_v2, %v1434_v60  ;;  %v1695_v6 = vadd.f32 %v1663_v3, %v1433_v61  ;;  %3532 = vmatprep.mubr.bf16.mxu1 %v1873_v4  ;;  %v2449_v60 = vlaneseq }
 0x268   : > { %v1619_v9 = vpop.permute.xlu1 %1618  ;;  %v1614_v10 = vpop.permute.xlu0 %1613 }
 0x269   : > { %v1666_v14 = vmul.f32 %v4232_v26, %v1619_v9  ;;  %v1665_v15 = vmul.f32 %v4232_v26, %v1614_v10  ;;  %v1874_v16 = vpack.c.bf16 %v1696_v5, %v1695_v6  ;;  %v4463_v61 = vshrl.u32 %v2449_v60, 7 }
 0x26a   : > { %v4474_v5 = vstv %s2350_s1 }
 0x26b   : > { %v1698_v17 = vadd.f32 %v1666_v14, %v1436_v7  ;;  %v1697_v18 = vadd.f32 %v1665_v15, %v1435_v8  ;;  %v2452_v62 = vadd.s32 16, %v4463_v61  ;;  %v2453_v0 = vadd.s32 24, %v4463_v61 }
 0x26c   : > { %v1629_v21 = vpop.permute.xlu1 %1628  ;;  %v1624_v22 = vpop.permute.xlu0 %1623  ;;  %3533 = vmatmul.mubr.bf16.gmra.mrb[24].mxu1 %v1874_v16  ;;  %v2451_v1 = vadd.s32 8, %v4463_v61  ;;  %v2456_v2 = vadd.s32 48, %v4463_v61  ;;  %v2454_v3 = vadd.s32 32, %v4463_v61  ;;  %v2457_v4 = vadd.s32 56, %v4463_v61 }
 0x26d   : > { %v1668_v23 = vmul.f32 %v4232_v26, %v1629_v21  ;;  %v1667_v24 = vmul.f32 %v4232_v26, %v1624_v22  ;;  %v1875_v25 = vpack.c.bf16 %v1698_v17, %v1697_v18  ;;  %v4477_v6 = vadd.s32 %v4467_v63, %v2452_v62 }
 0x26e   : > { %v2455_v7 = vadd.s32 40, %v4463_v61  ;;  %v2460_v8 = vadd.s32 80, %v4463_v61  ;;  %v4483_v9 = vadd.s32 %v4467_v63, %v4463_v61  ;;  %v4486_v10 = vadd.s32 %v4467_v63, %v2453_v0 }
 0x26f   : > { %v1700_v27 = vadd.f32 %v1668_v23, %v1438_v19  ;;  %v1699_v28 = vadd.f32 %v1667_v24, %v1437_v20  ;;  %3536 = vmatprep.mubr.bf16.mxu1 %v1875_v25  ;;  %v2458_v11 = vadd.s32 64, %v4463_v61  ;;  %v2461_v12 = vadd.s32 88, %v4463_v61 }
 0x270   : > { %v4491_v14 = vadd.s32 %v4467_v63, %v2451_v1  ;;  %v4494_v15 = vadd.s32 %v4467_v63, %v2456_v2  ;;  %v2459_v16 = vadd.s32 72, %v4463_v61  ;;  %v2464_v17 = vadd.s32 112, %v4463_v61 }
 0x271   : > { %v1876_v29 = vpack.c.bf16 %v1700_v27, %v1699_v28  ;;  %v4499_v18 = vadd.s32 %v4467_v63, %v2454_v3  ;;  %v4502_v19 = vadd.s32 %v4467_v63, %v2457_v4  ;;  %v2462_v20 = vadd.s32 96, %v4463_v61 }
 0x272   : > { %v2465_v21 = vadd.s32 120, %v4463_v61  ;;  %v4507_v22 = vadd.s32 %v4467_v63, %v2455_v7  ;;  %v4510_v23 = vadd.s32 %v4467_v63, %v2460_v8  ;;  %v2463_v24 = vadd.s32 104, %v4463_v61 }
 0x273   : > { %v2468_v25 = vadd.s32 144, %v4463_v61  ;;  %v4515_v27 = vadd.s32 %v4467_v63, %v2458_v11  ;;  %v4518_v28 = vadd.s32 %v4467_v63, %v2461_v12  ;;  %v2469_v60 = vadd.s32 152, %v4463_v61 }
 0x274   : > { %3537 = vmatmul.mubr.bf16.gmra.mrb[28].mxu1 %v1876_v29  ;;  %v2466_v29 = vadd.s32 128, %v4463_v61  ;;  %vm2517_vm0 = vcmp.lt.s32.totalorder %v4477_v6, 512  ;;  %v4524_v62 = vadd.s32 %v4467_v63, %v2459_v16  ;;  %v4527_v0 = vadd.s32 %v4467_v63, %v2464_v17 }
 0x275   : > { %v2467_v1 = vadd.s32 136, %v4463_v61  ;;  %v2472_v2 = vadd.s32 176, %v4463_v61  ;;  %vm2515_vm1 = vcmp.lt.s32.totalorder %v4483_v9, 512  ;;  %v4533_v3 = vadd.s32 %v4467_v63, %v2462_v20 }
 0x276   : > { %v4536_v4 = vadd.s32 %v4467_v63, %v2465_v21  ;;  %v2470_v7 = vadd.s32 160, %v4463_v61  ;;  %v2473_v8 = vadd.s32 184, %v4463_v61  ;;  %vm2518_vm2 = vcmp.lt.s32.totalorder %v4486_v10, 512  ;;  %v4552_v21 = vld [vmem:[%s4883_s26] ss:$0 sm:$0xff] }
 0x277   : > { %v4542_v11 = vadd.s32 %v4467_v63, %v2463_v24  ;;  %v4545_v12 = vadd.s32 %v4467_v63, %v2468_v25  ;;  %v2471_v16 = vadd.s32 168, %v4463_v61  ;;  %v2476_v17 = vadd.s32 208, %v4463_v61 }
 0x278   : > { %vm2516_vm3 = vcmp.lt.s32.totalorder %v4491_v14, 512  ;;  %v4559_v24 = vadd.s32 %v4467_v63, %v2469_v60  ;;  %v2474_v25 = vadd.s32 192, %v4463_v61  ;;  %v4573_v60 = vadd.s32 %v4467_v63, %v2470_v7 }
 0x279   : > { %vm2521_vm6 = vcmp.lt.s32.totalorder %v4494_v15, 512  ;;  %vm2519_vm7 = vcmp.lt.s32.totalorder %v4499_v18, 512  ;;  %vm2522_vm10 = vcmp.lt.s32.totalorder %v4502_v19, 512  ;;  %vm2520_vm11 = vcmp.lt.s32.totalorder %v4507_v22, 512 }
 0x27a   : > { %v4590_v7 = vadd.s32 %v4467_v63, %v2474_v25  ;;  %v2478_v25 = vadd.s32 224, %v4463_v61  ;;  %vm2523_vm14 = vcmp.lt.s32.totalorder %v4515_v27, 512 }
 0x27c   : > { %4886 = vst [vmem:[#allocation27_spill] sm:$0xff] %v4590_v7 }
 0x2a5   : > { %v4399_v30 = vpop.f32.mrb[0].mxu0 }
 0x2a6   : > { %v4401_v31 = vpop.f32.mrb[1].mxu0 }
 0x2a7   : > { %v4403_v32 = vpop.f32.mrb[2].mxu0 }
 0x2a8   : > { %v4405_v13 = vpop.f32.mrb[3].mxu0 }
 0x2ad   : > { %v4407_v33 = vpop.f32.mrb[4].mxu0 }
 0x2ae   : > { %v4409_v34 = vpop.f32.mrb[5].mxu0 }
 0x2af   : > { %v4411_v35 = vpop.f32.mrb[6].mxu0 }
 0x2b0   : > { %v4413_v26 = vpop.f32.mrb[7].mxu0 }
 0x2b5   : > { %v4415_v36 = vpop.f32.mrb[8].mxu0 }
 0x2b6   : > { %v4417_v37 = vpop.f32.mrb[9].mxu0 }
 0x2b7   : > { %v4419_v38 = vpop.f32.mrb[10].mxu0 }
 0x2b8   : > { %v4421_v39 = vpop.f32.mrb[11].mxu0 }
 0x2bd   : > { %v4423_v40 = vpop.f32.mrb[12].mxu0 }
 0x2be   : > { %v4425_v41 = vpop.f32.mrb[13].mxu0 }
 0x2bf   : > { %v4427_v42 = vpop.f32.mrb[14].mxu0 }
 0x2c0   : > { %v4429_v43 = vpop.f32.mrb[15].mxu0 }
 0x2c5   : > { %v4431_v44 = vpop.f32.mrb[16].mxu0 }
 0x2c6   : > { %v4433_v45 = vpop.f32.mrb[17].mxu0 }
 0x2c7   : > { %v4435_v46 = vpop.f32.mrb[18].mxu0 }
 0x2c8   : > { %v4437_v47 = vpop.f32.mrb[19].mxu0 }
 0x2cd   : > { %v4439_v48 = vpop.f32.mrb[20].mxu0 }
 0x2ce   : > { %v4441_v49 = vpop.f32.mrb[21].mxu0 }
 0x2cf   : > { %4872 = vst [vmem:[#allocation14_spill] sm:$0xff] %v4441_v49  ;;  %v4443_v50 = vpop.f32.mrb[22].mxu0  ;;  %v4585_v49 = vadd.s32 %v4467_v63, %v2476_v17 }
 0x2d0   : > { %4873 = vst [vmem:[#allocation15_spill] sm:$0xff] %v4443_v50  ;;  %v4445_v51 = vpop.f32.mrb[23].mxu0 }
 0x2d1   : > { %4874 = vst [vmem:[#allocation16_spill] sm:$0xff] %v4445_v51  ;;  %v4576_v51 = vadd.s32 %v4467_v63, %v2473_v8  ;;  %4885 = vst [vmem:[#allocation26_spill] sm:$0xff] %v4585_v49 }
 0x2d5   : > { %v4447_v52 = vpop.f32.mrb[24].mxu0 }
 0x2d6   : > { %4875 = vst [vmem:[#allocation17_spill] sm:$0xff] %v4447_v52  ;;  %v4449_v53 = vpop.f32.mrb[25].mxu0 }
 0x2d7   : > { %4876 = vst [vmem:[#allocation18_spill] sm:$0xff] %v4449_v53  ;;  %v4451_v54 = vpop.f32.mrb[26].mxu0  ;;  %v2475_v53 = vadd.s32 200, %v4463_v61 }
 0x2d8   : > { %4877 = vst [vmem:[#allocation19_spill] sm:$0xff] %v4451_v54  ;;  %v4453_v55 = vpop.f32.mrb[27].mxu0  ;;  %v4568_v54 = vadd.s32 %v4467_v63, %v2472_v2  ;;  %v4582_v2 = vadd.s32 %v4467_v63, %v2471_v16 }
 0x2d9   : > { %4878 = vst [vmem:[#allocation20_spill] sm:$0xff] %v4453_v55  ;;  %v4565_v55 = vadd.s32 %v4467_v63, %v2467_v1 }
 0x2da   : > { %4884 = vst [vmem:[#allocation25_spill] sm:$0xff] %v4582_v2 }
 0x2dd   : > { %v4455_v56 = vpop.f32.mrb[28].mxu0 }
 0x2de   : > { %4879 = vst [vmem:[#allocation21_spill] sm:$0xff] %v4455_v56  ;;  %v4457_v57 = vpop.f32.mrb[29].mxu0 }
 0x2df   : > { %4880 = vst [vmem:[#allocation22_spill] sm:$0xff] %v4457_v57  ;;  %v4459_v58 = vpop.f32.mrb[30].mxu0 }
 0x2e0   : > { %4881 = vst [vmem:[#allocation23_spill] sm:$0xff] %v4459_v58  ;;  %v4461_v59 = vpop.f32.mrb[31].mxu0  ;;  %v2477_v58 = vadd.s32 216, %v4463_v61 }
 0x2e1   : > { %4882 = vst [vmem:[#allocation24_spill] sm:$0xff] %v4461_v59  ;;  %v4556_v59 = vadd.s32 %v4467_v63, %v2466_v29 }
 0x2e2   : > { %v4593_v8 = vadd.s32 %v4467_v63, %v2477_v58 }
 0x2e4   : > { %4887 = vst [vmem:[#allocation28_spill] sm:$0xff] %v4593_v8 }
 0x30f   : > { %v3510_v20 = vpop.f32.mrb[0].mxu1 }
 0x310   : > { %v2193_v57 = vadd.f32 %v4399_v30, %v3510_v20  ;;  %v1975_v56 = vpop.f32.mrb[1].mxu1  ;;  %v2480_v30 = vadd.s32 240, %v4463_v61 }
 0x311   : > { %v2185_v29 = vadd.f32 %v4401_v31, %v1975_v56  ;;  %v3511_v52 = vpop.f32.mrb[2].mxu1 }
 0x312   : > { %v2320_v20 = vadd.f32 %v4552_v21, %v2193_v57  ;;  %v2196_v1 = vadd.f32 %v4403_v32, %v3511_v52  ;;  %v1978_v50 = vpop.f32.mrb[3].mxu1  ;;  %v4598_v57 = vadd.s32 %v4467_v63, %v2475_v53 }
 0x313   : > { %v2318_v31 = vadd.f32 %v4552_v21, %v2185_v29  ;;  %v2188_v56 = vadd.f32 %v4405_v13, %v1978_v50  ;;  %v4605_v13 = vadd.s32 %v4467_v63, %v2480_v30 }
 0x314   : > { %vm2353_vm4 = vcmp.gt.f32.partialorder %v2320_v20, 0.0  ;;  %v2386_v32 = vmul.f32 %v4474_v5, %v2320_v20  ;;  %v2321_v52 = vadd.f32 %v4552_v21, %v2196_v1  ;;  %4888 = vst [vmem:[#allocation29_spill] sm:$0xff] %v4598_v57 }
 0x315   : > { %vm2351_vm5 = vcmp.gt.f32.partialorder %v2318_v31, 0.0  ;;  %v2384_v16 = vmul.f32 %v4474_v5, %v2318_v31  ;;  %v2319_v17 = vadd.f32 %v4552_v21, %v2188_v56  ;;  %4889 = vst [vmem:[#allocation30_spill] sm:$0xff] %v4605_v13 }
 0x316   : > { %v2418_v50 = vsel %vm2353_vm4, %v2320_v20, %v2386_v32  ;;  %vm2354_vm8 = vcmp.gt.f32.partialorder %v2321_v52, 0.0  ;;  %v2387_v58 = vmul.f32 %v4474_v5, %v2321_v52  ;;  %v4617_v32 = vadd.s32 248, %v4463_v61 }
 0x317   : > { %v2549_v53 = vsel %vm2517_vm0, %v2418_v50, 0.0  ;;  %v2416_v29 = vsel %vm2351_vm5, %v2318_v31, %v2384_v16  ;;  %vm2352_vm9 = vcmp.gt.f32.partialorder %v2319_v17, 0.0  ;;  %v2385_v1 = vmul.f32 %v4474_v5, %v2319_v17  ;;  %v3514_v56 = vpop.f32.mrb[4].mxu1 }
 0x318   : > { %v2547_v57 = vsel %vm2515_vm1, %v2416_v29, 0.0  ;;  %v2419_v8 = vsel %vm2354_vm8, %v2321_v52, %v2387_v58  ;;  %v2209_v30 = vadd.f32 %v4407_v33, %v3514_v56  ;;  %v1991_v20 = vpop.f32.mrb[5].mxu1  ;;  %v2778_v6 = vmul.f32 %v2549_v53, %v2549_v53 }
 0x319   : > { %v2550_v31 = vsel %vm2518_vm2, %v2419_v8, 0.0  ;;  %v2417_v16 = vsel %vm2352_vm9, %v2319_v17, %v2385_v1  ;;  %v2201_v50 = vadd.f32 %v4409_v34, %v1991_v20  ;;  %v3515_v13 = vpop.f32.mrb[6].mxu1  ;;  %v2776_v9 = vmul.f32 %v2547_v57, %v2547_v57 }
 0x31a   : > { %v3230_v52 = vpack.c.bf16 %v2550_v31, %v2549_v53  ;;  %v2548_v33 = vsel %vm2516_vm3, %v2417_v16, 0.0  ;;  %v2324_v58 = vadd.f32 %v4552_v21, %v2209_v30  ;;  %v1994_v29 = vpop.f32.mrb[7].mxu1  ;;  %v2212_v8 = vadd.f32 %v4411_v35, %v3515_v13 }
 0x31b   : > { %v3225_v56 = vpack.c.bf16 %v2548_v33, %v2547_v57  ;;  %v2739_v7 = vadd.f32 %v2548_v33, %v2547_v57  ;;  %v2777_v49 = vmul.f32 %v2548_v33, %v2548_v33  ;;  %v2322_v10 = vadd.f32 %v4552_v21, %v2201_v50 }
 0x31c   : > { %3317 = vst [vmem:[%s4094_s30 + $0x8] sm:$0xff] %v3230_v52   ;;  %vm2357_vm12 = vcmp.gt.f32.partialorder %v2324_v58, 0.0  ;;  %v2390_v34 = vmul.f32 %v4474_v5, %v2324_v58  ;;  %v2204_v17 = vadd.f32 %v4413_v26, %v1994_v29  ;;  %v2325_v57 = vadd.f32 %v4552_v21, %v2212_v8 }
 0x31d   : > { %3226 = vst [vmem:[%s4094_s30] sm:$0xff] %v3225_v56   ;;  %v2740_v14 = vadd.f32 %v2739_v7, %v2549_v53  ;;  %v2808_v1 = vadd.f32 %v2777_v49, %v2776_v9  ;;  %vm2355_vm13 = vcmp.gt.f32.partialorder %v2322_v10, 0.0  ;;  %v2388_v30 = vmul.f32 %v4474_v5, %v2322_v10 }
 0x31e   : > { %v2422_v20 = vsel %vm2357_vm12, %v2324_v58, %v2390_v34  ;;  %v2323_v16 = vadd.f32 %v4552_v21, %v2204_v17  ;;  %v4636_v50 = vadd.s32 %v4467_v63, %v2478_v25  ;;  %v2779_v52 = vmul.f32 %v2550_v31, %v2550_v31 }
 0x31f   : > { %v2809_v33 = vadd.f32 %v2808_v1, %v2778_v6  ;;  %v2420_v2 = vsel %vm2355_vm13, %v2322_v10, %v2388_v30  ;;  %v2741_v35 = vadd.f32 %v2740_v14, %v2550_v31  ;;  %v3518_v13 = vpop.f32.mrb[8].mxu1  ;;  %v2553_v26 = vsel %vm2521_vm6, %v2422_v20, 0.0 }
 0x320   : > { %v2551_v49 = vsel %vm2519_vm7, %v2420_v2, 0.0  ;;  %vm2358_vm15 = vcmp.gt.f32.partialorder %v2325_v57, 0.0  ;;  %v2391_v7 = vmul.f32 %v4474_v5, %v2325_v57  ;;  %vm2525_vm0 = vcmp.lt.s32.totalorder %v4510_v23, 512  ;;  %v2007_v25 = vpop.f32.mrb[9].mxu1 }
 0x321   : > { %v2742_v53 = vadd.f32 %v2741_v35, %v2551_v49  ;;  %v2780_v9 = vmul.f32 %v2551_v49, %v2551_v49  ;;  %v2810_v6 = vadd.f32 %v2809_v33, %v2779_v52  ;;  %vm2356_vm1 = vcmp.gt.f32.partialorder %v2323_v16, 0.0  ;;  %v3519_v31 = vpop.f32.mrb[10].mxu1 }
 0x322   : > { %vm2526_vm2 = vcmp.lt.s32.totalorder %v4518_v28, 512  ;;  %vm2524_vm3 = vcmp.lt.s32.totalorder %v4524_v62, 512  ;;  %v2423_v15 = vsel %vm2358_vm15, %v2325_v57, %v2391_v7  ;;  %v2389_v58 = vmul.f32 %v4474_v5, %v2323_v16  ;;  %v2010_v29 = vpop.f32.mrb[11].mxu1 }
 0x323   : > { %v2225_v18 = vadd.f32 %v4415_v36, %v3518_v13  ;;  %v2217_v2 = vadd.f32 %v4417_v37, %v2007_v25  ;;  %v2811_v56 = vadd.f32 %v2810_v6, %v2780_v9  ;;  %v2554_v10 = vsel %vm2522_vm10, %v2423_v15, 0.0 }
 0x324   : > { %v2228_v34 = vadd.f32 %v4419_v38, %v3519_v31  ;;  %v2220_v8 = vadd.f32 %v4421_v39, %v2010_v29  ;;  %v2782_v17 = vmul.f32 %v2553_v26, %v2553_v26  ;;  %v3240_v14 = vpack.c.bf16 %v2554_v10, %v2553_v26 }
 0x325   : > { %v2421_v1 = vsel %vm2356_vm1, %v2323_v16, %v2389_v58  ;;  %v2328_v30 = vadd.f32 %v4552_v21, %v2225_v18  ;;  %v2326_v37 = vadd.f32 %v4552_v21, %v2217_v2  ;;  %vm2529_vm8 = vcmp.lt.s32.totalorder %v4527_v0, 512 }
 0x326   : > { %v2552_v36 = vsel %vm2520_vm11, %v2421_v1, 0.0  ;;  %v2329_v20 = vadd.f32 %v4552_v21, %v2228_v34  ;;  %v2327_v19 = vadd.f32 %v4552_v21, %v2220_v8  ;;  %3319 = vst [vmem:[%s4094_s30 + $0x18] sm:$0xff] %v3240_v14   ;;  %v2783_v31 = vmul.f32 %v2554_v10, %v2554_v10 }
 0x327   : > { %v3235_v57 = vpack.c.bf16 %v2552_v36, %v2551_v49  ;;  %v2743_v38 = vadd.f32 %v2742_v53, %v2552_v36  ;;  %v2781_v52 = vmul.f32 %v2552_v36, %v2552_v36  ;;  %vm2361_vm4 = vcmp.gt.f32.partialorder %v2328_v30, 0.0  ;;  %v3522_v33 = vpop.f32.mrb[12].mxu1 }
 0x328   : > { %v2394_v39 = vmul.f32 %v4474_v5, %v2328_v30  ;;  %vm2359_vm5 = vcmp.gt.f32.partialorder %v2326_v37, 0.0  ;;  %v2392_v16 = vmul.f32 %v4474_v5, %v2326_v37  ;;  %vm2362_vm6 = vcmp.gt.f32.partialorder %v2329_v20, 0.0  ;;  %v2023_v7 = vpop.f32.mrb[13].mxu1 }
 0x329   : > { %3318 = vst [vmem:[%s4094_s30 + $0x10] sm:$0xff] %v3235_v57   ;;  %v2744_v22 = vadd.f32 %v2743_v38, %v2553_v26  ;;  %v2812_v35 = vadd.f32 %v2811_v56, %v2781_v52  ;;  %v2395_v13 = vmul.f32 %v4474_v5, %v2329_v20  ;;  %vm2360_vm7 = vcmp.gt.f32.partialorder %v2327_v19, 0.0  ;;  %v3523_v6 = vpop.f32.mrb[14].mxu1 }
 0x32a   : > { %v2426_v49 = vsel %vm2361_vm4, %v2328_v30, %v2394_v39  ;;  %v2424_v25 = vsel %vm2359_vm5, %v2326_v37, %v2392_v16  ;;  %v2393_v53 = vmul.f32 %v4474_v5, %v2327_v19  ;;  %v2241_v9 = vadd.f32 %v4423_v40, %v3522_v33  ;;  %v2026_v18 = vpop.f32.mrb[15].mxu1 }
 0x32b   : > { %v2813_v15 = vadd.f32 %v2812_v35, %v2782_v17  ;;  %v2555_v58 = vsel %vm2523_vm14, %v2424_v25, 0.0  ;;  %v2745_v26 = vadd.f32 %v2744_v22, %v2554_v10  ;;  %v2557_v2 = vsel %vm2525_vm0, %v2426_v49, 0.0 }
 0x32c   : > { %v2784_v29 = vmul.f32 %v2555_v58, %v2555_v58  ;;  %v2427_v56 = vsel %vm2362_vm6, %v2329_v20, %v2395_v13  ;;  %v2425_v34 = vsel %vm2360_vm7, %v2327_v19, %v2393_v53  ;;  %vm2527_vm9 = vcmp.lt.s32.totalorder %v4533_v3, 512 }
 0x32d   : > { %v2746_v40 = vadd.f32 %v2745_v26, %v2555_v58  ;;  %v2814_v8 = vadd.f32 %v2813_v15, %v2783_v31  ;;  %v2558_v27 = vsel %vm2526_vm2, %v2427_v56, 0.0  ;;  %v2556_v10 = vsel %vm2524_vm3, %v2425_v34, 0.0 }
 0x32e   : > { %vm2530_vm10 = vcmp.lt.s32.totalorder %v4536_v4, 512  ;;  %v3250_v23 = vpack.c.bf16 %v2558_v27, %v2557_v2  ;;  %v3245_v17 = vpack.c.bf16 %v2556_v10, %v2555_v58  ;;  %v2785_v14 = vmul.f32 %v2556_v10, %v2556_v10 }
 0x32f   : > { %vm2528_vm11 = vcmp.lt.s32.totalorder %v4542_v11, 512  ;;  %v4683_v1 = vadd.s32 %v4467_v63, %v4617_v32  ;;  %v2815_v30 = vadd.f32 %v2814_v8, %v2784_v29  ;;  %v2747_v36 = vadd.f32 %v2746_v40, %v2556_v10  ;;  %v3526_v38 = vpop.f32.mrb[16].mxu1 }
 0x330   : > { %v2332_v28 = vadd.f32 %v4552_v21, %v2241_v9  ;;  %v2233_v37 = vadd.f32 %v4425_v41, %v2023_v7  ;;  %v2786_v20 = vmul.f32 %v2557_v2, %v2557_v2  ;;  %3321 = vst [vmem:[%s4094_s30 + $0x28] sm:$0xff] %v3250_v23   ;;  %v2787_v62 = vmul.f32 %v2558_v27, %v2558_v27  ;;  %v2039_v16 = vpop.f32.mrb[17].mxu1 }
 0x331   : > { %3320 = vst [vmem:[%s4094_s30 + $0x20] sm:$0xff] %v3245_v17   ;;  %v2244_v19 = vadd.f32 %v4427_v42, %v3523_v6  ;;  %v2236_v57 = vadd.f32 %v4429_v43, %v2026_v18  ;;  %v2748_v52 = vadd.f32 %v2747_v36, %v2557_v2  ;;  %v2816_v39 = vadd.f32 %v2815_v30, %v2785_v14  ;;  %v3527_v13 = vpop.f32.mrb[18].mxu1 }
 0x332   : > { %vm2365_vm12 = vcmp.gt.f32.partialorder %v2332_v28, 0.0  ;;  %v2398_v32 = vmul.f32 %v4474_v5, %v2332_v28  ;;  %v2330_v33 = vadd.f32 %v4552_v21, %v2233_v37  ;;  %v2257_v35 = vadd.f32 %v4431_v44, %v3526_v38  ;;  %v2042_v25 = vpop.f32.mrb[19].mxu1 }
 0x333   : > { %v2333_v22 = vadd.f32 %v4552_v21, %v2244_v19  ;;  %v2331_v41 = vadd.f32 %v4552_v21, %v2236_v57  ;;  %v2817_v7 = vadd.f32 %v2816_v39, %v2786_v20  ;;  %v2749_v49 = vadd.f32 %v2748_v52, %v2558_v27 }
 0x334   : > { %v2430_v42 = vsel %vm2365_vm12, %v2332_v28, %v2398_v32  ;;  %vm2533_vm13 = vcmp.lt.s32.totalorder %v4545_v12, 512  ;;  %v2249_v43 = vadd.f32 %v4433_v45, %v2039_v16  ;;  %vm2531_vm14 = vcmp.lt.s32.totalorder %v4556_v59, 512 }
 0x335   : > { %v2561_v53 = vsel %vm2529_vm8, %v2430_v42, 0.0  ;;  %vm2363_vm15 = vcmp.gt.f32.partialorder %v2330_v33, 0.0  ;;  %v2396_v9 = vmul.f32 %v4474_v5, %v2330_v33  ;;  %vm2366_vm0 = vcmp.gt.f32.partialorder %v2333_v22, 0.0 }
 0x336   : > { %v2790_v6 = vmul.f32 %v2561_v53, %v2561_v53  ;;  %v2818_v44 = vadd.f32 %v2817_v7, %v2787_v62  ;;  %v2399_v31 = vmul.f32 %v4474_v5, %v2333_v22  ;;  %vm2364_vm1 = vcmp.gt.f32.partialorder %v2331_v41, 0.0 }
 0x337   : > { %vm2534_vm2 = vcmp.lt.s32.totalorder %v4559_v24, 512  ;;  %v2428_v15 = vsel %vm2363_vm15, %v2330_v33, %v2396_v9  ;;  %v2397_v45 = vmul.f32 %v4474_v5, %v2331_v41  ;;  %v2336_v58 = vadd.f32 %v4552_v21, %v2257_v35  ;;  %v3530_v27 = vpop.f32.mrb[20].mxu1  ;;  %v4891_v9 = vld [vmem:[#allocation14_spill] sm:$0xff] }
 0x338   : > { %v2334_v26 = vadd.f32 %v4552_v21, %v2249_v43  ;;  %v2559_v0 = vsel %vm2527_vm9, %v2428_v15, 0.0  ;;  %v2431_v18 = vsel %vm2366_vm0, %v2333_v22, %v2399_v31  ;;  %v2260_v2 = vadd.f32 %v4435_v46, %v3527_v13  ;;  %v2055_v46 = vpop.f32.mrb[21].mxu1  ;;  %v4892_v15 = vld [vmem:[#allocation15_spill] sm:$0xff] }
 0x339   : > { %v2252_v29 = vadd.f32 %v4437_v47, %v2042_v25  ;;  %v2750_v56 = vadd.f32 %v2749_v49, %v2559_v0  ;;  %v2788_v34 = vmul.f32 %v2559_v0, %v2559_v0  ;;  %v2562_v40 = vsel %vm2530_vm10, %v2431_v18, 0.0  ;;  %v3531_v36 = vpop.f32.mrb[22].mxu1  ;;  %v4890_v49 = vld [vmem:[#allocation25_spill] sm:$0xff] }
 0x33a   : > { %v2429_v8 = vsel %vm2364_vm1, %v2331_v41, %v2397_v45  ;;  %vm2532_vm3 = vcmp.lt.s32.totalorder %v4565_v55, 512  ;;  %v3260_v10 = vpack.c.bf16 %v2562_v40, %v2561_v53  ;;  %v2791_v23 = vmul.f32 %v2562_v40, %v2562_v40  ;;  %v2058_v20 = vpop.f32.mrb[23].mxu1 }
 0x33b   : > { %v2560_v3 = vsel %vm2528_vm11, %v2429_v8, 0.0  ;;  %vm2369_vm4 = vcmp.gt.f32.partialorder %v2336_v58, 0.0  ;;  %v2819_v17 = vadd.f32 %v2818_v44, %v2788_v34  ;;  %v2402_v4 = vmul.f32 %v4474_v5, %v2336_v58 }
 0x33c   : > { %v3255_v47 = vpack.c.bf16 %v2560_v3, %v2559_v0  ;;  %v2751_v14 = vadd.f32 %v2750_v56, %v2560_v3  ;;  %v2789_v30 = vmul.f32 %v2560_v3, %v2560_v3  ;;  %3323 = vst [vmem:[%s4094_s30 + $0x38] sm:$0xff] %v3260_v10   ;;  %vm2367_vm5 = vcmp.gt.f32.partialorder %v2334_v26, 0.0 }
 0x33d   : > { %v2400_v28 = vmul.f32 %v4474_v5, %v2334_v26  ;;  %v2337_v37 = vadd.f32 %v4552_v21, %v2260_v2  ;;  %v2335_v19 = vadd.f32 %v4552_v21, %v2252_v29  ;;  %v2273_v57 = vadd.f32 %v4439_v48, %v3530_v27 }
 0x33e   : > { %3322 = vst [vmem:[%s4094_s30 + $0x30] sm:$0xff] %v3255_v47   ;;  %v2752_v62 = vadd.f32 %v2751_v14, %v2561_v53  ;;  %v2820_v11 = vadd.f32 %v2819_v17, %v2789_v30  ;;  %vm2537_vm6 = vcmp.lt.s32.totalorder %v4568_v54, 512  ;;  %v2434_v38 = vsel %vm2369_vm4, %v2336_v58, %v2402_v4  ;;  %v4893_v58 = vld [vmem:[#allocation16_spill] sm:$0xff]  ;;  %v4894_v17 = vld [vmem:[#allocation26_spill] sm:$0xff] }
 0x33f   : > { %v2432_v52 = vsel %vm2367_vm5, %v2334_v26, %v2400_v28  ;;  %vm2370_vm7 = vcmp.gt.f32.partialorder %v2337_v37, 0.0  ;;  %v2403_v39 = vmul.f32 %v4474_v5, %v2337_v37  ;;  %vm2535_vm8 = vcmp.lt.s32.totalorder %v4573_v60, 512  ;;  %v3534_v59 = vpop.f32.mrb[24].mxu1  ;;  %v4897_v54 = vld [vmem:[#allocation18_spill] sm:$0xff] }
 0x340   : > { %v2821_v32 = vadd.f32 %v2820_v11, %v2790_v6  ;;  %v2565_v16 = vsel %vm2533_vm13, %v2434_v38, 0.0  ;;  %v2563_v33 = vsel %vm2531_vm14, %v2432_v52, 0.0  ;;  %v2753_v22 = vadd.f32 %v2752_v62, %v2562_v40  ;;  %v2071_v44 = vpop.f32.mrb[25].mxu1 }
 0x341   : > { %v2792_v41 = vmul.f32 %v2563_v33, %v2563_v33  ;;  %v2435_v48 = vsel %vm2370_vm7, %v2337_v37, %v2403_v39  ;;  %vm2368_vm9 = vcmp.gt.f32.partialorder %v2335_v19, 0.0  ;;  %vm2538_vm10 = vcmp.lt.s32.totalorder %v4576_v51, 512  ;;  %v3535_v24 = vpop.f32.mrb[26].mxu1  ;;  %v4898_v39 = vld [vmem:[#allocation28_spill] sm:$0xff] }
 0x342   : > { %v4733_v35 = vadd.s32 232, %v4463_v61  ;;  %v2754_v13 = vadd.f32 %v2753_v22, %v2563_v33  ;;  %v2822_v7 = vadd.f32 %v2821_v32, %v2791_v23  ;;  %v2566_v42 = vsel %vm2534_vm2, %v2435_v48, 0.0  ;;  %v2074_v29 = vpop.f32.mrb[27].mxu1 }
 0x343   : > { %v2401_v12 = vmul.f32 %v4474_v5, %v2335_v19  ;;  %vm2536_vm11 = vcmp.lt.s32.totalorder %v4890_v49, 512  ;;  %v2794_v43 = vmul.f32 %v2565_v16, %v2565_v16  ;;  %v3270_v25 = vpack.c.bf16 %v2566_v42, %v2565_v16  ;;  %v4901_v49 = vld [vmem:[#allocation20_spill] sm:$0xff] }
 0x344   : > { %v2340_v53 = vadd.f32 %v4552_v21, %v2273_v57  ;;  %v2265_v6 = vadd.f32 %v4891_v9, %v2055_v46  ;;  %v2823_v61 = vadd.f32 %v2822_v7, %v2792_v41  ;;  %v2276_v45 = vadd.f32 %v4892_v15, %v3531_v36  ;;  %v4895_v36 = vld [vmem:[#allocation27_spill] sm:$0xff]  ;;  %v4896_v57 = vld [vmem:[#allocation17_spill] sm:$0xff] }
 0x345   : > { %v2433_v31 = vsel %vm2368_vm9, %v2335_v19, %v2401_v12  ;;  %v2268_v26 = vadd.f32 %v4893_v58, %v2058_v20  ;;  %3325 = vst [vmem:[%s4094_s30 + $0x48] sm:$0xff] %v3270_v25   ;;  %v2795_v3 = vmul.f32 %v2566_v42, %v2566_v42  ;;  %vm2541_vm15 = vcmp.lt.s32.totalorder %v4894_v17, 512  ;;  %v4899_v41 = vld [vmem:[#allocation29_spill] sm:$0xff] }
 0x346   : > { %v2564_v0 = vsel %vm2532_vm3, %v2433_v31, 0.0  ;;  %vm2373_vm12 = vcmp.gt.f32.partialorder %v2340_v53, 0.0  ;;  %v2406_v18 = vmul.f32 %v4474_v5, %v2340_v53  ;;  %v2338_v2 = vadd.f32 %v4552_v21, %v2265_v6  ;;  %v4902_v58 = vld [vmem:[#allocation21_spill] sm:$0xff] }
 0x347   : > { %v3265_v56 = vpack.c.bf16 %v2564_v0, %v2563_v33  ;;  %v2755_v34 = vadd.f32 %v2754_v13, %v2564_v0  ;;  %v2793_v40 = vmul.f32 %v2564_v0, %v2564_v0  ;;  %v2341_v8 = vadd.f32 %v4552_v21, %v2276_v45  ;;  %v3538_v62 = vpop.f32.mrb[28].mxu1 }
 0x348   : > { %v2438_v27 = vsel %vm2373_vm12, %v2340_v53, %v2406_v18  ;;  %vm2371_vm13 = vcmp.gt.f32.partialorder %v2338_v2, 0.0  ;;  %v2404_v10 = vmul.f32 %v4474_v5, %v2338_v2  ;;  %v2339_v23 = vadd.f32 %v4552_v21, %v2268_v26  ;;  %v2087_v32 = vpop.f32.mrb[29].mxu1 }
 0x349   : > { %3324 = vst [vmem:[%s4094_s30 + $0x40] sm:$0xff] %v3265_v56   ;;  %v2756_v55 = vadd.f32 %v2755_v34, %v2565_v16  ;;  %v2824_v46 = vadd.f32 %v2823_v61, %v2793_v40  ;;  %vm2374_vm14 = vcmp.gt.f32.partialorder %v2341_v8, 0.0  ;;  %v2569_v47 = vsel %vm2537_vm6, %v2438_v27, 0.0  ;;  %v3539_v48 = vpop.f32.mrb[30].mxu1 }
 0x34a   : > { %v2436_v14 = vsel %vm2371_vm13, %v2338_v2, %v2404_v10  ;;  %v2407_v30 = vmul.f32 %v4474_v5, %v2341_v8  ;;  %vm2372_vm0 = vcmp.gt.f32.partialorder %v2339_v23, 0.0  ;;  %vm2539_vm1 = vcmp.lt.s32.totalorder %v4895_v36, 512  ;;  %v4903_v10 = vld [vmem:[#allocation30_spill] sm:$0xff] }
 0x34b   : > { %v2825_v4 = vadd.f32 %v2824_v46, %v2794_v43  ;;  %v2567_v28 = vsel %vm2535_vm8, %v2436_v14, 0.0  ;;  %v2757_v37 = vadd.f32 %v2756_v55, %v2566_v42  ;;  %v2405_v20 = vmul.f32 %v4474_v5, %v2339_v23 }
 0x34c   : > { %v2796_v11 = vmul.f32 %v2567_v28, %v2567_v28  ;;  %v2439_v19 = vsel %vm2374_vm14, %v2341_v8, %v2407_v30  ;;  %v2289_v38 = vadd.f32 %v4896_v57, %v3534_v59  ;;  %v2281_v52 = vadd.f32 %v4897_v54, %v2071_v44  ;;  %v2090_v59 = vpop.f32.mrb[31].mxu1  ;;  %v4900_v44 = vld [vmem:[#allocation19_spill] sm:$0xff] }
 0x34d   : > { %vm2542_vm2 = vcmp.lt.s32.totalorder %v4898_v39, 512  ;;  %v2758_v16 = vadd.f32 %v2757_v37, %v2567_v28  ;;  %v2826_v33 = vadd.f32 %v2825_v4, %v2795_v3  ;;  %v2570_v60 = vsel %vm2538_vm10, %v2439_v19, 0.0 }
 0x34e   : > { %v2437_v22 = vsel %vm2372_vm0, %v2339_v23, %v2405_v20  ;;  %vm2540_vm3 = vcmp.lt.s32.totalorder %v4899_v41, 512  ;;  %v2798_v13 = vmul.f32 %v2569_v47, %v2569_v47  ;;  %v3280_v7 = vpack.c.bf16 %v2570_v60, %v2569_v47  ;;  %v4905_v20 = vld [vmem:[#allocation23_spill] sm:$0xff] }
 0x34f   : > { %v2568_v42 = vsel %vm2536_vm11, %v2437_v22, 0.0  ;;  %v2344_v12 = vadd.f32 %v4552_v21, %v2289_v38  ;;  %v2827_v43 = vadd.f32 %v2826_v33, %v2796_v11  ;;  %v2342_v6 = vadd.f32 %v4552_v21, %v2281_v52 }
 0x350   : > { %v3275_v25 = vpack.c.bf16 %v2568_v42, %v2567_v28  ;;  %v2759_v53 = vadd.f32 %v2758_v16, %v2568_v42  ;;  %v2797_v9 = vmul.f32 %v2568_v42, %v2568_v42  ;;  %3327 = vst [vmem:[%s4094_s30 + $0x58] sm:$0xff] %v3280_v7   ;;  %v2292_v61 = vadd.f32 %v4900_v44, %v3535_v24  ;;  %v4904_v28 = vld [vmem:[#allocation22_spill] sm:$0xff]  ;;  %v4906_v16 = vld [vmem:[#allocation24_spill] sm:$0xff] }
 0x351   : > { %vm2377_vm4 = vcmp.gt.f32.partialorder %v2344_v12, 0.0  ;;  %v2410_v51 = vmul.f32 %v4474_v5, %v2344_v12  ;;  %v2284_v45 = vadd.f32 %v4901_v49, %v2074_v29  ;;  %v2305_v26 = vadd.f32 %v4902_v58, %v3538_v62 }
 0x352   : > { %3326 = vst [vmem:[%s4094_s30 + $0x50] sm:$0xff] %v3275_v25   ;;  %v2760_v31 = vadd.f32 %v2759_v53, %v2569_v47  ;;  %v2828_v15 = vadd.f32 %v2827_v43, %v2797_v9  ;;  %vm2375_vm5 = vcmp.gt.f32.partialorder %v2342_v6, 0.0  ;;  %v2408_v18 = vmul.f32 %v4474_v5, %v2342_v6 }
 0x353   : > { %v2442_v0 = vsel %vm2377_vm4, %v2344_v12, %v2410_v51  ;;  %v2345_v2 = vadd.f32 %v4552_v21, %v2292_v61  ;;  %v2799_v56 = vmul.f32 %v2570_v60, %v2570_v60  ;;  %v2343_v8 = vadd.f32 %v4552_v21, %v2284_v45 }
 0x354   : > { %v2829_v34 = vadd.f32 %v2828_v15, %v2798_v13  ;;  %v2761_v40 = vadd.f32 %v2760_v31, %v2570_v60  ;;  %v2573_v24 = vsel %vm2541_vm15, %v2442_v0, 0.0  ;;  %v2440_v27 = vsel %vm2375_vm5, %v2342_v6, %v2408_v18 }
 0x355   : > { %vm2378_vm6 = vcmp.gt.f32.partialorder %v2345_v2, 0.0  ;;  %v2411_v29 = vmul.f32 %v4474_v5, %v2345_v2  ;;  %vm2545_vm7 = vcmp.lt.s32.totalorder %v4903_v10, 512  ;;  %vm2543_vm8 = vcmp.lt.s32.totalorder %v4636_v50, 512 }
 0x356   : > { %v2571_v23 = vsel %vm2539_vm1, %v2440_v27, 0.0  ;;  %v2830_v3 = vadd.f32 %v2829_v34, %v2799_v56  ;;  %vm2376_vm9 = vcmp.gt.f32.partialorder %v2343_v8, 0.0  ;;  %v2409_v55 = vmul.f32 %v4474_v5, %v2343_v8 }
 0x357   : > { %v2762_v46 = vadd.f32 %v2761_v40, %v2571_v23  ;;  %v2800_v47 = vmul.f32 %v2571_v23, %v2571_v23  ;;  %v2443_v17 = vsel %vm2378_vm6, %v2345_v2, %v2411_v29  ;;  %v2348_v14 = vadd.f32 %v4552_v21, %v2305_v26 }
 0x358   : > { %v2574_v30 = vsel %vm2542_vm2, %v2443_v17, 0.0  ;;  %v2441_v4 = vsel %vm2376_vm9, %v2343_v8, %v2409_v55  ;;  %v2297_v37 = vadd.f32 %v4904_v28, %v2087_v32  ;;  %v2308_v36 = vadd.f32 %v4905_v20, %v3539_v48 }
 0x359   : > { %v2831_v62 = vadd.f32 %v2830_v3, %v2800_v47  ;;  %v3290_v11 = vpack.c.bf16 %v2574_v30, %v2573_v24  ;;  %v2572_v19 = vsel %vm2540_vm3, %v2441_v4, 0.0  ;;  %vm2546_vm10 = vcmp.lt.s32.totalorder %v4683_v1, 512 }
 0x35a   : > { %v3285_v57 = vpack.c.bf16 %v2572_v19, %v2571_v23  ;;  %v2763_v38 = vadd.f32 %v2762_v46, %v2572_v19  ;;  %v2801_v54 = vmul.f32 %v2572_v19, %v2572_v19  ;;  %vm2381_vm11 = vcmp.gt.f32.partialorder %v2348_v14, 0.0 }
 0x35b   : > { %3329 = vst [vmem:[%s4094_s30 + $0x68] sm:$0xff] %v3290_v11   ;;  %v2414_v52 = vmul.f32 %v4474_v5, %v2348_v14  ;;  %v2346_v39 = vadd.f32 %v4552_v21, %v2297_v37  ;;  %v2349_v32 = vadd.f32 %v4552_v21, %v2308_v36  ;;  %v2300_v33 = vadd.f32 %v4906_v16, %v2090_v59 }
 0x35c   : > { %v2802_v60 = vmul.f32 %v2573_v24, %v2573_v24  ;;  %3328 = vst [vmem:[%s4094_s30 + $0x60] sm:$0xff] %v3285_v57   ;;  %v2764_v22 = vadd.f32 %v2763_v38, %v2573_v24  ;;  %v2832_v41 = vadd.f32 %v2831_v62, %v2801_v54  ;;  %v2512_v48 = vadd.s32 %v4467_v63, %v4733_v35 }
 0x35d   : > { %v2446_v13 = vsel %vm2381_vm11, %v2348_v14, %v2414_v52  ;;  %vm2379_vm12 = vcmp.gt.f32.partialorder %v2346_v39, 0.0  ;;  %v2412_v7 = vmul.f32 %v4474_v5, %v2346_v39  ;;  %vm2382_vm13 = vcmp.gt.f32.partialorder %v2349_v32, 0.0 }
 0x35e   : > { %v2803_v42 = vmul.f32 %v2574_v30, %v2574_v30  ;;  %v2833_v12 = vadd.f32 %v2832_v41, %v2802_v60  ;;  %v2765_v43 = vadd.f32 %v2764_v22, %v2574_v30  ;;  %v2415_v25 = vmul.f32 %v4474_v5, %v2349_v32 }
 0x35f   : > { %v2444_v53 = vsel %vm2379_vm12, %v2346_v39, %v2412_v7  ;;  %v2347_v59 = vadd.f32 %v4552_v21, %v2300_v33  ;;  %v2577_v9 = vsel %vm2545_vm7, %v2446_v13, 0.0  ;;  %vm2544_vm15 = vcmp.lt.s32.totalorder %v2512_v48, 512 }
 0x360   : > { %v2575_v63 = vsel %vm2543_vm8, %v2444_v53, 0.0  ;;  %v2834_v35 = vadd.f32 %v2833_v12, %v2803_v42  ;;  %v2447_v51 = vsel %vm2382_vm13, %v2349_v32, %v2415_v25  ;;  %v2806_v0 = vmul.f32 %v2577_v9, %v2577_v9 }
 0x361   : > { %v2766_v6 = vadd.f32 %v2765_v43, %v2575_v63  ;;  %v2804_v44 = vmul.f32 %v2575_v63, %v2575_v63  ;;  %v2578_v61 = vsel %vm2546_vm10, %v2447_v51, 0.0  ;;  %vm2380_vm14 = vcmp.gt.f32.partialorder %v2347_v59, 0.0 }
 0x362   : > { %v3300_v31 = vpack.c.bf16 %v2578_v61, %v2577_v9  ;;  %v2413_v15 = vmul.f32 %v4474_v5, %v2347_v59  ;;  %v2807_v56 = vmul.f32 %v2578_v61, %v2578_v61  ;;  %vm2845_vm0 = vcmask 1040384  }
 0x363   : > { %v2835_v21 = vadd.f32 %v2834_v35, %v2804_v44  ;;  %vm2847_vm1 = vcmask 1041408  }
 0x364   : > { %3331 = vst [vmem:[%s4094_s30 + $0x78] sm:$0xff] %v3300_v31   ;;  %v2445_v49 = vsel %vm2380_vm14, %v2347_v59, %v2413_v15 }
 0x365   : > { %v2576_v45 = vsel %vm2544_vm15, %v2445_v49, 0.0 }
 0x366   : > { %v3295_v58 = vpack.c.bf16 %v2576_v45, %v2575_v63  ;;  %v2767_v50 = vadd.f32 %v2766_v6, %v2576_v45  ;;  %v2805_v26 = vmul.f32 %v2576_v45, %v2576_v45 }
 0x368   : > { %3330 = vst [vmem:[%s4094_s30 + $0x70] sm:$0xff] %v3295_v58   ;;  %v2768_v18 = vadd.f32 %v2767_v50, %v2577_v9  ;;  %v2836_v2 = vadd.f32 %v2835_v21, %v2805_v26 }
 0x36a   : > { %v2769_v34 = vadd.f32 %v2768_v18, %v2578_v61  ;;  %v2837_v1 = vadd.f32 %v2836_v2, %v2806_v0 }
 0x36c   : > { %v2770_v40 = vrot.slane %v2769_v34, 4  ;;  %v2838_v8 = vadd.f32 %v2837_v1, %v2807_v56 }
 0x36e   : > { %v2771_v24 = vadd.f32 %v2770_v40, %v2769_v34  ;;  %v2839_v5 = vrot.slane %v2838_v8, 4 }
 0x370   : > { %v2772_v27 = vrot.slane %v2771_v24, 2  ;;  %v2840_v29 = vadd.f32 %v2839_v5, %v2838_v8 }
 0x372   : > { %v2773_v10 = vadd.f32 %v2772_v27, %v2771_v24  ;;  %v2841_v23 = vrot.slane %v2840_v29, 2 }
 0x374   : > { %v2774_v3 = vrot.slane %v2773_v10, 1  ;;  %v2842_v55 = vadd.f32 %v2841_v23, %v2840_v29 }
 0x376   : > { %v2843_v46 = vrot.slane %v2842_v55, 1  ;;  %v2775_v47 = vadd.f32 %v2774_v3, %v2773_v10 }
 0x378   : > { %v2844_v17 = vadd.f32 %v2843_v46, %v2842_v55 }
 0x37a   : > { %v2846_v14 = vsel %vm2845_vm0, %v2775_v47, %v2844_v17 }
 0x37b   : > { %v2848_v30 = vsel %vm2847_vm1, %v2846_v14, 0.0 }
 0x37c   : > { %2849 = vst [vmem:[%s4104_s11] sm:$0xff] %v2848_v30 }
 0x37d PF: > { %s35_s24 = sadd.s32 1, %s3858_s24   ;;  %s4907_s30 = sld [smem:[#allocation13_spill]] }
 0x37e   : > { %p32_p12 = scmp.ge.s32.totalorder %s35_s24, 6   ;;  %s4908_s20 = sld [smem:[#allocation9_spill]] }
 0x37f   : > { %s4909_s21 = sld [smem:[#allocation10_spill]]  ;;  %s4910_s22 = sld [smem:[#allocation11_spill]] }
 0x380   : > { %s4911_s23 = sld [smem:[#allocation12_spill]]  ;;  %s4912_s18 = smov %s3838_s19 }
 0x381   :  { %34 = sbr.rel (!%p32_p12) target bundleno = 31 (0x1f), region = 166 }
 0x383   : > { %s4913_s19 = smov %s4907_s30 }

// kernel: gnn_forward.7
= control target key start
LH: loop header
LB: loop body
LE: loop exit
PB: predicated region body
PF: predicated region fallthrough
CT: control target
= control target key end

     0   :  { %s1100_s15 = smov 0   ;;  %s1207_s0 = inlined_call_operand.vmem [shape: bf16[8,512], index: 0, kind: input, shape index: {}]   ;;  %s1208_s1 = inlined_call_operand.vmem [shape: bf16[512,128], index: 1, kind: input, shape index: {}]   ;;  %s1209_s2 = inlined_call_operand.vmem [shape: f32[8,1], index: 2, kind: input, shape index: {}]   ;;  %s1210_s3 = inlined_call_operand.vmem [shape: f32[1,128], index: 3, kind: input, shape index: {}]   ;;  %s1211_s4 = inlined_call_operand.vmem [shape: f32[1,128], index: 4, kind: input, shape index: {}]   ;;  %s1212_s5 = inlined_call_operand.vmem [shape: bf16[128,128], index: 5, kind: input, shape index: {}]   ;;  %s1213_s6 = inlined_call_operand.vmem [shape: f32[1,128], index: 6, kind: input, shape index: {}]   ;;  %s1214_s7 = inlined_call_operand.<no memory space> [shape: f32[1,1], index: 7, kind: input, shape index: {}]   ;;  %s1215_s8 = inlined_call_operand.vmem [shape: bf16[128,128], index: 8, kind: input, shape index: {}]   ;;  %s1216_s9 = inlined_call_operand.vmem [shape: f32[1,128], index: 9, kind: input, shape index: {}]   ;;  %s1217_s10 = inlined_call_operand.vmem [shape: f32[8,128], index: 10, kind: output, shape index: {}]  }
   0x1   :  { %15 = sst [smem:[#allocation3]] %s1214_s7 }
   0x2 LB: > { %s1106_s16 = sadd.s32 4294967295, %s1036_s15   ;;  %p856_p0 = scmp.ge.s32.totalorder %s1036_s15, 1  ;;  %s1036_s15 = sphi %s1100_s15, %s21_s15  }
   0x3   : > { %p320_p1 = scmp.lt.s32.totalorder %s1036_s15, 3 }
   0x5   : > { %p321_p2 = pnand %p856_p0, %p320_p1 }
   0x6   : > { %s857_s17 = sshll.u32 (!%p321_p2), %s1106_s16, 1  ;;  %s859_s7 = sshll.u32 (!%p321_p2), %s1106_s16, 5 }
   0x7   : > { %324 = sbr.rel (%p321_p2) target bundleno = 724 (0x2d4), region = 60  ;;  %p359_p3 = scmp.lt.s32.totalorder (!%p321_p2), %s857_s17, 3 }
   0x8   : > { %p365_p4 = scmp.lt.s32.totalorder (!%p321_p2), %s859_s7, 63  ;;  %p861_p5 = scmp.ne.s32.totalorder (!%p321_p2), %s1106_s16, 0 }
   0xe   : > { %s1219_s17 = smov (!%p359_p3, %s857_s17), 3  ;;  %s1221_s7 = smov (!%p365_p4, %s859_s7), 63 }
   0xf   : > { %s858_s18 = sshll.u32 %s1219_s17, 2  ;;  %s860_s22 = sshll.u32 %s1221_s7, 2  ;;  %v1038_v0 = vmov (!%p861_p5), 0.0  }
  0x10   : > { %s362_s21 = scalar_lea.vmem %s1207_s0, %s858_s18  ;;  %s1118_s25 = scalar_lea.vmem %s1208_s1, %s860_s22  ;;  %375 = vst [vmem:[#allocation2] sm:$0xff] (!%p861_p5), %v1038_v0 }
  0x11   : > { %374 = sbr.rel (%p861_p5) target bundleno = 24 (0x18), region = 64 }
  0x18 PF: > { %v995_v1 = vld [vmem:[%s1118_s25 + $0x40] sm:$0xff]   ;;  %v997_v3 = vld [vmem:[%s1118_s25 + $0x48] sm:$0xff]   ;;  %v999_v5 = vld [vmem:[%s1118_s25 + $0x50] sm:$0xff]   ;;  %p880_p6 = scmp.ne.s32.totalorder %s1106_s16, 1 }
  0x19   : > { %v996_v2 = vld [vmem:[%s1118_s25] sm:$0xff]   ;;  %903 = vmatprep.subr.bf16.mxu0 %v995_v1  ;;  %v998_v4 = vld [vmem:[%s1118_s25 + $0x8] sm:$0xff]   ;;  %v1000_v6 = vld [vmem:[%s1118_s25 + $0x10] sm:$0xff]   ;;  %v1039_v29 = vmov (!%p880_p6), 0   ;;  %v1040_v30 = vmov (!%p880_p6), 0.0   ;;  %vm1041_vm0 = vmmov (!%p880_p6), 0  }
  0x1a   : > { %904 = vmatpush3.bf16.msra.mxu0 %v996_v2  ;;  %v1001_v7 = vld [vmem:[%s1118_s25 + $0x58] sm:$0xff]   ;;  %v1003_v9 = vld [vmem:[%s1118_s25 + $0x60] sm:$0xff]   ;;  %v1005_v11 = vld [vmem:[%s1118_s25 + $0x68] sm:$0xff]   ;;  %1013 = vset.pattern.permute.xlu0 (!%p880_p6), %v1039_v29  ;;  %s695_s24 = sld [smem:[#allocation3]] (!%p880_p6) }
  0x1b   : > { %905 = vmatprep.subr.bf16.mxu0 %v997_v3  ;;  %v1002_v8 = vld [vmem:[%s1118_s25 + $0x18] sm:$0xff]   ;;  %v1004_v10 = vld [vmem:[%s1118_s25 + $0x20] sm:$0xff]   ;;  %v1006_v14 = vld [vmem:[%s1118_s25 + $0x28] sm:$0xff]   ;;  %963 = vmatprep.subr.bf16.mxu1 (!%p880_p6), %v1040_v30 }
  0x1c   : > { %v377_v12 = vld [vmem:[%s362_s21] sm:$0xff]  ;;  %v1007_v15 = vld [vmem:[%s1118_s25 + $0x70] sm:$0xff]   ;;  %v1009_v17 = vld [vmem:[%s1118_s25 + $0x78] sm:$0xff]   ;;  %979 = vmatprep.mubr.msk.bf16.mxu1 (!%p880_p6), %vm1041_vm0, %v1040_v30 }
  0x1d   : > { %v863_v13 = vcombine.high %v377_v12, %v377_v12  ;;  %v1008_v16 = vld [vmem:[%s1118_s25 + $0x30] sm:$0xff]   ;;  %v1010_v18 = vld [vmem:[%s1118_s25 + $0x38] sm:$0xff]   ;;  %v862_v19 = vcombine.low %v377_v12, %v377_v12  ;;  %v376_v21 = vld [vmem:[#allocation2] sm:$0xff] }
  0x1e   : > { %906 = vmatpush3.bf16.msra.mxu0 %v998_v4  ;;  %v560_v27 = vld [vmem:[%s1209_s2] sm:$0xff] (!%p880_p6)  ;;  %v1015_v31 = vld [vmem:[%s1212_s5 + $0x8] sm:$0xff] (!%p880_p6)   ;;  %v1016_v32 = vld [vmem:[%s1212_s5 + $0x10] sm:$0xff] (!%p880_p6)  }
  0x1f   : > { %907 = vmatprep.subr.bf16.mxu0 %v999_v5  ;;  %545 = vmatprep.mubr.bf16.mxu0 %v863_v13  ;;  %v1014_v28 = vld [vmem:[%s1212_s5] sm:$0xff] (!%p880_p6)   ;;  %v1017_v33 = vld [vmem:[%s1212_s5 + $0x18] sm:$0xff] (!%p880_p6)   ;;  %v1023_v35 = vld [vmem:[%s1215_s8 + $0x8] sm:$0xff] (!%p880_p6)  }
  0x20   : > { %563 = vperm.xlu0 (!%p880_p6), %1013, %v560_v27   ;;  %v1022_v34 = vld [vmem:[%s1215_s8] sm:$0xff] (!%p880_p6)   ;;  %v1024_v37 = vld [vmem:[%s1215_s8 + $0x10] sm:$0xff] (!%p880_p6)   ;;  %v1019_v38 = vld [vmem:[%s1212_s5 + $0x28] sm:$0xff] (!%p880_p6)   ;;  %v697_v56 = vstv (!%p880_p6), %s695_s24 }
  0x21   : > { %964 = vmatpush3.bf16.msra.mxu1 (!%p880_p6), %v1022_v34  ;;  %v1018_v36 = vld [vmem:[%s1212_s5 + $0x20] sm:$0xff] (!%p880_p6)   ;;  %v1025_v39 = vld [vmem:[%s1215_s8 + $0x18] sm:$0xff] (!%p880_p6)   ;;  %v1020_v40 = vld [vmem:[%s1212_s5 + $0x30] sm:$0xff] (!%p880_p6)  }
  0x22   : > { %908 = vmatpush3.bf16.msra.mxu0 %v1000_v6  ;;  %965 = vmatprep.subr.bf16.mxu1 (!%p880_p6), %v1040_v30  ;;  %v1026_v41 = vld [vmem:[%s1215_s8 + $0x20] sm:$0xff] (!%p880_p6)   ;;  %v1021_v42 = vld [vmem:[%s1212_s5 + $0x38] sm:$0xff] (!%p880_p6)   ;;  %v1027_v43 = vld [vmem:[%s1215_s8 + $0x28] sm:$0xff] (!%p880_p6)  }
  0x23   : > { %909 = vmatprep.subr.bf16.mxu0 %v1001_v7  ;;  %v881_v45 = vld [vmem:[%s1210_s3] ss:$0 sm:$0xff] (!%p880_p6)  ;;  %v1028_v52 = vld [vmem:[%s1215_s8 + $0x30] sm:$0xff] (!%p880_p6)   ;;  %v1029_v53 = vld [vmem:[%s1215_s8 + $0x38] sm:$0xff] (!%p880_p6)  }
  0x24   : > { %v882_v48 = vld [vmem:[%s1211_s4] ss:$0 sm:$0xff] (!%p880_p6) }
  0x25   : > { %966 = vmatpush3.bf16.msra.mxu1 (!%p880_p6), %v1023_v35  ;;  %v883_v54 = vld [vmem:[%s1213_s6] ss:$0 sm:$0xff] (!%p880_p6) }
  0x26   : > { %910 = vmatpush3.bf16.msra.mxu0 %v1002_v8  ;;  %967 = vmatprep.subr.bf16.mxu1 (!%p880_p6), %v1040_v30  ;;  %v892_v0 = vld [vmem:[%s1216_s9] ss:$0 sm:$0xff] (!%p880_p6) }
  0x27   : > { %911 = vmatprep.subr.bf16.mxu0 %v1003_v9 }
  0x29   : > { %968 = vmatpush3.bf16.msra.mxu1 (!%p880_p6), %v1024_v37 }
  0x2a   : > { %912 = vmatpush3.bf16.msra.mxu0 %v1004_v10  ;;  %969 = vmatprep.subr.bf16.mxu1 (!%p880_p6), %v1040_v30 }
  0x2b   : > { %913 = vmatprep.subr.bf16.mxu0 %v1005_v11 }
  0x2d   : > { %970 = vmatpush3.bf16.msra.mxu1 (!%p880_p6), %v1025_v39 }
  0x2e   : > { %914 = vmatpush3.bf16.msra.mxu0 %v1006_v14  ;;  %971 = vmatprep.subr.bf16.mxu1 (!%p880_p6), %v1040_v30 }
  0x2f   : > { %915 = vmatprep.subr.bf16.mxu0 %v1007_v15 }
  0x31   : > { %972 = vmatpush3.bf16.msra.mxu1 (!%p880_p6), %v1026_v41 }
  0x32   : > { %916 = vmatpush3.bf16.msra.mxu0 %v1008_v16  ;;  %973 = vmatprep.subr.bf16.mxu1 (!%p880_p6), %v1040_v30 }
  0x33   : > { %917 = vmatprep.subr.bf16.mxu0 %v1009_v17 }
  0x35   : > { %974 = vmatpush3.bf16.msra.mxu1 (!%p880_p6), %v1027_v43 }
  0x36   : > { %918 = vmatpush3.bf16.msra.mxu0 %v1010_v18  ;;  %975 = vmatprep.subr.bf16.mxu1 (!%p880_p6), %v1040_v30 }
  0x37   : > { %943 = vmatprep.subr.bf16.mxu0 (!%p880_p6), %v1040_v30 }
  0x39   : > { %546 = vmatmul.mubr.bf16.vlgmr.msra.gmra.mrb[0].mxu0 %v862_v19  ;;  %976 = vmatpush3.bf16.msra.mxu1 (!%p880_p6), %v1028_v52 }
  0x3a   : > { %944 = vmatpush3.bf16.msra.mxu0 (!%p880_p6), %v1014_v28  ;;  %959 = vmatprep.mubr.msk.bf16.mxu0 (!%p880_p6), %vm1041_vm0, %v1040_v30 }
  0x3b   : > { %945 = vmatprep.subr.bf16.mxu0 (!%p880_p6), %v1040_v30  ;;  %977 = vmatprep.subr.bf16.mxu1 (!%p880_p6), %v1040_v30 }
  0x3d   : > { %978 = vmatpush3.bf16.msra.mxu1 (!%p880_p6), %v1029_v53 }
  0x3e   : > { %946 = vmatpush3.bf16.msra.mxu0 (!%p880_p6), %v1015_v31 }
  0x3f   : > { %947 = vmatprep.subr.bf16.mxu0 (!%p880_p6), %v1040_v30 }
  0x42   : > { %948 = vmatpush3.bf16.msra.mxu0 (!%p880_p6), %v1016_v32 }
  0x43   : > { %949 = vmatprep.subr.bf16.mxu0 (!%p880_p6), %v1040_v30 }
  0x46   : > { %950 = vmatpush3.bf16.msra.mxu0 (!%p880_p6), %v1017_v33 }
  0x47   : > { %951 = vmatprep.subr.bf16.mxu0 (!%p880_p6), %v1040_v30 }
  0x4a   : > { %952 = vmatpush3.bf16.msra.mxu0 (!%p880_p6), %v1018_v36 }
  0x4b   : > { %953 = vmatprep.subr.bf16.mxu0 (!%p880_p6), %v1040_v30 }
  0x4e   : > { %954 = vmatpush3.bf16.msra.mxu0 (!%p880_p6), %v1019_v38 }
  0x4f   : > { %955 = vmatprep.subr.bf16.mxu0 (!%p880_p6), %v1040_v30 }
  0x52   : > { %956 = vmatpush3.bf16.msra.mxu0 (!%p880_p6), %v1020_v40 }
  0x53   : > { %957 = vmatprep.subr.bf16.mxu0 (!%p880_p6), %v1040_v30 }
  0x56   : > { %958 = vmatpush3.bf16.msra.mxu0 (!%p880_p6), %v1021_v42 }
  0x9f   : > { %v564_v46 = vpop.permute.xlu0 (!%p880_p6), %563 }
 0x10c   : > { %v919_v20 = vpop.f32.mrb[0].mxu0  ;;  %558 = sbr.rel (%p880_p6) target bundleno = 724 (0x2d4), region = 68 }
 0x10d   : > { %v920_v22 = vpop.f32.mrb[1].mxu0 }
 0x10e   : > { %v921_v23 = vadd.f32 %v920_v22, %v919_v20  ;;  %v922_v24 = vpop.f32.mrb[2].mxu0 }
 0x10f   : > { %v923_v25 = vpop.f32.mrb[3].mxu0 }
 0x110   : > { %v553_v26 = vadd.f32 %v921_v23, %v376_v21 }
 0x112   : > { %554 = vst [vmem:[#allocation2] sm:$0xff] %v553_v26 }
 0x119   : > { %v559_v44 = vld [vmem:[#allocation2] sm:$0xff] }
 0x11a   : > { %v566_v47 = vmul.f32 %v564_v46, %v559_v44 }
 0x11c   : > { %v574_v49 = vmul.f32 %v881_v45, %v566_v47 }
 0x11e   : > { %v582_v50 = vadd.f32 %v882_v48, %v574_v49 }
 0x120   : > { %v583_v51 = vpack.c.bf16 %v582_v50, %v582_v50 }
 0x122   : > { %960 = vmatmul.mubr.bf16.vlgmr.msra.gmra.mrb[0].mxu0 %v583_v51 }
 0x1f5   : > { %v689_v55 = vpop.f32.mrb[0].mxu0 }
 0x1f6   : > { %v690_v57 = vadd.f32 %v883_v54, %v689_v55  ;;  %v961_v58 = vpop.f32.mrb[1].mxu0 }
 0x1f7   : > { %v692_v59 = vpop.f32.mrb[2].mxu0 }
 0x1f8   : > { %vm696_vm1 = vcmp.gt.f32.partialorder %v690_v57, 0.0  ;;  %v698_v60 = vmul.f32 %v697_v56, %v690_v57  ;;  %v962_v61 = vpop.f32.mrb[3].mxu0 }
 0x1fa   : > { %v699_v62 = vsel %vm696_vm1, %v690_v57, %v698_v60 }
 0x1fb   : > { %v700_v63 = vpack.c.bf16 %v699_v62, %v699_v62 }
 0x1fd   : > { %980 = vmatmul.mubr.bf16.vlgmr.msra.gmra.mrb[0].mxu1 %v700_v63 }
 0x2d0   : > { %v806_v1 = vpop.f32.mrb[0].mxu1 }
 0x2d1   : > { %v807_v2 = vadd.f32 %v892_v0, %v806_v1  ;;  %v981_v3 = vpop.f32.mrb[1].mxu1 }
 0x2d2   : > { %v809_v4 = vpop.f32.mrb[2].mxu1 }
 0x2d3   : > { %812 = vst [vmem:[%s1217_s10] sm:$0xff] %v807_v2  ;;  %v982_v5 = vpop.f32.mrb[3].mxu1 }
 0x2d4 PF: > { %s21_s15 = sadd.s32 1, %s1036_s15  }
 0x2d5   : > { %p18_p7 = scmp.ge.s32.totalorder %s21_s15, 4  }
 0x2d7   :  { %20 = sbr.rel (!%p18_p7) target bundleno = 2 (0x2), region = 97 }

</bundles_post_ra>
